<compile_context>
chip_gen: v5e
topology: v5e:2x2
jax: 0.10.0
libtpu: 0.0.40
codegen_flags: <defaults>
</compile_context>

<pallas_src>
import math
import functools

import jax
import jax.numpy as jnp
from jax.experimental import pallas as pl
from jax.experimental.pallas import tpu as pltpu


_EPS = 1e-5
_PARALLEL = pltpu.CompilerParams(dimension_semantics=("parallel",))


# ------------------------- in-kernel building blocks -------------------------

def _project_heads(x, w3, b3):
    """x:[L,D] f32, w3:[H,D,Dh] bf16, b3:[H,1,Dh] f32 -> [H,L,Dh] f32."""
    H = w3.shape[0]
    xb = jnp.broadcast_to(x.astype(jnp.bfloat16), (H,) + x.shape)
    return jnp.einsum("hld,hde->hle", xb, w3,
                      preferred_element_type=jnp.float32) + b3


def _layer_norm(h, gamma, beta):
    # PyTorch LayerNorm semantics: biased variance, eps=1e-5, f32 math.
    mean = jnp.mean(h, axis=-1, keepdims=True)
    var = jnp.mean(jnp.square(h - mean), axis=-1, keepdims=True)
    return (h - mean) * jax.lax.rsqrt(var + _EPS) * gamma + beta


def _mha_ln(x_res, x_q, x_kv, key_mask,
            wq3, bq3, wk3, bk3, wv3, bv3, wo3, bo, gamma, beta,
            *, causal, want_probs):
    """Head-batched MHA + output proj + residual + LayerNorm.

    Returns (y, probs or None).  probs are the softmax attention weights
    [H, Lq, Lk] (exact normalization when want_probs=True).
    """
    Lq = x_q.shape[0]
    Lk = x_kv.shape[0]

    qh = _project_heads(x_q, wq3, bq3)         # [H,Lq,Dh]; 1/sqrt(Dh) pre-folded
    kh = _project_heads(x_kv, wk3, bk3)        # [H,Lk,Dh]
    vh = _project_heads(x_kv, wv3, bv3)        # [H,Lk,Dh]

    # energy[h,q,k] = q_h . k_h : one head-batched MXU matmul (no per-head loop)
    energy = jnp.einsum("hqd,hkd->hqk",
                        qh.astype(jnp.bfloat16), kh.astype(jnp.bfloat16),
                        preferred_element_type=jnp.float32)          # [H,Lq,Lk]

    keep = key_mask > 0.0                                            # [1,Lk]
    if causal:
        row = jax.lax.broadcasted_iota(jnp.int32, (Lq, Lk), 0)
        col = jax.lax.broadcasted_iota(jnp.int32, (Lq, Lk), 1)
        keep = jnp.logical_and(keep, col <= row)                     # [Lq,Lk]
    energy = jnp.where(keep, energy, -1e10)     # masked_fill(mask == 0, -1e10)

    energy = energy - jnp.max(energy, axis=-1, keepdims=True)
    p = jnp.exp(energy)
    denom = jnp.sum(p, axis=-1, keepdims=True)
    if want_probs:
        p = p / denom                           # exact for returned attention
    else:
        p = p * pl.reciprocal(denom, approx=True)   # EUP slot, internal only

    # context: one head-batched MXU matmul
    ctx = jnp.einsum("hqk,hkd->hqd",
                     p.astype(jnp.bfloat16), vh.astype(jnp.bfloat16),
                     preferred_element_type=jnp.float32)             # [H,Lq,Dh]

    # output projection without re-merging heads on the lane dim:
    # o = sum_h ctx[h] @ Wo[h*Dh:(h+1)*Dh, :]  (wo3 pre-reshaped to [H,Dh,D])
    o = jnp.einsum("hqd,hde->hqe", ctx.astype(jnp.bfloat16), wo3,
                   preferred_element_type=jnp.float32).sum(axis=0) + bo

    y = _layer_norm(x_res + o, gamma, beta)
    return y, (p if want_probs else None)


def _ffn_ln(x, w1, b1, w2, b2, gamma, beta):
    h = jnp.dot(x.astype(jnp.bfloat16), w1,
                preferred_element_type=jnp.float32) + b1
    h = jnp.maximum(h, 0.0)                     # [L, PF] stays in VMEM
    o = jnp.dot(h.astype(jnp.bfloat16), w2,
                preferred_element_type=jnp.float32) + b2
    return _layer_norm(x + o, gamma, beta)


# ------------------------------ Pallas kernels ------------------------------

def _enc_layer_kernel(x_ref, m_ref,
                      wq, bq, wk, bk, wv, bv, wo, bo, g1, be1,
                      w1, b1, w2, b2, g2, be2,
                      y_ref):
    x = x_ref[0]                                # [Ls, D] f32
    m = m_ref[0]                                # [1, Ls] key-pad mask
    y, _ = _mha_ln(x, x, x, m,
                   wq[...], bq[...], wk[...], bk[...], wv[...], bv[...],
                   wo[...], bo[...], g1[...], be1[...],
                   causal=False, want_probs=False)
    y_ref[0] = _ffn_ln(y, w1[...], b1[...], w2[...], b2[...], g2[...], be2[...])


def _dec_layer_kernel(x_ref, enc_ref, tm_ref, sm_ref,
                      swq, sbq, swk, sbk, swv, sbv, swo, sbo, g1, be1,
                      cwq, cbq, cwk, cbk, cwv, cbv, cwo, cbo, g2, be2,
                      w1, b1, w2, b2, g3, be3,
                      *out_refs, return_attn):
    x = x_ref[0]                                # [Lt, D]
    enc = enc_ref[0]                            # [Ls, D]
    tmask = tm_ref[0]                           # [1, Lt]
    smask = sm_ref[0]                           # [1, Ls]
    # masked (causal + pad) self-attention + LN
    y, _ = _mha_ln(x, x, x, tmask,
                   swq[...], sbq[...], swk[...], sbk[...], swv[...], sbv[...],
                   swo[...], sbo[...], g1[...], be1[...],
                   causal=True, want_probs=False)
    # encoder-decoder cross-attention + LN (probs only for the last layer)
    y, p = _mha_ln(y, y, enc, smask,
                   cwq[...], cbq[...], cwk[...], cbk[...], cwv[...], cbv[...],
                   cwo[...], cbo[...], g2[...], be2[...],
                   causal=False, want_probs=return_attn)
    # position-wise FFN + LN
    y = _ffn_ln(y, w1[...], b1[...], w2[...], b2[...], g3[...], be3[...])
    out_refs[0][0] = y
    if return_attn:
        out_refs[1][0] = p                      # [H, Lt, Ls] in one store


def _out_proj_kernel(x_ref, w_ref, b_ref, y_ref):
    y_ref[...] = jnp.dot(x_ref[...].astype(jnp.bfloat16), w_ref[...],
                         preferred_element_type=jnp.float32) + b_ref[...]


# ------------------------------ kernel wrappers ------------------------------

def _const_spec(arr):
    n = arr.ndim
    return pl.BlockSpec(arr.shape, lambda b: (0,) * n)


_ENC_KEYS = ("wq", "bq", "wk", "bk", "wv", "bv", "wo", "bo", "g1", "be1",
             "w1", "b1", "w2", "b2", "g2", "be2")

_DEC_KEYS = ("swq", "sbq", "swk", "sbk", "swv", "sbv", "swo", "sbo", "g1", "be1",
             "cwq", "cbq", "cwk", "cbk", "cwv", "cbv", "cwo", "cbo", "g2", "be2",
             "w1", "b1", "w2", "b2", "g3", "be3")


def fused_encoder_layer(x, src_key_mask, lp):
    B, L, D = x.shape
    w_args = [lp[k] for k in _ENC_KEYS]
    in_specs = ([pl.BlockSpec((1, L, D), lambda b: (b, 0, 0)),
                 pl.BlockSpec((1, 1, L), lambda b: (b, 0, 0))]
                + [_const_spec(w) for w in w_args])
    return pl.pallas_call(
        _enc_layer_kernel,
        out_shape=jax.ShapeDtypeStruct((B, L, D), jnp.float32),
        grid=(B,),
        in_specs=in_specs,
        out_specs=pl.BlockSpec((1, L, D), lambda b: (b, 0, 0)),
        compiler_params=_PARALLEL,
    )(x, src_key_mask, *w_args)


def fused_decoder_layer(x, enc_src, trg_key_mask, src_key_mask, lp, return_attn):
    B, Lt, D = x.shape
    Ls = enc_src.shape[1]
    H = lp["swq"].shape[0]
    w_args = [lp[k] for k in _DEC_KEYS]
    in_specs = ([pl.BlockSpec((1, Lt, D), lambda b: (b, 0, 0)),
                 pl.BlockSpec((1, Ls, D), lambda b: (b, 0, 0)),
                 pl.BlockSpec((1, 1, Lt), lambda b: (b, 0, 0)),
                 pl.BlockSpec((1, 1, Ls), lambda b: (b, 0, 0))]
                + [_const_spec(w) for w in w_args])
    kernel = functools.partial(_dec_layer_kernel, return_attn=return_attn)
    if return_attn:
        out_shape = (jax.ShapeDtypeStruct((B, Lt, D), jnp.float32),
                     jax.ShapeDtypeStruct((B, H, Lt, Ls), jnp.float32))
        out_specs = (pl.BlockSpec((1, Lt, D), lambda b: (b, 0, 0)),
                     pl.BlockSpec((1, H, Lt, Ls), lambda b: (b, 0, 0, 0)))
    else:
        out_shape = jax.ShapeDtypeStruct((B, Lt, D), jnp.float32)
        out_specs = pl.BlockSpec((1, Lt, D), lambda b: (b, 0, 0))
    out = pl.pallas_call(
        kernel, out_shape=out_shape, grid=(B,),
        in_specs=in_specs, out_specs=out_specs, compiler_params=_PARALLEL,
    )(x, enc_src, trg_key_mask, src_key_mask, *w_args)
    if return_attn:
        return out
    return out, None


def pallas_out_proj(x, p_out, out_dim):
    # Fold batch into rows: one grid-less call over the [B*L, D] slab; output
    # padded to 128 lanes (unmasked stores), sliced back in the wrapper.
    B, L, D = x.shape
    Vp = p_out["w"].shape[1]
    y = pl.pallas_call(
        _out_proj_kernel,
        out_shape=jax.ShapeDtypeStruct((B * L, Vp), jnp.float32),
    )(x.reshape(B * L, D), p_out["w"], p_out["b"])
    return y.reshape(B, L, Vp)[:, :, :out_dim]


# ------------------------------ model forward --------------------------------

def encoder_forward(params, src, src_key_mask, cfg):
    D = cfg["hid_dim"]
    Ls = src.shape[1]
    pos = jnp.arange(Ls, dtype=jnp.int32)
    x = params["enc_tok"][src] * math.sqrt(D) + params["enc_pos"][pos][None, :, :]
    for lp in params["enc_layers"]:
        x = fused_encoder_layer(x, src_key_mask, lp)
    return x


def decoder_forward(params, trg, enc_src, trg_key_mask, src_key_mask, cfg):
    D = cfg["hid_dim"]
    Lt = trg.shape[1]
    pos = jnp.arange(Lt, dtype=jnp.int32)
    x = params["dec_tok"][trg] * math.sqrt(D) + params["dec_pos"][pos][None, :, :]
    n_layers = len(params["dec_layers"])
    attention = None
    for idx, lp in enumerate(params["dec_layers"]):
        want_attn = idx == n_layers - 1          # only the last layer's probs are used
        x, attn = fused_decoder_layer(x, enc_src, trg_key_mask, src_key_mask,
                                      lp, return_attn=want_attn)
        if want_attn:
            attention = attn
    output = pallas_out_proj(x, params["fc_out"], cfg["output_dim"])
    return output, attention


def seq2seq_forward(params, src, trg, cfg):
    # make_src_mask: (src != pad) as key-pad row [B, 1, Ls]; broadcast over
    # heads/queries happens in-kernel (no H-fold replication in HBM).
    src_key_mask = (src != cfg["src_pad_idx"]).astype(jnp.float32)[:, None, :]
    # make_trg_mask: key-pad row [B, 1, Lt]; the causal tril is applied in-kernel.
    trg_key_mask = (trg != cfg["trg_pad_idx"]).astype(jnp.float32)[:, None, :]
    enc_src = encoder_forward(params, src, src_key_mask, cfg)
    return decoder_forward(params, trg, enc_src, trg_key_mask, src_key_mask, cfg)


# ------------------------------ parameter init -------------------------------

def init_params(key, cfg):
    D, PF, H = cfg["hid_dim"], cfg["pf_dim"], cfg["n_heads"]
    Dh = D // H
    scale = 1.0 / math.sqrt(Dh)
    V_out = cfg["output_dim"]
    V_pad = max(128, ((V_out + 127) // 128) * 128)   # lane-dense fc_out

    def nxt():
        nonlocal key
        key, sub = jax.random.split(key)
        return sub

    def dense(din, dout):
        return (jax.random.normal(nxt(), (din, dout), jnp.float32) * 0.05,
                jax.random.normal(nxt(), (1, dout), jnp.float32) * 0.05)

    def head_split_in(w, b, s=1.0):
        # [D, H*Dh] -> [H, D, Dh] bf16 (host-side reshape/transpose, done once);
        # bias -> [H, 1, Dh] f32.  Optional scale `s` folded in.
        w3 = jnp.transpose((w * s).reshape(D, H, Dh), (1, 0, 2)).astype(jnp.bfloat16)
        b3 = (b[0] * s).reshape(H, Dh)[:, None, :]
        return w3, b3

    def mha(prefix):
        wq, bq = dense(D, D)
        wk, bk = dense(D, D)
        wv, bv = dense(D, D)
        wo, bo = dense(D, D)
        wq3, bq3 = head_split_in(wq, bq, scale)      # fold 1/sqrt(Dh) into Q
        wk3, bk3 = head_split_in(wk, bk)
        wv3, bv3 = head_split_in(wv, bv)
        wo3 = wo.reshape(H, Dh, D).astype(jnp.bfloat16)
        return {prefix + "wq": wq3, prefix + "bq": bq3,
                prefix + "wk": wk3, prefix + "bk": bk3,
                prefix + "wv": wv3, prefix + "bv": bv3,
                prefix + "wo": wo3, prefix + "bo": bo}

    def ln(gk, bk_):
        return {gk: jnp.ones((1, D), jnp.float32),
                bk_: jnp.zeros((1, D), jnp.float32)}

    def ffn():
        w1, b1 = dense(D, PF)
        w2, b2 = dense(PF, D)
        return {"w1": w1.astype(jnp.bfloat16), "b1": b1,
                "w2": w2.astype(jnp.bfloat16), "b2": b2}

    def enc_layer():
        p = {}
        p.update(mha(""))
        p.update(ln("g1", "be1"))
        p.update(ffn())
        p.update(ln("g2", "be2"))
        return p

    def dec_layer():
        p = {}
        p.update(mha("s"))
        p.update(ln("g1", "be1"))
        p.update(mha("c"))
        p.update(ln("g2", "be2"))
        p.update(ffn())
        p.update(ln("g3", "be3"))
        return p

    w_out, b_out = dense(D, V_out)
    w_out_p = jnp.zeros((D, V_pad), jnp.float32).at[:, :V_out].set(w_out)
    b_out_p = jnp.zeros((1, V_pad), jnp.float32).at[:, :V_out].set(b_out)

    return {
        "enc_tok": jax.random.normal(nxt(), (cfg["input_dim"], D), jnp.float32) * 0.05,
        "enc_pos": jax.random.normal(nxt(), (cfg["max_len"], D), jnp.float32) * 0.05,
        "dec_tok": jax.random.normal(nxt(), (cfg["output_dim"], D), jnp.float32) * 0.05,
        "dec_pos": jax.random.normal(nxt(), (cfg["max_len"], D), jnp.float32) * 0.05,
        "enc_layers": [enc_layer() for _ in range(cfg["n_layers"])],
        "dec_layers": [dec_layer() for _ in range(cfg["n_layers"])],
        "fc_out": {"w": w_out_p.astype(jnp.bfloat16), "b": b_out_p},
    }


# ----------------------------------- main -------------------------------------

if __name__ == "__main__":
    cfg = dict(input_dim=16, output_dim=14, hid_dim=32, n_heads=4,
               pf_dim=64, n_layers=2, max_len=32,
               src_pad_idx=0, trg_pad_idx=0)

    key = jax.random.PRNGKey(0)
    pkey, skey, tkey = jax.random.split(key, 3)
    params = init_params(pkey, cfg)

    B, Ls, Lt = 2, 8, 8
    src = jax.random.randint(skey, (B, Ls), 1, cfg["input_dim"], dtype=jnp.int32)
    trg = jax.random.randint(tkey, (B, Lt), 1, cfg["output_dim"], dtype=jnp.int32)
    # Trailing padding on one sequence exercises both pad masks.
    src = src.at[1, 6:].set(cfg["src_pad_idx"])
    trg = trg.at[1, 6:].set(cfg["trg_pad_idx"])

    fwd = jax.jit(functools.partial(seq2seq_forward, cfg=cfg))
    output, attention = fwd(params, src, trg)
    jax.block_until_ready((output, attention))

    assert output.shape == (B, Lt, cfg["output_dim"])
    assert attention.shape == (B, cfg["n_heads"], Lt, Ls)
    assert bool(jnp.all(jnp.isfinite(output)))
    assert bool(jnp.all(jnp.isfinite(attention)))
    # Returned attention uses exact softmax normalization: rows sum to ~1.
    assert bool(jnp.all(jnp.abs(jnp.sum(attention, axis=-1) - 1.0) < 1e-3))
    # TODO(synk): dropout layers are identity here (inference mode); training-mode
    # stochastic dropout is not implemented.
    print("KERNEL_OK")
</pallas_src>

<mosaic_0001>
module attributes {stable_mosaic.version = 11 : i64} {
  func.func @_dec_layer_kernel(%arg0: i32, %arg1: memref<1x8x32xf32, #tpu.memory_space<vmem>>, %arg2: memref<1x8x32xf32, #tpu.memory_space<vmem>>, %arg3: memref<1x1x8xf32, #tpu.memory_space<vmem>>, %arg4: memref<1x1x8xf32, #tpu.memory_space<vmem>>, %arg5: memref<4x32x8xbf16, #tpu.memory_space<vmem>>, %arg6: memref<4x1x8xf32, #tpu.memory_space<vmem>>, %arg7: memref<4x32x8xbf16, #tpu.memory_space<vmem>>, %arg8: memref<4x1x8xf32, #tpu.memory_space<vmem>>, %arg9: memref<4x32x8xbf16, #tpu.memory_space<vmem>>, %arg10: memref<4x1x8xf32, #tpu.memory_space<vmem>>, %arg11: memref<4x8x32xbf16, #tpu.memory_space<vmem>>, %arg12: memref<1x32xf32, #tpu.memory_space<vmem>>, %arg13: memref<1x32xf32, #tpu.memory_space<vmem>>, %arg14: memref<1x32xf32, #tpu.memory_space<vmem>>, %arg15: memref<4x32x8xbf16, #tpu.memory_space<vmem>>, %arg16: memref<4x1x8xf32, #tpu.memory_space<vmem>>, %arg17: memref<4x32x8xbf16, #tpu.memory_space<vmem>>, %arg18: memref<4x1x8xf32, #tpu.memory_space<vmem>>, %arg19: memref<4x32x8xbf16, #tpu.memory_space<vmem>>, %arg20: memref<4x1x8xf32, #tpu.memory_space<vmem>>, %arg21: memref<4x8x32xbf16, #tpu.memory_space<vmem>>, %arg22: memref<1x32xf32, #tpu.memory_space<vmem>>, %arg23: memref<1x32xf32, #tpu.memory_space<vmem>>, %arg24: memref<1x32xf32, #tpu.memory_space<vmem>>, %arg25: memref<32x64xbf16, #tpu.memory_space<vmem>>, %arg26: memref<1x64xf32, #tpu.memory_space<vmem>>, %arg27: memref<64x32xbf16, #tpu.memory_space<vmem>>, %arg28: memref<1x32xf32, #tpu.memory_space<vmem>>, %arg29: memref<1x32xf32, #tpu.memory_space<vmem>>, %arg30: memref<1x32xf32, #tpu.memory_space<vmem>>, %arg31: memref<1x8x32xf32, #tpu.memory_space<vmem>>) attributes {dimension_semantics = [#tpu.dimension_semantics<parallel>], iteration_bounds = array<i64: 2>, scalar_prefetch = 0 : i64, scratch_operands = 0 : i64, tpu.core_type = #tpu.core_type<tc>, window_params = [{transform_indices = @transform_0, window_bounds = array<i64: 1, 8, 32>}, {transform_indices = @transform_1, window_bounds = array<i64: 1, 8, 32>}, {transform_indices = @transform_2, window_bounds = array<i64: 1, 1, 8>}, {transform_indices = @transform_3, window_bounds = array<i64: 1, 1, 8>}, {pipeline_mode = #tpu.pipeline_mode<synchronous>, transform_indices = @transform_4, window_bounds = array<i64: 4, 32, 8>}, {pipeline_mode = #tpu.pipeline_mode<synchronous>, transform_indices = @transform_5, window_bounds = array<i64: 4, 1, 8>}, {pipeline_mode = #tpu.pipeline_mode<synchronous>, transform_indices = @transform_6, window_bounds = array<i64: 4, 32, 8>}, {pipeline_mode = #tpu.pipeline_mode<synchronous>, transform_indices = @transform_7, window_bounds = array<i64: 4, 1, 8>}, {pipeline_mode = #tpu.pipeline_mode<synchronous>, transform_indices = @transform_8, window_bounds = array<i64: 4, 32, 8>}, {pipeline_mode = #tpu.pipeline_mode<synchronous>, transform_indices = @transform_9, window_bounds = array<i64: 4, 1, 8>}, {pipeline_mode = #tpu.pipeline_mode<synchronous>, transform_indices = @transform_10, window_bounds = array<i64: 4, 8, 32>}, {pipeline_mode = #tpu.pipeline_mode<synchronous>, transform_indices = @transform_11, window_bounds = array<i64: 1, 32>}, {pipeline_mode = #tpu.pipeline_mode<synchronous>, transform_indices = @transform_12, window_bounds = array<i64: 1, 32>}, {pipeline_mode = #tpu.pipeline_mode<synchronous>, transform_indices = @transform_13, window_bounds = array<i64: 1, 32>}, {pipeline_mode = #tpu.pipeline_mode<synchronous>, transform_indices = @transform_14, window_bounds = array<i64: 4, 32, 8>}, {pipeline_mode = #tpu.pipeline_mode<synchronous>, transform_indices = @transform_15, window_bounds = array<i64: 4, 1, 8>}, {pipeline_mode = #tpu.pipeline_mode<synchronous>, transform_indices = @transform_16, window_bounds = array<i64: 4, 32, 8>}, {pipeline_mode = #tpu.pipeline_mode<synchronous>, transform_indices = @transform_17, window_bounds = array<i64: 4, 1, 8>}, {pipeline_mode = #tpu.pipeline_mode<synchronous>, transform_indices = @transform_18, window_bounds = array<i64: 4, 32, 8>}, {pipeline_mode = #tpu.pipeline_mode<synchronous>, transform_indices = @transform_19, window_bounds = array<i64: 4, 1, 8>}, {pipeline_mode = #tpu.pipeline_mode<synchronous>, transform_indices = @transform_20, window_bounds = array<i64: 4, 8, 32>}, {pipeline_mode = #tpu.pipeline_mode<synchronous>, transform_indices = @transform_21, window_bounds = array<i64: 1, 32>}, {pipeline_mode = #tpu.pipeline_mode<synchronous>, transform_indices = @transform_22, window_bounds = array<i64: 1, 32>}, {pipeline_mode = #tpu.pipeline_mode<synchronous>, transform_indices = @transform_23, window_bounds = array<i64: 1, 32>}, {pipeline_mode = #tpu.pipeline_mode<synchronous>, transform_indices = @transform_24, window_bounds = array<i64: 32, 64>}, {pipeline_mode = #tpu.pipeline_mode<synchronous>, transform_indices = @transform_25, window_bounds = array<i64: 1, 64>}, {pipeline_mode = #tpu.pipeline_mode<synchronous>, transform_indices = @transform_26, window_bounds = array<i64: 64, 32>}, {pipeline_mode = #tpu.pipeline_mode<synchronous>, transform_indices = @transform_27, window_bounds = array<i64: 1, 32>}, {pipeline_mode = #tpu.pipeline_mode<synchronous>, transform_indices = @transform_28, window_bounds = array<i64: 1, 32>}, {pipeline_mode = #tpu.pipeline_mode<synchronous>, transform_indices = @transform_29, window_bounds = array<i64: 1, 32>}, {transform_indices = @transform_30, window_bounds = array<i64: 1, 8, 32>}]} {
    %c0 = arith.constant 0 : index
    %c0_0 = arith.constant 0 : index
    %c0_1 = arith.constant 0 : index
    %0 = vector.load %arg1[%c0, %c0_0, %c0_1] : memref<1x8x32xf32, #tpu.memory_space<vmem>>, vector<1x8x32xf32>
    %1 = vector.shape_cast %0 : vector<1x8x32xf32> to vector<8x32xf32>
    %c0_2 = arith.constant 0 : index
    %c0_3 = arith.constant 0 : index
    %c0_4 = arith.constant 0 : index
    %2 = vector.load %arg2[%c0_2, %c0_3, %c0_4] : memref<1x8x32xf32, #tpu.memory_space<vmem>>, vector<1x8x32xf32>
    %3 = vector.shape_cast %2 : vector<1x8x32xf32> to vector<8x32xf32>
    %c0_5 = arith.constant 0 : index
    %c0_6 = arith.constant 0 : index
    %c0_7 = arith.constant 0 : index
    %4 = vector.load %arg3[%c0_5, %c0_6, %c0_7] : memref<1x1x8xf32, #tpu.memory_space<vmem>>, vector<1x1x8xf32>
    %5 = vector.shape_cast %4 : vector<1x1x8xf32> to vector<1x8xf32>
    %c0_8 = arith.constant 0 : index
    %c0_9 = arith.constant 0 : index
    %c0_10 = arith.constant 0 : index
    %6 = vector.load %arg4[%c0_8, %c0_9, %c0_10] : memref<1x1x8xf32, #tpu.memory_space<vmem>>, vector<1x1x8xf32>
    %7 = vector.shape_cast %6 : vector<1x1x8xf32> to vector<1x8xf32>
    %c0_11 = arith.constant 0 : index
    %c0_12 = arith.constant 0 : index
    %c0_13 = arith.constant 0 : index
    %8 = vector.load %arg5[%c0_11, %c0_12, %c0_13] : memref<4x32x8xbf16, #tpu.memory_space<vmem>>, vector<4x32x8xbf16>
    %c0_14 = arith.constant 0 : index
    %c0_15 = arith.constant 0 : index
    %c0_16 = arith.constant 0 : index
    %9 = vector.load %arg6[%c0_14, %c0_15, %c0_16] : memref<4x1x8xf32, #tpu.memory_space<vmem>>, vector<4x1x8xf32>
    %c0_17 = arith.constant 0 : index
    %c0_18 = arith.constant 0 : index
    %c0_19 = arith.constant 0 : index
    %10 = vector.load %arg7[%c0_17, %c0_18, %c0_19] : memref<4x32x8xbf16, #tpu.memory_space<vmem>>, vector<4x32x8xbf16>
    %c0_20 = arith.constant 0 : index
    %c0_21 = arith.constant 0 : index
    %c0_22 = arith.constant 0 : index
    %11 = vector.load %arg8[%c0_20, %c0_21, %c0_22] : memref<4x1x8xf32, #tpu.memory_space<vmem>>, vector<4x1x8xf32>
    %c0_23 = arith.constant 0 : index
    %c0_24 = arith.constant 0 : index
    %c0_25 = arith.constant 0 : index
    %12 = vector.load %arg9[%c0_23, %c0_24, %c0_25] : memref<4x32x8xbf16, #tpu.memory_space<vmem>>, vector<4x32x8xbf16>
    %c0_26 = arith.constant 0 : index
    %c0_27 = arith.constant 0 : index
    %c0_28 = arith.constant 0 : index
    %13 = vector.load %arg10[%c0_26, %c0_27, %c0_28] : memref<4x1x8xf32, #tpu.memory_space<vmem>>, vector<4x1x8xf32>
    %c0_29 = arith.constant 0 : index
    %c0_30 = arith.constant 0 : index
    %c0_31 = arith.constant 0 : index
    %14 = vector.load %arg11[%c0_29, %c0_30, %c0_31] : memref<4x8x32xbf16, #tpu.memory_space<vmem>>, vector<4x8x32xbf16>
    %c0_32 = arith.constant 0 : index
    %c0_33 = arith.constant 0 : index
    %15 = vector.load %arg12[%c0_32, %c0_33] : memref<1x32xf32, #tpu.memory_space<vmem>>, vector<1x32xf32>
    %c0_34 = arith.constant 0 : index
    %c0_35 = arith.constant 0 : index
    %16 = vector.load %arg13[%c0_34, %c0_35] : memref<1x32xf32, #tpu.memory_space<vmem>>, vector<1x32xf32>
    %c0_36 = arith.constant 0 : index
    %c0_37 = arith.constant 0 : index
    %17 = vector.load %arg14[%c0_36, %c0_37] : memref<1x32xf32, #tpu.memory_space<vmem>>, vector<1x32xf32>
    %18 = arith.truncf %1 : vector<8x32xf32> to vector<8x32xbf16>
    %19 = vector.shape_cast %18 : vector<8x32xbf16> to vector<1x8x32xbf16>
    %20 = vector.broadcast %19 : vector<1x8x32xbf16> to vector<4x8x32xbf16>
    "tpu.trace_start"() <{level = 10 : i32, message = "hld,hde->hle"}> : () -> ()
    %cst = arith.constant dense<0.000000e+00> : vector<4x8x8xf32>
    %21 = tpu.matmul %20, %8, %cst {dimension_numbers = #tpu.dot_dimension_numbers<[2], [1], [1], [2], [0, 0, 0, 1, 1, 2], [0], [0]>} : vector<4x8x32xbf16>, vector<4x32x8xbf16>, vector<4x8x8xf32> -> vector<4x8x8xf32>
    "tpu.trace_stop"() : () -> ()
    %22 = vector.broadcast %9 : vector<4x1x8xf32> to vector<4x8x8xf32>
    %23 = arith.addf %21, %22 : vector<4x8x8xf32>
    %24 = arith.truncf %1 : vector<8x32xf32> to vector<8x32xbf16>
    %25 = vector.shape_cast %24 : vector<8x32xbf16> to vector<1x8x32xbf16>
    %26 = vector.broadcast %25 : vector<1x8x32xbf16> to vector<4x8x32xbf16>
    "tpu.trace_start"() <{level = 10 : i32, message = "hld,hde->hle"}> : () -> ()
    %cst_38 = arith.constant dense<0.000000e+00> : vector<4x8x8xf32>
    %27 = tpu.matmul %26, %10, %cst_38 {dimension_numbers = #tpu.dot_dimension_numbers<[2], [1], [1], [2], [0, 0, 0, 1, 1, 2], [0], [0]>} : vector<4x8x32xbf16>, vector<4x32x8xbf16>, vector<4x8x8xf32> -> vector<4x8x8xf32>
    "tpu.trace_stop"() : () -> ()
    %28 = vector.broadcast %11 : vector<4x1x8xf32> to vector<4x8x8xf32>
    %29 = arith.addf %27, %28 : vector<4x8x8xf32>
    %30 = arith.truncf %1 : vector<8x32xf32> to vector<8x32xbf16>
    %31 = vector.shape_cast %30 : vector<8x32xbf16> to vector<1x8x32xbf16>
    %32 = vector.broadcast %31 : vector<1x8x32xbf16> to vector<4x8x32xbf16>
    "tpu.trace_start"() <{level = 10 : i32, message = "hld,hde->hle"}> : () -> ()
    %cst_39 = arith.constant dense<0.000000e+00> : vector<4x8x8xf32>
    %33 = tpu.matmul %32, %12, %cst_39 {dimension_numbers = #tpu.dot_dimension_numbers<[2], [1], [1], [2], [0, 0, 0, 1, 1, 2], [0], [0]>} : vector<4x8x32xbf16>, vector<4x32x8xbf16>, vector<4x8x8xf32> -> vector<4x8x8xf32>
    "tpu.trace_stop"() : () -> ()
    %34 = vector.broadcast %13 : vector<4x1x8xf32> to vector<4x8x8xf32>
    %35 = arith.addf %33, %34 : vector<4x8x8xf32>
    %36 = arith.truncf %23 : vector<4x8x8xf32> to vector<4x8x8xbf16>
    %37 = arith.truncf %29 : vector<4x8x8xf32> to vector<4x8x8xbf16>
    "tpu.trace_start"() <{level = 10 : i32, message = "hqd,hkd->hqk"}> : () -> ()
    %cst_40 = arith.constant dense<0.000000e+00> : vector<4x8x8xf32>
    %38 = tpu.matmul %36, %37, %cst_40 {dimension_numbers = #tpu.dot_dimension_numbers<[2], [2], [1], [1], [0, 0, 0, 1, 1, 1], [0], [0]>} : vector<4x8x8xbf16>, vector<4x8x8xbf16>, vector<4x8x8xf32> -> vector<4x8x8xf32>
    %cst_41 = arith.constant 0.000000e+00 : f32
    "tpu.trace_stop"() : () -> ()
    %39 = vector.broadcast %cst_41 : f32 to vector<1x8xf32>
    %40 = arith.cmpf ogt, %5, %39 : vector<1x8xf32>
    %41 = tpu.iota {dimensions = array<i32: 0>} : vector<8x8xi32>
    %42 = tpu.iota {dimensions = array<i32: 1>} : vector<8x8xi32>
    %43 = arith.cmpi sle, %42, %41 : vector<8x8xi32>
    %44 = vector.broadcast %40 : vector<1x8xi1> to vector<8x8xi1>
    %45 = arith.andi %44, %43 : vector<8x8xi1>
    %cst_42 = arith.constant -1.000000e+10 : f32
    %46 = vector.shape_cast %45 : vector<8x8xi1> to vector<1x8x8xi1>
    %47 = vector.broadcast %46 : vector<1x8x8xi1> to vector<4x8x8xi1>
    %48 = vector.broadcast %cst_42 : f32 to vector<4x8x8xf32>
    %49 = arith.select %47, %38, %48 : vector<4x8x8xi1>, vector<4x8x8xf32>
    %cst_43 = arith.constant dense<0xFF800000> : vector<4x8xf32>
    %50 = vector.multi_reduction <maximumf>, %49, %cst_43 [2] : vector<4x8x8xf32> to vector<4x8xf32>
    %51 = vector.shape_cast %50 : vector<4x8xf32> to vector<4x8x1xf32>
    %52 = vector.broadcast %51 : vector<4x8x1xf32> to vector<4x8x8xf32>
    %53 = arith.subf %49, %52 : vector<4x8x8xf32>
    %54 = math.exp %53 : vector<4x8x8xf32>
    %cst_44 = arith.constant dense<0.000000e+00> : vector<4x8xf32>
    %55 = vector.multi_reduction <add>, %54, %cst_44 [2] : vector<4x8x8xf32> to vector<4x8xf32>
    %56 = vector.shape_cast %55 : vector<4x8xf32> to vector<4x8x1xf32>
    %57 = tpu.reciprocal %56 {approx = true} : vector<4x8x1xf32> -> vector<4x8x1xf32>
    %58 = vector.broadcast %57 : vector<4x8x1xf32> to vector<4x8x8xf32>
    %59 = arith.mulf %54, %58 : vector<4x8x8xf32>
    %60 = arith.truncf %59 : vector<4x8x8xf32> to vector<4x8x8xbf16>
    %61 = arith.truncf %35 : vector<4x8x8xf32> to vector<4x8x8xbf16>
    "tpu.trace_start"() <{level = 10 : i32, message = "hqk,hkd->hqd"}> : () -> ()
    %cst_45 = arith.constant dense<0.000000e+00> : vector<4x8x8xf32>
    %62 = tpu.matmul %60, %61, %cst_45 {dimension_numbers = #tpu.dot_dimension_numbers<[2], [1], [1], [2], [0, 0, 0, 1, 1, 2], [0], [0]>} : vector<4x8x8xbf16>, vector<4x8x8xbf16>, vector<4x8x8xf32> -> vector<4x8x8xf32>
    "tpu.trace_stop"() : () -> ()
    %63 = arith.truncf %62 : vector<4x8x8xf32> to vector<4x8x8xbf16>
    "tpu.trace_start"() <{level = 10 : i32, message = "hqd,hde->hqe"}> : () -> ()
    %cst_46 = arith.constant dense<0.000000e+00> : vector<4x8x32xf32>
    %64 = tpu.matmul %63, %14, %cst_46 {dimension_numbers = #tpu.dot_dimension_numbers<[2], [1], [1], [2], [0, 0, 0, 1, 1, 2], [0], [0]>} : vector<4x8x8xbf16>, vector<4x8x32xbf16>, vector<4x8x32xf32> -> vector<4x8x32xf32>
    "tpu.trace_stop"() : () -> ()
    %cst_47 = arith.constant dense<0.000000e+00> : vector<8x32xf32>
    %65 = vector.multi_reduction <add>, %64, %cst_47 [0] : vector<4x8x32xf32> to vector<8x32xf32>
    %66 = vector.broadcast %15 : vector<1x32xf32> to vector<8x32xf32>
    %67 = arith.addf %65, %66 : vector<8x32xf32>
    %68 = arith.addf %1, %67 : vector<8x32xf32>
    %cst_48 = arith.constant dense<0.000000e+00> : vector<8xf32>
    %69 = vector.multi_reduction <add>, %68, %cst_48 [1] : vector<8x32xf32> to vector<8xf32>
    %70 = vector.shape_cast %69 : vector<8xf32> to vector<8x1xf32>
    %cst_49 = arith.constant 3.200000e+01 : f32
    %71 = vector.broadcast %cst_49 : f32 to vector<8x1xf32>
    %72 = arith.divf %70, %71 : vector<8x1xf32>
    %73 = vector.broadcast %72 : vector<8x1xf32> to vector<8x32xf32>
    %74 = arith.subf %68, %73 : vector<8x32xf32>
    %75 = arith.mulf %74, %74 : vector<8x32xf32>
    %cst_50 = arith.constant dense<0.000000e+00> : vector<8xf32>
    %76 = vector.multi_reduction <add>, %75, %cst_50 [1] : vector<8x32xf32> to vector<8xf32>
    %77 = vector.shape_cast %76 : vector<8xf32> to vector<8x1xf32>
    %cst_51 = arith.constant 3.200000e+01 : f32
    %78 = vector.broadcast %cst_51 : f32 to vector<8x1xf32>
    %79 = arith.divf %77, %78 : vector<8x1xf32>
    %80 = vector.broadcast %72 : vector<8x1xf32> to vector<8x32xf32>
    %81 = arith.subf %68, %80 : vector<8x32xf32>
    %cst_52 = arith.constant 9.99999974E-6 : f32
    %82 = vector.broadcast %cst_52 : f32 to vector<8x1xf32>
    %83 = arith.addf %79, %82 : vector<8x1xf32>
    %84 = math.rsqrt %83 : vector<8x1xf32>
    %85 = vector.broadcast %84 : vector<8x1xf32> to vector<8x32xf32>
    %86 = arith.mulf %81, %85 : vector<8x32xf32>
    %87 = vector.broadcast %16 : vector<1x32xf32> to vector<8x32xf32>
    %88 = arith.mulf %86, %87 : vector<8x32xf32>
    %89 = vector.broadcast %17 : vector<1x32xf32> to vector<8x32xf32>
    %90 = arith.addf %88, %89 : vector<8x32xf32>
    %c0_53 = arith.constant 0 : index
    %c0_54 = arith.constant 0 : index
    %c0_55 = arith.constant 0 : index
    %91 = vector.load %arg15[%c0_53, %c0_54, %c0_55] : memref<4x32x8xbf16, #tpu.memory_space<vmem>>, vector<4x32x8xbf16>
    %c0_56 = arith.constant 0 : index
    %c0_57 = arith.constant 0 : index
    %c0_58 = arith.constant 0 : index
    %92 = vector.load %arg16[%c0_56, %c0_57, %c0_58] : memref<4x1x8xf32, #tpu.memory_space<vmem>>, vector<4x1x8xf32>
    %c0_59 = arith.constant 0 : index
    %c0_60 = arith.constant 0 : index
    %c0_61 = arith.constant 0 : index
    %93 = vector.load %arg17[%c0_59, %c0_60, %c0_61] : memref<4x32x8xbf16, #tpu.memory_space<vmem>>, vector<4x32x8xbf16>
    %c0_62 = arith.constant 0 : index
    %c0_63 = arith.constant 0 : index
    %c0_64 = arith.constant 0 : index
    %94 = vector.load %arg18[%c0_62, %c0_63, %c0_64] : memref<4x1x8xf32, #tpu.memory_space<vmem>>, vector<4x1x8xf32>
    %c0_65 = arith.constant 0 : index
    %c0_66 = arith.constant 0 : index
    %c0_67 = arith.constant 0 : index
    %95 = vector.load %arg19[%c0_65, %c0_66, %c0_67] : memref<4x32x8xbf16, #tpu.memory_space<vmem>>, vector<4x32x8xbf16>
    %c0_68 = arith.constant 0 : index
    %c0_69 = arith.constant 0 : index
    %c0_70 = arith.constant 0 : index
    %96 = vector.load %arg20[%c0_68, %c0_69, %c0_70] : memref<4x1x8xf32, #tpu.memory_space<vmem>>, vector<4x1x8xf32>
    %c0_71 = arith.constant 0 : index
    %c0_72 = arith.constant 0 : index
    %c0_73 = arith.constant 0 : index
    %97 = vector.load %arg21[%c0_71, %c0_72, %c0_73] : memref<4x8x32xbf16, #tpu.memory_space<vmem>>, vector<4x8x32xbf16>
    %c0_74 = arith.constant 0 : index
    %c0_75 = arith.constant 0 : index
    %98 = vector.load %arg22[%c0_74, %c0_75] : memref<1x32xf32, #tpu.memory_space<vmem>>, vector<1x32xf32>
    %c0_76 = arith.constant 0 : index
    %c0_77 = arith.constant 0 : index
    %99 = vector.load %arg23[%c0_76, %c0_77] : memref<1x32xf32, #tpu.memory_space<vmem>>, vector<1x32xf32>
    %c0_78 = arith.constant 0 : index
    %c0_79 = arith.constant 0 : index
    %100 = vector.load %arg24[%c0_78, %c0_79] : memref<1x32xf32, #tpu.memory_space<vmem>>, vector<1x32xf32>
    %101 = arith.truncf %90 : vector<8x32xf32> to vector<8x32xbf16>
    %102 = vector.shape_cast %101 : vector<8x32xbf16> to vector<1x8x32xbf16>
    %103 = vector.broadcast %102 : vector<1x8x32xbf16> to vector<4x8x32xbf16>
    "tpu.trace_start"() <{level = 10 : i32, message = "hld,hde->hle"}> : () -> ()
    %cst_80 = arith.constant dense<0.000000e+00> : vector<4x8x8xf32>
    %104 = tpu.matmul %103, %91, %cst_80 {dimension_numbers = #tpu.dot_dimension_numbers<[2], [1], [1], [2], [0, 0, 0, 1, 1, 2], [0], [0]>} : vector<4x8x32xbf16>, vector<4x32x8xbf16>, vector<4x8x8xf32> -> vector<4x8x8xf32>
    "tpu.trace_stop"() : () -> ()
    %105 = vector.broadcast %92 : vector<4x1x8xf32> to vector<4x8x8xf32>
    %106 = arith.addf %104, %105 : vector<4x8x8xf32>
    %107 = arith.truncf %3 : vector<8x32xf32> to vector<8x32xbf16>
    %108 = vector.shape_cast %107 : vector<8x32xbf16> to vector<1x8x32xbf16>
    %109 = vector.broadcast %108 : vector<1x8x32xbf16> to vector<4x8x32xbf16>
    "tpu.trace_start"() <{level = 10 : i32, message = "hld,hde->hle"}> : () -> ()
    %cst_81 = arith.constant dense<0.000000e+00> : vector<4x8x8xf32>
    %110 = tpu.matmul %109, %93, %cst_81 {dimension_numbers = #tpu.dot_dimension_numbers<[2], [1], [1], [2], [0, 0, 0, 1, 1, 2], [0], [0]>} : vector<4x8x32xbf16>, vector<4x32x8xbf16>, vector<4x8x8xf32> -> vector<4x8x8xf32>
    "tpu.trace_stop"() : () -> ()
    %111 = vector.broadcast %94 : vector<4x1x8xf32> to vector<4x8x8xf32>
    %112 = arith.addf %110, %111 : vector<4x8x8xf32>
    %113 = arith.truncf %3 : vector<8x32xf32> to vector<8x32xbf16>
    %114 = vector.shape_cast %113 : vector<8x32xbf16> to vector<1x8x32xbf16>
    %115 = vector.broadcast %114 : vector<1x8x32xbf16> to vector<4x8x32xbf16>
    "tpu.trace_start"() <{level = 10 : i32, message = "hld,hde->hle"}> : () -> ()
    %cst_82 = arith.constant dense<0.000000e+00> : vector<4x8x8xf32>
    %116 = tpu.matmul %115, %95, %cst_82 {dimension_numbers = #tpu.dot_dimension_numbers<[2], [1], [1], [2], [0, 0, 0, 1, 1, 2], [0], [0]>} : vector<4x8x32xbf16>, vector<4x32x8xbf16>, vector<4x8x8xf32> -> vector<4x8x8xf32>
    "tpu.trace_stop"() : () -> ()
    %117 = vector.broadcast %96 : vector<4x1x8xf32> to vector<4x8x8xf32>
    %118 = arith.addf %116, %117 : vector<4x8x8xf32>
    %119 = arith.truncf %106 : vector<4x8x8xf32> to vector<4x8x8xbf16>
    %120 = arith.truncf %112 : vector<4x8x8xf32> to vector<4x8x8xbf16>
    "tpu.trace_start"() <{level = 10 : i32, message = "hqd,hkd->hqk"}> : () -> ()
    %cst_83 = arith.constant dense<0.000000e+00> : vector<4x8x8xf32>
    %121 = tpu.matmul %119, %120, %cst_83 {dimension_numbers = #tpu.dot_dimension_numbers<[2], [2], [1], [1], [0, 0, 0, 1, 1, 1], [0], [0]>} : vector<4x8x8xbf16>, vector<4x8x8xbf16>, vector<4x8x8xf32> -> vector<4x8x8xf32>
    %cst_84 = arith.constant 0.000000e+00 : f32
    "tpu.trace_stop"() : () -> ()
    %122 = vector.broadcast %cst_84 : f32 to vector<1x8xf32>
    %123 = arith.cmpf ogt, %7, %122 : vector<1x8xf32>
    %cst_85 = arith.constant -1.000000e+10 : f32
    %124 = vector.shape_cast %123 : vector<1x8xi1> to vector<1x1x8xi1>
    %125 = vector.broadcast %124 : vector<1x1x8xi1> to vector<4x8x8xi1>
    %126 = vector.broadcast %cst_85 : f32 to vector<4x8x8xf32>
    %127 = arith.select %125, %121, %126 : vector<4x8x8xi1>, vector<4x8x8xf32>
    %cst_86 = arith.constant dense<0xFF800000> : vector<4x8xf32>
    %128 = vector.multi_reduction <maximumf>, %127, %cst_86 [2] : vector<4x8x8xf32> to vector<4x8xf32>
    %129 = vector.shape_cast %128 : vector<4x8xf32> to vector<4x8x1xf32>
    %130 = vector.broadcast %129 : vector<4x8x1xf32> to vector<4x8x8xf32>
    %131 = arith.subf %127, %130 : vector<4x8x8xf32>
    %132 = math.exp %131 : vector<4x8x8xf32>
    %cst_87 = arith.constant dense<0.000000e+00> : vector<4x8xf32>
    %133 = vector.multi_reduction <add>, %132, %cst_87 [2] : vector<4x8x8xf32> to vector<4x8xf32>
    %134 = vector.shape_cast %133 : vector<4x8xf32> to vector<4x8x1xf32>
    %135 = tpu.reciprocal %134 {approx = true} : vector<4x8x1xf32> -> vector<4x8x1xf32>
    %136 = vector.broadcast %135 : vector<4x8x1xf32> to vector<4x8x8xf32>
    %137 = arith.mulf %132, %136 : vector<4x8x8xf32>
    %138 = arith.truncf %137 : vector<4x8x8xf32> to vector<4x8x8xbf16>
    %139 = arith.truncf %118 : vector<4x8x8xf32> to vector<4x8x8xbf16>
    "tpu.trace_start"() <{level = 10 : i32, message = "hqk,hkd->hqd"}> : () -> ()
    %cst_88 = arith.constant dense<0.000000e+00> : vector<4x8x8xf32>
    %140 = tpu.matmul %138, %139, %cst_88 {dimension_numbers = #tpu.dot_dimension_numbers<[2], [1], [1], [2], [0, 0, 0, 1, 1, 2], [0], [0]>} : vector<4x8x8xbf16>, vector<4x8x8xbf16>, vector<4x8x8xf32> -> vector<4x8x8xf32>
    "tpu.trace_stop"() : () -> ()
    %141 = arith.truncf %140 : vector<4x8x8xf32> to vector<4x8x8xbf16>
    "tpu.trace_start"() <{level = 10 : i32, message = "hqd,hde->hqe"}> : () -> ()
    %cst_89 = arith.constant dense<0.000000e+00> : vector<4x8x32xf32>
    %142 = tpu.matmul %141, %97, %cst_89 {dimension_numbers = #tpu.dot_dimension_numbers<[2], [1], [1], [2], [0, 0, 0, 1, 1, 2], [0], [0]>} : vector<4x8x8xbf16>, vector<4x8x32xbf16>, vector<4x8x32xf32> -> vector<4x8x32xf32>
    "tpu.trace_stop"() : () -> ()
    %cst_90 = arith.constant dense<0.000000e+00> : vector<8x32xf32>
    %143 = vector.multi_reduction <add>, %142, %cst_90 [0] : vector<4x8x32xf32> to vector<8x32xf32>
    %144 = vector.broadcast %98 : vector<1x32xf32> to vector<8x32xf32>
    %145 = arith.addf %143, %144 : vector<8x32xf32>
    %146 = arith.addf %90, %145 : vector<8x32xf32>
    %cst_91 = arith.constant dense<0.000000e+00> : vector<8xf32>
    %147 = vector.multi_reduction <add>, %146, %cst_91 [1] : vector<8x32xf32> to vector<8xf32>
    %148 = vector.shape_cast %147 : vector<8xf32> to vector<8x1xf32>
    %cst_92 = arith.constant 3.200000e+01 : f32
    %149 = vector.broadcast %cst_92 : f32 to vector<8x1xf32>
    %150 = arith.divf %148, %149 : vector<8x1xf32>
    %151 = vector.broadcast %150 : vector<8x1xf32> to vector<8x32xf32>
    %152 = arith.subf %146, %151 : vector<8x32xf32>
    %153 = arith.mulf %152, %152 : vector<8x32xf32>
    %cst_93 = arith.constant dense<0.000000e+00> : vector<8xf32>
    %154 = vector.multi_reduction <add>, %153, %cst_93 [1] : vector<8x32xf32> to vector<8xf32>
    %155 = vector.shape_cast %154 : vector<8xf32> to vector<8x1xf32>
    %cst_94 = arith.constant 3.200000e+01 : f32
    %156 = vector.broadcast %cst_94 : f32 to vector<8x1xf32>
    %157 = arith.divf %155, %156 : vector<8x1xf32>
    %158 = vector.broadcast %150 : vector<8x1xf32> to vector<8x32xf32>
    %159 = arith.subf %146, %158 : vector<8x32xf32>
    %cst_95 = arith.constant 9.99999974E-6 : f32
    %160 = vector.broadcast %cst_95 : f32 to vector<8x1xf32>
    %161 = arith.addf %157, %160 : vector<8x1xf32>
    %162 = math.rsqrt %161 : vector<8x1xf32>
    %163 = vector.broadcast %162 : vector<8x1xf32> to vector<8x32xf32>
    %164 = arith.mulf %159, %163 : vector<8x32xf32>
    %165 = vector.broadcast %99 : vector<1x32xf32> to vector<8x32xf32>
    %166 = arith.mulf %164, %165 : vector<8x32xf32>
    %167 = vector.broadcast %100 : vector<1x32xf32> to vector<8x32xf32>
    %168 = arith.addf %166, %167 : vector<8x32xf32>
    %c0_96 = arith.constant 0 : index
    %c0_97 = arith.constant 0 : index
    %169 = vector.load %arg25[%c0_96, %c0_97] : memref<32x64xbf16, #tpu.memory_space<vmem>>, vector<32x64xbf16>
    %c0_98 = arith.constant 0 : index
    %c0_99 = arith.constant 0 : index
    %170 = vector.load %arg26[%c0_98, %c0_99] : memref<1x64xf32, #tpu.memory_space<vmem>>, vector<1x64xf32>
    %c0_100 = arith.constant 0 : index
    %c0_101 = arith.constant 0 : index
    %171 = vector.load %arg27[%c0_100, %c0_101] : memref<64x32xbf16, #tpu.memory_space<vmem>>, vector<64x32xbf16>
    %c0_102 = arith.constant 0 : index
    %c0_103 = arith.constant 0 : index
    %172 = vector.load %arg28[%c0_102, %c0_103] : memref<1x32xf32, #tpu.memory_space<vmem>>, vector<1x32xf32>
    %c0_104 = arith.constant 0 : index
    %c0_105 = arith.constant 0 : index
    %173 = vector.load %arg29[%c0_104, %c0_105] : memref<1x32xf32, #tpu.memory_space<vmem>>, vector<1x32xf32>
    %c0_106 = arith.constant 0 : index
    %c0_107 = arith.constant 0 : index
    %174 = vector.load %arg30[%c0_106, %c0_107] : memref<1x32xf32, #tpu.memory_space<vmem>>, vector<1x32xf32>
    %175 = arith.truncf %168 : vector<8x32xf32> to vector<8x32xbf16>
    %cst_108 = arith.constant dense<0.000000e+00> : vector<8x64xf32>
    %176 = tpu.matmul %175, %169, %cst_108 {dimension_numbers = #tpu.dot_dimension_numbers<[1], [0], [0], [1], [0, 0, 1, 1], [], []>} : vector<8x32xbf16>, vector<32x64xbf16>, vector<8x64xf32> -> vector<8x64xf32>
    %177 = vector.broadcast %170 : vector<1x64xf32> to vector<8x64xf32>
    %178 = arith.addf %176, %177 : vector<8x64xf32>
    %cst_109 = arith.constant 0.000000e+00 : f32
    %179 = vector.broadcast %cst_109 : f32 to vector<8x64xf32>
    %180 = arith.maximumf %178, %179 : vector<8x64xf32>
    %181 = arith.truncf %180 : vector<8x64xf32> to vector<8x64xbf16>
    %cst_110 = arith.constant dense<0.000000e+00> : vector<8x32xf32>
    %182 = tpu.matmul %181, %171, %cst_110 {dimension_numbers = #tpu.dot_dimension_numbers<[1], [0], [0], [1], [0, 0, 1, 1], [], []>} : vector<8x64xbf16>, vector<64x32xbf16>, vector<8x32xf32> -> vector<8x32xf32>
    %183 = vector.broadcast %172 : vector<1x32xf32> to vector<8x32xf32>
    %184 = arith.addf %182, %183 : vector<8x32xf32>
    %185 = arith.addf %168, %184 : vector<8x32xf32>
    %cst_111 = arith.constant dense<0.000000e+00> : vector<8xf32>
    %186 = vector.multi_reduction <add>, %185, %cst_111 [1] : vector<8x32xf32> to vector<8xf32>
    %187 = vector.shape_cast %186 : vector<8xf32> to vector<8x1xf32>
    %cst_112 = arith.constant 3.200000e+01 : f32
    %188 = vector.broadcast %cst_112 : f32 to vector<8x1xf32>
    %189 = arith.divf %187, %188 : vector<8x1xf32>
    %190 = vector.broadcast %189 : vector<8x1xf32> to vector<8x32xf32>
    %191 = arith.subf %185, %190 : vector<8x32xf32>
    %192 = arith.mulf %191, %191 : vector<8x32xf32>
    %cst_113 = arith.constant dense<0.000000e+00> : vector<8xf32>
    %193 = vector.multi_reduction <add>, %192, %cst_113 [1] : vector<8x32xf32> to vector<8xf32>
    %194 = vector.shape_cast %193 : vector<8xf32> to vector<8x1xf32>
    %cst_114 = arith.constant 3.200000e+01 : f32
    %195 = vector.broadcast %cst_114 : f32 to vector<8x1xf32>
    %196 = arith.divf %194, %195 : vector<8x1xf32>
    %197 = vector.broadcast %189 : vector<8x1xf32> to vector<8x32xf32>
    %198 = arith.subf %185, %197 : vector<8x32xf32>
    %cst_115 = arith.constant 9.99999974E-6 : f32
    %199 = vector.broadcast %cst_115 : f32 to vector<8x1xf32>
    %200 = arith.addf %196, %199 : vector<8x1xf32>
    %201 = math.rsqrt %200 : vector<8x1xf32>
    %202 = vector.broadcast %201 : vector<8x1xf32> to vector<8x32xf32>
    %203 = arith.mulf %198, %202 : vector<8x32xf32>
    %204 = vector.broadcast %173 : vector<1x32xf32> to vector<8x32xf32>
    %205 = arith.mulf %203, %204 : vector<8x32xf32>
    %206 = vector.broadcast %174 : vector<1x32xf32> to vector<8x32xf32>
    %207 = arith.addf %205, %206 : vector<8x32xf32>
    %c0_116 = arith.constant 0 : index
    %c0_117 = arith.constant 0 : index
    %c0_118 = arith.constant 0 : index
    %208 = vector.load %arg31[%c0_116, %c0_117, %c0_118] : memref<1x8x32xf32, #tpu.memory_space<vmem>>, vector<1x8x32xf32>
    %209 = vector.shape_cast %208 : vector<1x8x32xf32> to vector<8x32xf32>
    %210 = vector.shape_cast %207 : vector<8x32xf32> to vector<1x8x32xf32>
    tpu.vector_store %arg31[%c0_116, %c0_117, %c0_118], %210 {strides = array<i32>} : memref<1x8x32xf32, #tpu.memory_space<vmem>>, vector<1x8x32xf32>,
    return
  }
  func.func @transform_0(%arg0: i32) -> (i32, i32, i32) {
    %c0_i32 = arith.constant 0 : i32
    %c0_i32_0 = arith.constant 0 : i32
    %c0_i32_1 = arith.constant 0 : i32
    return %arg0, %c0_i32, %c0_i32_0 : i32, i32, i32
  }
  func.func @transform_1(%arg0: i32) -> (i32, i32, i32) {
    %c0_i32 = arith.constant 0 : i32
    %c0_i32_0 = arith.constant 0 : i32
    %c0_i32_1 = arith.constant 0 : i32
    return %arg0, %c0_i32, %c0_i32_0 : i32, i32, i32
  }
  func.func @transform_2(%arg0: i32) -> (i32, i32, i32) {
    %c0_i32 = arith.constant 0 : i32
    %c0_i32_0 = arith.constant 0 : i32
    %c0_i32_1 = arith.constant 0 : i32
    return %arg0, %c0_i32, %c0_i32_0 : i32, i32, i32
  }
  func.func @transform_3(%arg0: i32) -> (i32, i32, i32) {
    %c0_i32 = arith.constant 0 : i32
    %c0_i32_0 = arith.constant 0 : i32
    %c0_i32_1 = arith.constant 0 : i32
    return %arg0, %c0_i32, %c0_i32_0 : i32, i32, i32
  }
  func.func @transform_4(%arg0: i32) -> (i32, i32, i32) {
    %c0_i32 = arith.constant 0 : i32
    %c0_i32_0 = arith.constant 0 : i32
    %c0_i32_1 = arith.constant 0 : i32
    %c0_i32_2 = arith.constant 0 : i32
    return %c0_i32, %c0_i32_0, %c0_i32_1 : i32, i32, i32
  }
  func.func @transform_5(%arg0: i32) -> (i32, i32, i32) {
    %c0_i32 = arith.constant 0 : i32
    %c0_i32_0 = arith.constant 0 : i32
    %c0_i32_1 = arith.constant 0 : i32
    %c0_i32_2 = arith.constant 0 : i32
    return %c0_i32, %c0_i32_0, %c0_i32_1 : i32, i32, i32
  }
  func.func @transform_6(%arg0: i32) -> (i32, i32, i32) {
    %c0_i32 = arith.constant 0 : i32
    %c0_i32_0 = arith.constant 0 : i32
    %c0_i32_1 = arith.constant 0 : i32
    %c0_i32_2 = arith.constant 0 : i32
    return %c0_i32, %c0_i32_0, %c0_i32_1 : i32, i32, i32
  }
  func.func @transform_7(%arg0: i32) -> (i32, i32, i32) {
    %c0_i32 = arith.constant 0 : i32
    %c0_i32_0 = arith.constant 0 : i32
    %c0_i32_1 = arith.constant 0 : i32
    %c0_i32_2 = arith.constant 0 : i32
    return %c0_i32, %c0_i32_0, %c0_i32_1 : i32, i32, i32
  }
  func.func @transform_8(%arg0: i32) -> (i32, i32, i32) {
    %c0_i32 = arith.constant 0 : i32
    %c0_i32_0 = arith.constant 0 : i32
    %c0_i32_1 = arith.constant 0 : i32
    %c0_i32_2 = arith.constant 0 : i32
    return %c0_i32, %c0_i32_0, %c0_i32_1 : i32, i32, i32
  }
  func.func @transform_9(%arg0: i32) -> (i32, i32, i32) {
    %c0_i32 = arith.constant 0 : i32
    %c0_i32_0 = arith.constant 0 : i32
    %c0_i32_1 = arith.constant 0 : i32
    %c0_i32_2 = arith.constant 0 : i32
    return %c0_i32, %c0_i32_0, %c0_i32_1 : i32, i32, i32
  }
  func.func @transform_10(%arg0: i32) -> (i32, i32, i32) {
    %c0_i32 = arith.constant 0 : i32
    %c0_i32_0 = arith.constant 0 : i32
    %c0_i32_1 = arith.constant 0 : i32
    %c0_i32_2 = arith.constant 0 : i32
    return %c0_i32, %c0_i32_0, %c0_i32_1 : i32, i32, i32
  }
  func.func @transform_11(%arg0: i32) -> (i32, i32) {
    %c0_i32 = arith.constant 0 : i32
    %c0_i32_0 = arith.constant 0 : i32
    %c0_i32_1 = arith.constant 0 : i32
    return %c0_i32, %c0_i32_0 : i32, i32
  }
  func.func @transform_12(%arg0: i32) -> (i32, i32) {
    %c0_i32 = arith.constant 0 : i32
    %c0_i32_0 = arith.constant 0 : i32
    %c0_i32_1 = arith.constant 0 : i32
    return %c0_i32, %c0_i32_0 : i32, i32
  }
  func.func @transform_13(%arg0: i32) -> (i32, i32) {
    %c0_i32 = arith.constant 0 : i32
    %c0_i32_0 = arith.constant 0 : i32
    %c0_i32_1 = arith.constant 0 : i32
    return %c0_i32, %c0_i32_0 : i32, i32
  }
  func.func @transform_14(%arg0: i32) -> (i32, i32, i32) {
    %c0_i32 = arith.constant 0 : i32
    %c0_i32_0 = arith.constant 0 : i32
    %c0_i32_1 = arith.constant 0 : i32
    %c0_i32_2 = arith.constant 0 : i32
    return %c0_i32, %c0_i32_0, %c0_i32_1 : i32, i32, i32
  }
  func.func @transform_15(%arg0: i32) -> (i32, i32, i32) {
    %c0_i32 = arith.constant 0 : i32
    %c0_i32_0 = arith.constant 0 : i32
    %c0_i32_1 = arith.constant 0 : i32
    %c0_i32_2 = arith.constant 0 : i32
    return %c0_i32, %c0_i32_0, %c0_i32_1 : i32, i32, i32
  }
  func.func @transform_16(%arg0: i32) -> (i32, i32, i32) {
    %c0_i32 = arith.constant 0 : i32
    %c0_i32_0 = arith.constant 0 : i32
    %c0_i32_1 = arith.constant 0 : i32
    %c0_i32_2 = arith.constant 0 : i32
    return %c0_i32, %c0_i32_0, %c0_i32_1 : i32, i32, i32
  }
  func.func @transform_17(%arg0: i32) -> (i32, i32, i32) {
    %c0_i32 = arith.constant 0 : i32
    %c0_i32_0 = arith.constant 0 : i32
    %c0_i32_1 = arith.constant 0 : i32
    %c0_i32_2 = arith.constant 0 : i32
    return %c0_i32, %c0_i32_0, %c0_i32_1 : i32, i32, i32
  }
  func.func @transform_18(%arg0: i32) -> (i32, i32, i32) {
    %c0_i32 = arith.constant 0 : i32
    %c0_i32_0 = arith.constant 0 : i32
    %c0_i32_1 = arith.constant 0 : i32
    %c0_i32_2 = arith.constant 0 : i32
    return %c0_i32, %c0_i32_0, %c0_i32_1 : i32, i32, i32
  }
  func.func @transform_19(%arg0: i32) -> (i32, i32, i32) {
    %c0_i32 = arith.constant 0 : i32
    %c0_i32_0 = arith.constant 0 : i32
    %c0_i32_1 = arith.constant 0 : i32
    %c0_i32_2 = arith.constant 0 : i32
    return %c0_i32, %c0_i32_0, %c0_i32_1 : i32, i32, i32
  }
  func.func @transform_20(%arg0: i32) -> (i32, i32, i32) {
    %c0_i32 = arith.constant 0 : i32
    %c0_i32_0 = arith.constant 0 : i32
    %c0_i32_1 = arith.constant 0 : i32
    %c0_i32_2 = arith.constant 0 : i32
    return %c0_i32, %c0_i32_0, %c0_i32_1 : i32, i32, i32
  }
  func.func @transform_21(%arg0: i32) -> (i32, i32) {
    %c0_i32 = arith.constant 0 : i32
    %c0_i32_0 = arith.constant 0 : i32
    %c0_i32_1 = arith.constant 0 : i32
    return %c0_i32, %c0_i32_0 : i32, i32
  }
  func.func @transform_22(%arg0: i32) -> (i32, i32) {
    %c0_i32 = arith.constant 0 : i32
    %c0_i32_0 = arith.constant 0 : i32
    %c0_i32_1 = arith.constant 0 : i32
    return %c0_i32, %c0_i32_0 : i32, i32
  }
  func.func @transform_23(%arg0: i32) -> (i32, i32) {
    %c0_i32 = arith.constant 0 : i32
    %c0_i32_0 = arith.constant 0 : i32
    %c0_i32_1 = arith.constant 0 : i32
    return %c0_i32, %c0_i32_0 : i32, i32
  }
  func.func @transform_24(%arg0: i32) -> (i32, i32) {
    %c0_i32 = arith.constant 0 : i32
    %c0_i32_0 = arith.constant 0 : i32
    %c0_i32_1 = arith.constant 0 : i32
    return %c0_i32, %c0_i32_0 : i32, i32
  }
  func.func @transform_25(%arg0: i32) -> (i32, i32) {
    %c0_i32 = arith.constant 0 : i32
    %c0_i32_0 = arith.constant 0 : i32
    %c0_i32_1 = arith.constant 0 : i32
    return %c0_i32, %c0_i32_0 : i32, i32
  }
  func.func @transform_26(%arg0: i32) -> (i32, i32) {
    %c0_i32 = arith.constant 0 : i32
    %c0_i32_0 = arith.constant 0 : i32
    %c0_i32_1 = arith.constant 0 : i32
    return %c0_i32, %c0_i32_0 : i32, i32
  }
  func.func @transform_27(%arg0: i32) -> (i32, i32) {
    %c0_i32 = arith.constant 0 : i32
    %c0_i32_0 = arith.constant 0 : i32
    %c0_i32_1 = arith.constant 0 : i32
    return %c0_i32, %c0_i32_0 : i32, i32
  }
  func.func @transform_28(%arg0: i32) -> (i32, i32) {
    %c0_i32 = arith.constant 0 : i32
    %c0_i32_0 = arith.constant 0 : i32
    %c0_i32_1 = arith.constant 0 : i32
    return %c0_i32, %c0_i32_0 : i32, i32
  }
  func.func @transform_29(%arg0: i32) -> (i32, i32) {
    %c0_i32 = arith.constant 0 : i32
    %c0_i32_0 = arith.constant 0 : i32
    %c0_i32_1 = arith.constant 0 : i32
    return %c0_i32, %c0_i32_0 : i32, i32
  }
  func.func @transform_30(%arg0: i32) -> (i32, i32, i32) {
    %c0_i32 = arith.constant 0 : i32
    %c0_i32_0 = arith.constant 0 : i32
    %c0_i32_1 = arith.constant 0 : i32
    return %arg0, %c0_i32, %c0_i32_0 : i32, i32, i32
  }
}

module attributes {stable_mosaic.version = 11 : i64} {
  func.func @_enc_layer_kernel(%arg0: i32, %arg1: memref<1x8x32xf32, #tpu.memory_space<vmem>>, %arg2: memref<1x1x8xf32, #tpu.memory_space<vmem>>, %arg3: memref<4x32x8xbf16, #tpu.memory_space<vmem>>, %arg4: memref<4x1x8xf32, #tpu.memory_space<vmem>>, %arg5: memref<4x32x8xbf16, #tpu.memory_space<vmem>>, %arg6: memref<4x1x8xf32, #tpu.memory_space<vmem>>, %arg7: memref<4x32x8xbf16, #tpu.memory_space<vmem>>, %arg8: memref<4x1x8xf32, #tpu.memory_space<vmem>>, %arg9: memref<4x8x32xbf16, #tpu.memory_space<vmem>>, %arg10: memref<1x32xf32, #tpu.memory_space<vmem>>, %arg11: memref<1x32xf32, #tpu.memory_space<vmem>>, %arg12: memref<1x32xf32, #tpu.memory_space<vmem>>, %arg13: memref<32x64xbf16, #tpu.memory_space<vmem>>, %arg14: memref<1x64xf32, #tpu.memory_space<vmem>>, %arg15: memref<64x32xbf16, #tpu.memory_space<vmem>>, %arg16: memref<1x32xf32, #tpu.memory_space<vmem>>, %arg17: memref<1x32xf32, #tpu.memory_space<vmem>>, %arg18: memref<1x32xf32, #tpu.memory_space<vmem>>, %arg19: memref<1x8x32xf32, #tpu.memory_space<vmem>>) attributes {dimension_semantics = [#tpu.dimension_semantics<parallel>], iteration_bounds = array<i64: 2>, scalar_prefetch = 0 : i64, scratch_operands = 0 : i64, tpu.core_type = #tpu.core_type<tc>, window_params = [{transform_indices = @transform_0, window_bounds = array<i64: 1, 8, 32>}, {transform_indices = @transform_1, window_bounds = array<i64: 1, 1, 8>}, {pipeline_mode = #tpu.pipeline_mode<synchronous>, transform_indices = @transform_2, window_bounds = array<i64: 4, 32, 8>}, {pipeline_mode = #tpu.pipeline_mode<synchronous>, transform_indices = @transform_3, window_bounds = array<i64: 4, 1, 8>}, {pipeline_mode = #tpu.pipeline_mode<synchronous>, transform_indices = @transform_4, window_bounds = array<i64: 4, 32, 8>}, {pipeline_mode = #tpu.pipeline_mode<synchronous>, transform_indices = @transform_5, window_bounds = array<i64: 4, 1, 8>}, {pipeline_mode = #tpu.pipeline_mode<synchronous>, transform_indices = @transform_6, window_bounds = array<i64: 4, 32, 8>}, {pipeline_mode = #tpu.pipeline_mode<synchronous>, transform_indices = @transform_7, window_bounds = array<i64: 4, 1, 8>}, {pipeline_mode = #tpu.pipeline_mode<synchronous>, transform_indices = @transform_8, window_bounds = array<i64: 4, 8, 32>}, {pipeline_mode = #tpu.pipeline_mode<synchronous>, transform_indices = @transform_9, window_bounds = array<i64: 1, 32>}, {pipeline_mode = #tpu.pipeline_mode<synchronous>, transform_indices = @transform_10, window_bounds = array<i64: 1, 32>}, {pipeline_mode = #tpu.pipeline_mode<synchronous>, transform_indices = @transform_11, window_bounds = array<i64: 1, 32>}, {pipeline_mode = #tpu.pipeline_mode<synchronous>, transform_indices = @transform_12, window_bounds = array<i64: 32, 64>}, {pipeline_mode = #tpu.pipeline_mode<synchronous>, transform_indices = @transform_13, window_bounds = array<i64: 1, 64>}, {pipeline_mode = #tpu.pipeline_mode<synchronous>, transform_indices = @transform_14, window_bounds = array<i64: 64, 32>}, {pipeline_mode = #tpu.pipeline_mode<synchronous>, transform_indices = @transform_15, window_bounds = array<i64: 1, 32>}, {pipeline_mode = #tpu.pipeline_mode<synchronous>, transform_indices = @transform_16, window_bounds = array<i64: 1, 32>}, {pipeline_mode = #tpu.pipeline_mode<synchronous>, transform_indices = @transform_17, window_bounds = array<i64: 1, 32>}, {transform_indices = @transform_18, window_bounds = array<i64: 1, 8, 32>}]} {
    %c0 = arith.constant 0 : index
    %c0_0 = arith.constant 0 : index
    %c0_1 = arith.constant 0 : index
    %0 = vector.load %arg1[%c0, %c0_0, %c0_1] : memref<1x8x32xf32, #tpu.memory_space<vmem>>, vector<1x8x32xf32>
    %1 = vector.shape_cast %0 : vector<1x8x32xf32> to vector<8x32xf32>
    %c0_2 = arith.constant 0 : index
    %c0_3 = arith.constant 0 : index
    %c0_4 = arith.constant 0 : index
    %2 = vector.load %arg2[%c0_2, %c0_3, %c0_4] : memref<1x1x8xf32, #tpu.memory_space<vmem>>, vector<1x1x8xf32>
    %3 = vector.shape_cast %2 : vector<1x1x8xf32> to vector<1x8xf32>
    %c0_5 = arith.constant 0 : index
    %c0_6 = arith.constant 0 : index
    %c0_7 = arith.constant 0 : index
    %4 = vector.load %arg3[%c0_5, %c0_6, %c0_7] : memref<4x32x8xbf16, #tpu.memory_space<vmem>>, vector<4x32x8xbf16>
    %c0_8 = arith.constant 0 : index
    %c0_9 = arith.constant 0 : index
    %c0_10 = arith.constant 0 : index
    %5 = vector.load %arg4[%c0_8, %c0_9, %c0_10] : memref<4x1x8xf32, #tpu.memory_space<vmem>>, vector<4x1x8xf32>
    %c0_11 = arith.constant 0 : index
    %c0_12 = arith.constant 0 : index
    %c0_13 = arith.constant 0 : index
    %6 = vector.load %arg5[%c0_11, %c0_12, %c0_13] : memref<4x32x8xbf16, #tpu.memory_space<vmem>>, vector<4x32x8xbf16>
    %c0_14 = arith.constant 0 : index
    %c0_15 = arith.constant 0 : index
    %c0_16 = arith.constant 0 : index
    %7 = vector.load %arg6[%c0_14, %c0_15, %c0_16] : memref<4x1x8xf32, #tpu.memory_space<vmem>>, vector<4x1x8xf32>
    %c0_17 = arith.constant 0 : index
    %c0_18 = arith.constant 0 : index
    %c0_19 = arith.constant 0 : index
    %8 = vector.load %arg7[%c0_17, %c0_18, %c0_19] : memref<4x32x8xbf16, #tpu.memory_space<vmem>>, vector<4x32x8xbf16>
    %c0_20 = arith.constant 0 : index
    %c0_21 = arith.constant 0 : index
    %c0_22 = arith.constant 0 : index
    %9 = vector.load %arg8[%c0_20, %c0_21, %c0_22] : memref<4x1x8xf32, #tpu.memory_space<vmem>>, vector<4x1x8xf32>
    %c0_23 = arith.constant 0 : index
    %c0_24 = arith.constant 0 : index
    %c0_25 = arith.constant 0 : index
    %10 = vector.load %arg9[%c0_23, %c0_24, %c0_25] : memref<4x8x32xbf16, #tpu.memory_space<vmem>>, vector<4x8x32xbf16>
    %c0_26 = arith.constant 0 : index
    %c0_27 = arith.constant 0 : index
    %11 = vector.load %arg10[%c0_26, %c0_27] : memref<1x32xf32, #tpu.memory_space<vmem>>, vector<1x32xf32>
    %c0_28 = arith.constant 0 : index
    %c0_29 = arith.constant 0 : index
    %12 = vector.load %arg11[%c0_28, %c0_29] : memref<1x32xf32, #tpu.memory_space<vmem>>, vector<1x32xf32>
    %c0_30 = arith.constant 0 : index
    %c0_31 = arith.constant 0 : index
    %13 = vector.load %arg12[%c0_30, %c0_31] : memref<1x32xf32, #tpu.memory_space<vmem>>, vector<1x32xf32>
    %14 = arith.truncf %1 : vector<8x32xf32> to vector<8x32xbf16>
    %15 = vector.shape_cast %14 : vector<8x32xbf16> to vector<1x8x32xbf16>
    %16 = vector.broadcast %15 : vector<1x8x32xbf16> to vector<4x8x32xbf16>
    "tpu.trace_start"() <{level = 10 : i32, message = "hld,hde->hle"}> : () -> ()
    %cst = arith.constant dense<0.000000e+00> : vector<4x8x8xf32>
    %17 = tpu.matmul %16, %4, %cst {dimension_numbers = #tpu.dot_dimension_numbers<[2], [1], [1], [2], [0, 0, 0, 1, 1, 2], [0], [0]>} : vector<4x8x32xbf16>, vector<4x32x8xbf16>, vector<4x8x8xf32> -> vector<4x8x8xf32>
    "tpu.trace_stop"() : () -> ()
    %18 = vector.broadcast %5 : vector<4x1x8xf32> to vector<4x8x8xf32>
    %19 = arith.addf %17, %18 : vector<4x8x8xf32>
    %20 = arith.truncf %1 : vector<8x32xf32> to vector<8x32xbf16>
    %21 = vector.shape_cast %20 : vector<8x32xbf16> to vector<1x8x32xbf16>
    %22 = vector.broadcast %21 : vector<1x8x32xbf16> to vector<4x8x32xbf16>
    "tpu.trace_start"() <{level = 10 : i32, message = "hld,hde->hle"}> : () -> ()
    %cst_32 = arith.constant dense<0.000000e+00> : vector<4x8x8xf32>
    %23 = tpu.matmul %22, %6, %cst_32 {dimension_numbers = #tpu.dot_dimension_numbers<[2], [1], [1], [2], [0, 0, 0, 1, 1, 2], [0], [0]>} : vector<4x8x32xbf16>, vector<4x32x8xbf16>, vector<4x8x8xf32> -> vector<4x8x8xf32>
    "tpu.trace_stop"() : () -> ()
    %24 = vector.broadcast %7 : vector<4x1x8xf32> to vector<4x8x8xf32>
    %25 = arith.addf %23, %24 : vector<4x8x8xf32>
    %26 = arith.truncf %1 : vector<8x32xf32> to vector<8x32xbf16>
    %27 = vector.shape_cast %26 : vector<8x32xbf16> to vector<1x8x32xbf16>
    %28 = vector.broadcast %27 : vector<1x8x32xbf16> to vector<4x8x32xbf16>
    "tpu.trace_start"() <{level = 10 : i32, message = "hld,hde->hle"}> : () -> ()
    %cst_33 = arith.constant dense<0.000000e+00> : vector<4x8x8xf32>
    %29 = tpu.matmul %28, %8, %cst_33 {dimension_numbers = #tpu.dot_dimension_numbers<[2], [1], [1], [2], [0, 0, 0, 1, 1, 2], [0], [0]>} : vector<4x8x32xbf16>, vector<4x32x8xbf16>, vector<4x8x8xf32> -> vector<4x8x8xf32>
    "tpu.trace_stop"() : () -> ()
    %30 = vector.broadcast %9 : vector<4x1x8xf32> to vector<4x8x8xf32>
    %31 = arith.addf %29, %30 : vector<4x8x8xf32>
    %32 = arith.truncf %19 : vector<4x8x8xf32> to vector<4x8x8xbf16>
    %33 = arith.truncf %25 : vector<4x8x8xf32> to vector<4x8x8xbf16>
    "tpu.trace_start"() <{level = 10 : i32, message = "hqd,hkd->hqk"}> : () -> ()
    %cst_34 = arith.constant dense<0.000000e+00> : vector<4x8x8xf32>
    %34 = tpu.matmul %32, %33, %cst_34 {dimension_numbers = #tpu.dot_dimension_numbers<[2], [2], [1], [1], [0, 0, 0, 1, 1, 1], [0], [0]>} : vector<4x8x8xbf16>, vector<4x8x8xbf16>, vector<4x8x8xf32> -> vector<4x8x8xf32>
    %cst_35 = arith.constant 0.000000e+00 : f32
    "tpu.trace_stop"() : () -> ()
    %35 = vector.broadcast %cst_35 : f32 to vector<1x8xf32>
    %36 = arith.cmpf ogt, %3, %35 : vector<1x8xf32>
    %cst_36 = arith.constant -1.000000e+10 : f32
    %37 = vector.shape_cast %36 : vector<1x8xi1> to vector<1x1x8xi1>
    %38 = vector.broadcast %37 : vector<1x1x8xi1> to vector<4x8x8xi1>
    %39 = vector.broadcast %cst_36 : f32 to vector<4x8x8xf32>
    %40 = arith.select %38, %34, %39 : vector<4x8x8xi1>, vector<4x8x8xf32>
    %cst_37 = arith.constant dense<0xFF800000> : vector<4x8xf32>
    %41 = vector.multi_reduction <maximumf>, %40, %cst_37 [2] : vector<4x8x8xf32> to vector<4x8xf32>
    %42 = vector.shape_cast %41 : vector<4x8xf32> to vector<4x8x1xf32>
    %43 = vector.broadcast %42 : vector<4x8x1xf32> to vector<4x8x8xf32>
    %44 = arith.subf %40, %43 : vector<4x8x8xf32>
    %45 = math.exp %44 : vector<4x8x8xf32>
    %cst_38 = arith.constant dense<0.000000e+00> : vector<4x8xf32>
    %46 = vector.multi_reduction <add>, %45, %cst_38 [2] : vector<4x8x8xf32> to vector<4x8xf32>
    %47 = vector.shape_cast %46 : vector<4x8xf32> to vector<4x8x1xf32>
    %48 = tpu.reciprocal %47 {approx = true} : vector<4x8x1xf32> -> vector<4x8x1xf32>
    %49 = vector.broadcast %48 : vector<4x8x1xf32> to vector<4x8x8xf32>
    %50 = arith.mulf %45, %49 : vector<4x8x8xf32>
    %51 = arith.truncf %50 : vector<4x8x8xf32> to vector<4x8x8xbf16>
    %52 = arith.truncf %31 : vector<4x8x8xf32> to vector<4x8x8xbf16>
    "tpu.trace_start"() <{level = 10 : i32, message = "hqk,hkd->hqd"}> : () -> ()
    %cst_39 = arith.constant dense<0.000000e+00> : vector<4x8x8xf32>
    %53 = tpu.matmul %51, %52, %cst_39 {dimension_numbers = #tpu.dot_dimension_numbers<[2], [1], [1], [2], [0, 0, 0, 1, 1, 2], [0], [0]>} : vector<4x8x8xbf16>, vector<4x8x8xbf16>, vector<4x8x8xf32> -> vector<4x8x8xf32>
    "tpu.trace_stop"() : () -> ()
    %54 = arith.truncf %53 : vector<4x8x8xf32> to vector<4x8x8xbf16>
    "tpu.trace_start"() <{level = 10 : i32, message = "hqd,hde->hqe"}> : () -> ()
    %cst_40 = arith.constant dense<0.000000e+00> : vector<4x8x32xf32>
    %55 = tpu.matmul %54, %10, %cst_40 {dimension_numbers = #tpu.dot_dimension_numbers<[2], [1], [1], [2], [0, 0, 0, 1, 1, 2], [0], [0]>} : vector<4x8x8xbf16>, vector<4x8x32xbf16>, vector<4x8x32xf32> -> vector<4x8x32xf32>
    "tpu.trace_stop"() : () -> ()
    %cst_41 = arith.constant dense<0.000000e+00> : vector<8x32xf32>
    %56 = vector.multi_reduction <add>, %55, %cst_41 [0] : vector<4x8x32xf32> to vector<8x32xf32>
    %57 = vector.broadcast %11 : vector<1x32xf32> to vector<8x32xf32>
    %58 = arith.addf %56, %57 : vector<8x32xf32>
    %59 = arith.addf %1, %58 : vector<8x32xf32>
    %cst_42 = arith.constant dense<0.000000e+00> : vector<8xf32>
    %60 = vector.multi_reduction <add>, %59, %cst_42 [1] : vector<8x32xf32> to vector<8xf32>
    %61 = vector.shape_cast %60 : vector<8xf32> to vector<8x1xf32>
    %cst_43 = arith.constant 3.200000e+01 : f32
    %62 = vector.broadcast %cst_43 : f32 to vector<8x1xf32>
    %63 = arith.divf %61, %62 : vector<8x1xf32>
    %64 = vector.broadcast %63 : vector<8x1xf32> to vector<8x32xf32>
    %65 = arith.subf %59, %64 : vector<8x32xf32>
    %66 = arith.mulf %65, %65 : vector<8x32xf32>
    %cst_44 = arith.constant dense<0.000000e+00> : vector<8xf32>
    %67 = vector.multi_reduction <add>, %66, %cst_44 [1] : vector<8x32xf32> to vector<8xf32>
    %68 = vector.shape_cast %67 : vector<8xf32> to vector<8x1xf32>
    %cst_45 = arith.constant 3.200000e+01 : f32
    %69 = vector.broadcast %cst_45 : f32 to vector<8x1xf32>
    %70 = arith.divf %68, %69 : vector<8x1xf32>
    %71 = vector.broadcast %63 : vector<8x1xf32> to vector<8x32xf32>
    %72 = arith.subf %59, %71 : vector<8x32xf32>
    %cst_46 = arith.constant 9.99999974E-6 : f32
    %73 = vector.broadcast %cst_46 : f32 to vector<8x1xf32>
    %74 = arith.addf %70, %73 : vector<8x1xf32>
    %75 = math.rsqrt %74 : vector<8x1xf32>
    %76 = vector.broadcast %75 : vector<8x1xf32> to vector<8x32xf32>
    %77 = arith.mulf %72, %76 : vector<8x32xf32>
    %78 = vector.broadcast %12 : vector<1x32xf32> to vector<8x32xf32>
    %79 = arith.mulf %77, %78 : vector<8x32xf32>
    %80 = vector.broadcast %13 : vector<1x32xf32> to vector<8x32xf32>
    %81 = arith.addf %79, %80 : vector<8x32xf32>
    %c0_47 = arith.constant 0 : index
    %c0_48 = arith.constant 0 : index
    %82 = vector.load %arg13[%c0_47, %c0_48] : memref<32x64xbf16, #tpu.memory_space<vmem>>, vector<32x64xbf16>
    %c0_49 = arith.constant 0 : index
    %c0_50 = arith.constant 0 : index
    %83 = vector.load %arg14[%c0_49, %c0_50] : memref<1x64xf32, #tpu.memory_space<vmem>>, vector<1x64xf32>
    %c0_51 = arith.constant 0 : index
    %c0_52 = arith.constant 0 : index
    %84 = vector.load %arg15[%c0_51, %c0_52] : memref<64x32xbf16, #tpu.memory_space<vmem>>, vector<64x32xbf16>
    %c0_53 = arith.constant 0 : index
    %c0_54 = arith.constant 0 : index
    %85 = vector.load %arg16[%c0_53, %c0_54] : memref<1x32xf32, #tpu.memory_space<vmem>>, vector<1x32xf32>
    %c0_55 = arith.constant 0 : index
    %c0_56 = arith.constant 0 : index
    %86 = vector.load %arg17[%c0_55, %c0_56] : memref<1x32xf32, #tpu.memory_space<vmem>>, vector<1x32xf32>
    %c0_57 = arith.constant 0 : index
    %c0_58 = arith.constant 0 : index
    %87 = vector.load %arg18[%c0_57, %c0_58] : memref<1x32xf32, #tpu.memory_space<vmem>>, vector<1x32xf32>
    %88 = arith.truncf %81 : vector<8x32xf32> to vector<8x32xbf16>
    %cst_59 = arith.constant dense<0.000000e+00> : vector<8x64xf32>
    %89 = tpu.matmul %88, %82, %cst_59 {dimension_numbers = #tpu.dot_dimension_numbers<[1], [0], [0], [1], [0, 0, 1, 1], [], []>} : vector<8x32xbf16>, vector<32x64xbf16>, vector<8x64xf32> -> vector<8x64xf32>
    %90 = vector.broadcast %83 : vector<1x64xf32> to vector<8x64xf32>
    %91 = arith.addf %89, %90 : vector<8x64xf32>
    %cst_60 = arith.constant 0.000000e+00 : f32
    %92 = vector.broadcast %cst_60 : f32 to vector<8x64xf32>
    %93 = arith.maximumf %91, %92 : vector<8x64xf32>
    %94 = arith.truncf %93 : vector<8x64xf32> to vector<8x64xbf16>
    %cst_61 = arith.constant dense<0.000000e+00> : vector<8x32xf32>
    %95 = tpu.matmul %94, %84, %cst_61 {dimension_numbers = #tpu.dot_dimension_numbers<[1], [0], [0], [1], [0, 0, 1, 1], [], []>} : vector<8x64xbf16>, vector<64x32xbf16>, vector<8x32xf32> -> vector<8x32xf32>
    %96 = vector.broadcast %85 : vector<1x32xf32> to vector<8x32xf32>
    %97 = arith.addf %95, %96 : vector<8x32xf32>
    %98 = arith.addf %81, %97 : vector<8x32xf32>
    %cst_62 = arith.constant dense<0.000000e+00> : vector<8xf32>
    %99 = vector.multi_reduction <add>, %98, %cst_62 [1] : vector<8x32xf32> to vector<8xf32>
    %100 = vector.shape_cast %99 : vector<8xf32> to vector<8x1xf32>
    %cst_63 = arith.constant 3.200000e+01 : f32
    %101 = vector.broadcast %cst_63 : f32 to vector<8x1xf32>
    %102 = arith.divf %100, %101 : vector<8x1xf32>
    %103 = vector.broadcast %102 : vector<8x1xf32> to vector<8x32xf32>
    %104 = arith.subf %98, %103 : vector<8x32xf32>
    %105 = arith.mulf %104, %104 : vector<8x32xf32>
    %cst_64 = arith.constant dense<0.000000e+00> : vector<8xf32>
    %106 = vector.multi_reduction <add>, %105, %cst_64 [1] : vector<8x32xf32> to vector<8xf32>
    %107 = vector.shape_cast %106 : vector<8xf32> to vector<8x1xf32>
    %cst_65 = arith.constant 3.200000e+01 : f32
    %108 = vector.broadcast %cst_65 : f32 to vector<8x1xf32>
    %109 = arith.divf %107, %108 : vector<8x1xf32>
    %110 = vector.broadcast %102 : vector<8x1xf32> to vector<8x32xf32>
    %111 = arith.subf %98, %110 : vector<8x32xf32>
    %cst_66 = arith.constant 9.99999974E-6 : f32
    %112 = vector.broadcast %cst_66 : f32 to vector<8x1xf32>
    %113 = arith.addf %109, %112 : vector<8x1xf32>
    %114 = math.rsqrt %113 : vector<8x1xf32>
    %115 = vector.broadcast %114 : vector<8x1xf32> to vector<8x32xf32>
    %116 = arith.mulf %111, %115 : vector<8x32xf32>
    %117 = vector.broadcast %86 : vector<1x32xf32> to vector<8x32xf32>
    %118 = arith.mulf %116, %117 : vector<8x32xf32>
    %119 = vector.broadcast %87 : vector<1x32xf32> to vector<8x32xf32>
    %120 = arith.addf %118, %119 : vector<8x32xf32>
    %c0_67 = arith.constant 0 : index
    %c0_68 = arith.constant 0 : index
    %c0_69 = arith.constant 0 : index
    %121 = vector.load %arg19[%c0_67, %c0_68, %c0_69] : memref<1x8x32xf32, #tpu.memory_space<vmem>>, vector<1x8x32xf32>
    %122 = vector.shape_cast %121 : vector<1x8x32xf32> to vector<8x32xf32>
    %123 = vector.shape_cast %120 : vector<8x32xf32> to vector<1x8x32xf32>
    tpu.vector_store %arg19[%c0_67, %c0_68, %c0_69], %123 {strides = array<i32>} : memref<1x8x32xf32, #tpu.memory_space<vmem>>, vector<1x8x32xf32>,
    return
  }
  func.func @transform_0(%arg0: i32) -> (i32, i32, i32) {
    %c0_i32 = arith.constant 0 : i32
    %c0_i32_0 = arith.constant 0 : i32
    %c0_i32_1 = arith.constant 0 : i32
    return %arg0, %c0_i32, %c0_i32_0 : i32, i32, i32
  }
  func.func @transform_1(%arg0: i32) -> (i32, i32, i32) {
    %c0_i32 = arith.constant 0 : i32
    %c0_i32_0 = arith.constant 0 : i32
    %c0_i32_1 = arith.constant 0 : i32
    return %arg0, %c0_i32, %c0_i32_0 : i32, i32, i32
  }
  func.func @transform_2(%arg0: i32) -> (i32, i32, i32) {
    %c0_i32 = arith.constant 0 : i32
    %c0_i32_0 = arith.constant 0 : i32
    %c0_i32_1 = arith.constant 0 : i32
    %c0_i32_2 = arith.constant 0 : i32
    return %c0_i32, %c0_i32_0, %c0_i32_1 : i32, i32, i32
  }
  func.func @transform_3(%arg0: i32) -> (i32, i32, i32) {
    %c0_i32 = arith.constant 0 : i32
    %c0_i32_0 = arith.constant 0 : i32
    %c0_i32_1 = arith.constant 0 : i32
    %c0_i32_2 = arith.constant 0 : i32
    return %c0_i32, %c0_i32_0, %c0_i32_1 : i32, i32, i32
  }
  func.func @transform_4(%arg0: i32) -> (i32, i32, i32) {
    %c0_i32 = arith.constant 0 : i32
    %c0_i32_0 = arith.constant 0 : i32
    %c0_i32_1 = arith.constant 0 : i32
    %c0_i32_2 = arith.constant 0 : i32
    return %c0_i32, %c0_i32_0, %c0_i32_1 : i32, i32, i32
  }
  func.func @transform_5(%arg0: i32) -> (i32, i32, i32) {
    %c0_i32 = arith.constant 0 : i32
    %c0_i32_0 = arith.constant 0 : i32
    %c0_i32_1 = arith.constant 0 : i32
    %c0_i32_2 = arith.constant 0 : i32
    return %c0_i32, %c0_i32_0, %c0_i32_1 : i32, i32, i32
  }
  func.func @transform_6(%arg0: i32) -> (i32, i32, i32) {
    %c0_i32 = arith.constant 0 : i32
    %c0_i32_0 = arith.constant 0 : i32
    %c0_i32_1 = arith.constant 0 : i32
    %c0_i32_2 = arith.constant 0 : i32
    return %c0_i32, %c0_i32_0, %c0_i32_1 : i32, i32, i32
  }
  func.func @transform_7(%arg0: i32) -> (i32, i32, i32) {
    %c0_i32 = arith.constant 0 : i32
    %c0_i32_0 = arith.constant 0 : i32
    %c0_i32_1 = arith.constant 0 : i32
    %c0_i32_2 = arith.constant 0 : i32
    return %c0_i32, %c0_i32_0, %c0_i32_1 : i32, i32, i32
  }
  func.func @transform_8(%arg0: i32) -> (i32, i32, i32) {
    %c0_i32 = arith.constant 0 : i32
    %c0_i32_0 = arith.constant 0 : i32
    %c0_i32_1 = arith.constant 0 : i32
    %c0_i32_2 = arith.constant 0 : i32
    return %c0_i32, %c0_i32_0, %c0_i32_1 : i32, i32, i32
  }
  func.func @transform_9(%arg0: i32) -> (i32, i32) {
    %c0_i32 = arith.constant 0 : i32
    %c0_i32_0 = arith.constant 0 : i32
    %c0_i32_1 = arith.constant 0 : i32
    return %c0_i32, %c0_i32_0 : i32, i32
  }
  func.func @transform_10(%arg0: i32) -> (i32, i32) {
    %c0_i32 = arith.constant 0 : i32
    %c0_i32_0 = arith.constant 0 : i32
    %c0_i32_1 = arith.constant 0 : i32
    return %c0_i32, %c0_i32_0 : i32, i32
  }
  func.func @transform_11(%arg0: i32) -> (i32, i32) {
    %c0_i32 = arith.constant 0 : i32
    %c0_i32_0 = arith.constant 0 : i32
    %c0_i32_1 = arith.constant 0 : i32
    return %c0_i32, %c0_i32_0 : i32, i32
  }
  func.func @transform_12(%arg0: i32) -> (i32, i32) {
    %c0_i32 = arith.constant 0 : i32
    %c0_i32_0 = arith.constant 0 : i32
    %c0_i32_1 = arith.constant 0 : i32
    return %c0_i32, %c0_i32_0 : i32, i32
  }
  func.func @transform_13(%arg0: i32) -> (i32, i32) {
    %c0_i32 = arith.constant 0 : i32
    %c0_i32_0 = arith.constant 0 : i32
    %c0_i32_1 = arith.constant 0 : i32
    return %c0_i32, %c0_i32_0 : i32, i32
  }
  func.func @transform_14(%arg0: i32) -> (i32, i32) {
    %c0_i32 = arith.constant 0 : i32
    %c0_i32_0 = arith.constant 0 : i32
    %c0_i32_1 = arith.constant 0 : i32
    return %c0_i32, %c0_i32_0 : i32, i32
  }
  func.func @transform_15(%arg0: i32) -> (i32, i32) {
    %c0_i32 = arith.constant 0 : i32
    %c0_i32_0 = arith.constant 0 : i32
    %c0_i32_1 = arith.constant 0 : i32
    return %c0_i32, %c0_i32_0 : i32, i32
  }
  func.func @transform_16(%arg0: i32) -> (i32, i32) {
    %c0_i32 = arith.constant 0 : i32
    %c0_i32_0 = arith.constant 0 : i32
    %c0_i32_1 = arith.constant 0 : i32
    return %c0_i32, %c0_i32_0 : i32, i32
  }
  func.func @transform_17(%arg0: i32) -> (i32, i32) {
    %c0_i32 = arith.constant 0 : i32
    %c0_i32_0 = arith.constant 0 : i32
    %c0_i32_1 = arith.constant 0 : i32
    return %c0_i32, %c0_i32_0 : i32, i32
  }
  func.func @transform_18(%arg0: i32) -> (i32, i32, i32) {
    %c0_i32 = arith.constant 0 : i32
    %c0_i32_0 = arith.constant 0 : i32
    %c0_i32_1 = arith.constant 0 : i32
    return %arg0, %c0_i32, %c0_i32_0 : i32, i32, i32
  }
}

module attributes {stable_mosaic.version = 11 : i64} {
  func.func @_out_proj_kernel(%arg0: memref<16x32xf32, #tpu.memory_space<vmem>>, %arg1: memref<32x128xbf16, #tpu.memory_space<vmem>>, %arg2: memref<1x128xf32, #tpu.memory_space<vmem>>, %arg3: memref<16x128xf32, #tpu.memory_space<vmem>>) attributes {dimension_semantics = [], scalar_prefetch = 0 : i64, scratch_operands = 0 : i64, tpu.core_type = #tpu.core_type<tc>} {
    %c0 = arith.constant 0 : index
    %c0_0 = arith.constant 0 : index
    %0 = vector.load %arg0[%c0, %c0_0] : memref<16x32xf32, #tpu.memory_space<vmem>>, vector<16x32xf32>
    %1 = arith.truncf %0 : vector<16x32xf32> to vector<16x32xbf16>
    %c0_1 = arith.constant 0 : index
    %c0_2 = arith.constant 0 : index
    %2 = vector.load %arg1[%c0_1, %c0_2] : memref<32x128xbf16, #tpu.memory_space<vmem>>, vector<32x128xbf16>
    %cst = arith.constant dense<0.000000e+00> : vector<16x128xf32>
    %3 = tpu.matmul %1, %2, %cst {dimension_numbers = #tpu.dot_dimension_numbers<[1], [0], [0], [1], [0, 0, 1, 1], [], []>} : vector<16x32xbf16>, vector<32x128xbf16>, vector<16x128xf32> -> vector<16x128xf32>
    %c0_3 = arith.constant 0 : index
    %c0_4 = arith.constant 0 : index
    %4 = vector.load %arg2[%c0_3, %c0_4] : memref<1x128xf32, #tpu.memory_space<vmem>>, vector<1x128xf32>
    %5 = vector.broadcast %4 : vector<1x128xf32> to vector<16x128xf32>
    %6 = arith.addf %3, %5 : vector<16x128xf32>
    %c0_5 = arith.constant 0 : index
    %c0_6 = arith.constant 0 : index
    %7 = vector.load %arg3[%c0_5, %c0_6] : memref<16x128xf32, #tpu.memory_space<vmem>>, vector<16x128xf32>
    tpu.vector_store %arg3[%c0_5, %c0_6], %6 {strides = array<i32>} : memref<16x128xf32, #tpu.memory_space<vmem>>, vector<16x128xf32>,
    return
  }
}

module attributes {stable_mosaic.version = 11 : i64} {
  func.func @_dec_layer_kernel(%arg0: i32, %arg1: memref<1x8x32xf32, #tpu.memory_space<vmem>>, %arg2: memref<1x8x32xf32, #tpu.memory_space<vmem>>, %arg3: memref<1x1x8xf32, #tpu.memory_space<vmem>>, %arg4: memref<1x1x8xf32, #tpu.memory_space<vmem>>, %arg5: memref<4x32x8xbf16, #tpu.memory_space<vmem>>, %arg6: memref<4x1x8xf32, #tpu.memory_space<vmem>>, %arg7: memref<4x32x8xbf16, #tpu.memory_space<vmem>>, %arg8: memref<4x1x8xf32, #tpu.memory_space<vmem>>, %arg9: memref<4x32x8xbf16, #tpu.memory_space<vmem>>, %arg10: memref<4x1x8xf32, #tpu.memory_space<vmem>>, %arg11: memref<4x8x32xbf16, #tpu.memory_space<vmem>>, %arg12: memref<1x32xf32, #tpu.memory_space<vmem>>, %arg13: memref<1x32xf32, #tpu.memory_space<vmem>>, %arg14: memref<1x32xf32, #tpu.memory_space<vmem>>, %arg15: memref<4x32x8xbf16, #tpu.memory_space<vmem>>, %arg16: memref<4x1x8xf32, #tpu.memory_space<vmem>>, %arg17: memref<4x32x8xbf16, #tpu.memory_space<vmem>>, %arg18: memref<4x1x8xf32, #tpu.memory_space<vmem>>, %arg19: memref<4x32x8xbf16, #tpu.memory_space<vmem>>, %arg20: memref<4x1x8xf32, #tpu.memory_space<vmem>>, %arg21: memref<4x8x32xbf16, #tpu.memory_space<vmem>>, %arg22: memref<1x32xf32, #tpu.memory_space<vmem>>, %arg23: memref<1x32xf32, #tpu.memory_space<vmem>>, %arg24: memref<1x32xf32, #tpu.memory_space<vmem>>, %arg25: memref<32x64xbf16, #tpu.memory_space<vmem>>, %arg26: memref<1x64xf32, #tpu.memory_space<vmem>>, %arg27: memref<64x32xbf16, #tpu.memory_space<vmem>>, %arg28: memref<1x32xf32, #tpu.memory_space<vmem>>, %arg29: memref<1x32xf32, #tpu.memory_space<vmem>>, %arg30: memref<1x32xf32, #tpu.memory_space<vmem>>, %arg31: memref<1x8x32xf32, #tpu.memory_space<vmem>>, %arg32: memref<1x4x8x8xf32, #tpu.memory_space<vmem>>) attributes {dimension_semantics = [#tpu.dimension_semantics<parallel>], iteration_bounds = array<i64: 2>, scalar_prefetch = 0 : i64, scratch_operands = 0 : i64, tpu.core_type = #tpu.core_type<tc>, window_params = [{transform_indices = @transform_0, window_bounds = array<i64: 1, 8, 32>}, {transform_indices = @transform_1, window_bounds = array<i64: 1, 8, 32>}, {transform_indices = @transform_2, window_bounds = array<i64: 1, 1, 8>}, {transform_indices = @transform_3, window_bounds = array<i64: 1, 1, 8>}, {pipeline_mode = #tpu.pipeline_mode<synchronous>, transform_indices = @transform_4, window_bounds = array<i64: 4, 32, 8>}, {pipeline_mode = #tpu.pipeline_mode<synchronous>, transform_indices = @transform_5, window_bounds = array<i64: 4, 1, 8>}, {pipeline_mode = #tpu.pipeline_mode<synchronous>, transform_indices = @transform_6, window_bounds = array<i64: 4, 32, 8>}, {pipeline_mode = #tpu.pipeline_mode<synchronous>, transform_indices = @transform_7, window_bounds = array<i64: 4, 1, 8>}, {pipeline_mode = #tpu.pipeline_mode<synchronous>, transform_indices = @transform_8, window_bounds = array<i64: 4, 32, 8>}, {pipeline_mode = #tpu.pipeline_mode<synchronous>, transform_indices = @transform_9, window_bounds = array<i64: 4, 1, 8>}, {pipeline_mode = #tpu.pipeline_mode<synchronous>, transform_indices = @transform_10, window_bounds = array<i64: 4, 8, 32>}, {pipeline_mode = #tpu.pipeline_mode<synchronous>, transform_indices = @transform_11, window_bounds = array<i64: 1, 32>}, {pipeline_mode = #tpu.pipeline_mode<synchronous>, transform_indices = @transform_12, window_bounds = array<i64: 1, 32>}, {pipeline_mode = #tpu.pipeline_mode<synchronous>, transform_indices = @transform_13, window_bounds = array<i64: 1, 32>}, {pipeline_mode = #tpu.pipeline_mode<synchronous>, transform_indices = @transform_14, window_bounds = array<i64: 4, 32, 8>}, {pipeline_mode = #tpu.pipeline_mode<synchronous>, transform_indices = @transform_15, window_bounds = array<i64: 4, 1, 8>}, {pipeline_mode = #tpu.pipeline_mode<synchronous>, transform_indices = @transform_16, window_bounds = array<i64: 4, 32, 8>}, {pipeline_mode = #tpu.pipeline_mode<synchronous>, transform_indices = @transform_17, window_bounds = array<i64: 4, 1, 8>}, {pipeline_mode = #tpu.pipeline_mode<synchronous>, transform_indices = @transform_18, window_bounds = array<i64: 4, 32, 8>}, {pipeline_mode = #tpu.pipeline_mode<synchronous>, transform_indices = @transform_19, window_bounds = array<i64: 4, 1, 8>}, {pipeline_mode = #tpu.pipeline_mode<synchronous>, transform_indices = @transform_20, window_bounds = array<i64: 4, 8, 32>}, {pipeline_mode = #tpu.pipeline_mode<synchronous>, transform_indices = @transform_21, window_bounds = array<i64: 1, 32>}, {pipeline_mode = #tpu.pipeline_mode<synchronous>, transform_indices = @transform_22, window_bounds = array<i64: 1, 32>}, {pipeline_mode = #tpu.pipeline_mode<synchronous>, transform_indices = @transform_23, window_bounds = array<i64: 1, 32>}, {pipeline_mode = #tpu.pipeline_mode<synchronous>, transform_indices = @transform_24, window_bounds = array<i64: 32, 64>}, {pipeline_mode = #tpu.pipeline_mode<synchronous>, transform_indices = @transform_25, window_bounds = array<i64: 1, 64>}, {pipeline_mode = #tpu.pipeline_mode<synchronous>, transform_indices = @transform_26, window_bounds = array<i64: 64, 32>}, {pipeline_mode = #tpu.pipeline_mode<synchronous>, transform_indices = @transform_27, window_bounds = array<i64: 1, 32>}, {pipeline_mode = #tpu.pipeline_mode<synchronous>, transform_indices = @transform_28, window_bounds = array<i64: 1, 32>}, {pipeline_mode = #tpu.pipeline_mode<synchronous>, transform_indices = @transform_29, window_bounds = array<i64: 1, 32>}, {transform_indices = @transform_30, window_bounds = array<i64: 1, 8, 32>}, {transform_indices = @transform_31, window_bounds = array<i64: 1, 4, 8, 8>}]} {
    %c0 = arith.constant 0 : index
    %c0_0 = arith.constant 0 : index
    %c0_1 = arith.constant 0 : index
    %0 = vector.load %arg1[%c0, %c0_0, %c0_1] : memref<1x8x32xf32, #tpu.memory_space<vmem>>, vector<1x8x32xf32>
    %1 = vector.shape_cast %0 : vector<1x8x32xf32> to vector<8x32xf32>
    %c0_2 = arith.constant 0 : index
    %c0_3 = arith.constant 0 : index
    %c0_4 = arith.constant 0 : index
    %2 = vector.load %arg2[%c0_2, %c0_3, %c0_4] : memref<1x8x32xf32, #tpu.memory_space<vmem>>, vector<1x8x32xf32>
    %3 = vector.shape_cast %2 : vector<1x8x32xf32> to vector<8x32xf32>
    %c0_5 = arith.constant 0 : index
    %c0_6 = arith.constant 0 : index
    %c0_7 = arith.constant 0 : index
    %4 = vector.load %arg3[%c0_5, %c0_6, %c0_7] : memref<1x1x8xf32, #tpu.memory_space<vmem>>, vector<1x1x8xf32>
    %5 = vector.shape_cast %4 : vector<1x1x8xf32> to vector<1x8xf32>
    %c0_8 = arith.constant 0 : index
    %c0_9 = arith.constant 0 : index
    %c0_10 = arith.constant 0 : index
    %6 = vector.load %arg4[%c0_8, %c0_9, %c0_10] : memref<1x1x8xf32, #tpu.memory_space<vmem>>, vector<1x1x8xf32>
    %7 = vector.shape_cast %6 : vector<1x1x8xf32> to vector<1x8xf32>
    %c0_11 = arith.constant 0 : index
    %c0_12 = arith.constant 0 : index
    %c0_13 = arith.constant 0 : index
    %8 = vector.load %arg5[%c0_11, %c0_12, %c0_13] : memref<4x32x8xbf16, #tpu.memory_space<vmem>>, vector<4x32x8xbf16>
    %c0_14 = arith.constant 0 : index
    %c0_15 = arith.constant 0 : index
    %c0_16 = arith.constant 0 : index
    %9 = vector.load %arg6[%c0_14, %c0_15, %c0_16] : memref<4x1x8xf32, #tpu.memory_space<vmem>>, vector<4x1x8xf32>
    %c0_17 = arith.constant 0 : index
    %c0_18 = arith.constant 0 : index
    %c0_19 = arith.constant 0 : index
    %10 = vector.load %arg7[%c0_17, %c0_18, %c0_19] : memref<4x32x8xbf16, #tpu.memory_space<vmem>>, vector<4x32x8xbf16>
    %c0_20 = arith.constant 0 : index
    %c0_21 = arith.constant 0 : index
    %c0_22 = arith.constant 0 : index
    %11 = vector.load %arg8[%c0_20, %c0_21, %c0_22] : memref<4x1x8xf32, #tpu.memory_space<vmem>>, vector<4x1x8xf32>
    %c0_23 = arith.constant 0 : index
    %c0_24 = arith.constant 0 : index
    %c0_25 = arith.constant 0 : index
    %12 = vector.load %arg9[%c0_23, %c0_24, %c0_25] : memref<4x32x8xbf16, #tpu.memory_space<vmem>>, vector<4x32x8xbf16>
    %c0_26 = arith.constant 0 : index
    %c0_27 = arith.constant 0 : index
    %c0_28 = arith.constant 0 : index
    %13 = vector.load %arg10[%c0_26, %c0_27, %c0_28] : memref<4x1x8xf32, #tpu.memory_space<vmem>>, vector<4x1x8xf32>
    %c0_29 = arith.constant 0 : index
    %c0_30 = arith.constant 0 : index
    %c0_31 = arith.constant 0 : index
    %14 = vector.load %arg11[%c0_29, %c0_30, %c0_31] : memref<4x8x32xbf16, #tpu.memory_space<vmem>>, vector<4x8x32xbf16>
    %c0_32 = arith.constant 0 : index
    %c0_33 = arith.constant 0 : index
    %15 = vector.load %arg12[%c0_32, %c0_33] : memref<1x32xf32, #tpu.memory_space<vmem>>, vector<1x32xf32>
    %c0_34 = arith.constant 0 : index
    %c0_35 = arith.constant 0 : index
    %16 = vector.load %arg13[%c0_34, %c0_35] : memref<1x32xf32, #tpu.memory_space<vmem>>, vector<1x32xf32>
    %c0_36 = arith.constant 0 : index
    %c0_37 = arith.constant 0 : index
    %17 = vector.load %arg14[%c0_36, %c0_37] : memref<1x32xf32, #tpu.memory_space<vmem>>, vector<1x32xf32>
    %18 = arith.truncf %1 : vector<8x32xf32> to vector<8x32xbf16>
    %19 = vector.shape_cast %18 : vector<8x32xbf16> to vector<1x8x32xbf16>
    %20 = vector.broadcast %19 : vector<1x8x32xbf16> to vector<4x8x32xbf16>
    "tpu.trace_start"() <{level = 10 : i32, message = "hld,hde->hle"}> : () -> ()
    %cst = arith.constant dense<0.000000e+00> : vector<4x8x8xf32>
    %21 = tpu.matmul %20, %8, %cst {dimension_numbers = #tpu.dot_dimension_numbers<[2], [1], [1], [2], [0, 0, 0, 1, 1, 2], [0], [0]>} : vector<4x8x32xbf16>, vector<4x32x8xbf16>, vector<4x8x8xf32> -> vector<4x8x8xf32>
    "tpu.trace_stop"() : () -> ()
    %22 = vector.broadcast %9 : vector<4x1x8xf32> to vector<4x8x8xf32>
    %23 = arith.addf %21, %22 : vector<4x8x8xf32>
    %24 = arith.truncf %1 : vector<8x32xf32> to vector<8x32xbf16>
    %25 = vector.shape_cast %24 : vector<8x32xbf16> to vector<1x8x32xbf16>
    %26 = vector.broadcast %25 : vector<1x8x32xbf16> to vector<4x8x32xbf16>
    "tpu.trace_start"() <{level = 10 : i32, message = "hld,hde->hle"}> : () -> ()
    %cst_38 = arith.constant dense<0.000000e+00> : vector<4x8x8xf32>
    %27 = tpu.matmul %26, %10, %cst_38 {dimension_numbers = #tpu.dot_dimension_numbers<[2], [1], [1], [2], [0, 0, 0, 1, 1, 2], [0], [0]>} : vector<4x8x32xbf16>, vector<4x32x8xbf16>, vector<4x8x8xf32> -> vector<4x8x8xf32>
    "tpu.trace_stop"() : () -> ()
    %28 = vector.broadcast %11 : vector<4x1x8xf32> to vector<4x8x8xf32>
    %29 = arith.addf %27, %28 : vector<4x8x8xf32>
    %30 = arith.truncf %1 : vector<8x32xf32> to vector<8x32xbf16>
    %31 = vector.shape_cast %30 : vector<8x32xbf16> to vector<1x8x32xbf16>
    %32 = vector.broadcast %31 : vector<1x8x32xbf16> to vector<4x8x32xbf16>
    "tpu.trace_start"() <{level = 10 : i32, message = "hld,hde->hle"}> : () -> ()
    %cst_39 = arith.constant dense<0.000000e+00> : vector<4x8x8xf32>
    %33 = tpu.matmul %32, %12, %cst_39 {dimension_numbers = #tpu.dot_dimension_numbers<[2], [1], [1], [2], [0, 0, 0, 1, 1, 2], [0], [0]>} : vector<4x8x32xbf16>, vector<4x32x8xbf16>, vector<4x8x8xf32> -> vector<4x8x8xf32>
    "tpu.trace_stop"() : () -> ()
    %34 = vector.broadcast %13 : vector<4x1x8xf32> to vector<4x8x8xf32>
    %35 = arith.addf %33, %34 : vector<4x8x8xf32>
    %36 = arith.truncf %23 : vector<4x8x8xf32> to vector<4x8x8xbf16>
    %37 = arith.truncf %29 : vector<4x8x8xf32> to vector<4x8x8xbf16>
    "tpu.trace_start"() <{level = 10 : i32, message = "hqd,hkd->hqk"}> : () -> ()
    %cst_40 = arith.constant dense<0.000000e+00> : vector<4x8x8xf32>
    %38 = tpu.matmul %36, %37, %cst_40 {dimension_numbers = #tpu.dot_dimension_numbers<[2], [2], [1], [1], [0, 0, 0, 1, 1, 1], [0], [0]>} : vector<4x8x8xbf16>, vector<4x8x8xbf16>, vector<4x8x8xf32> -> vector<4x8x8xf32>
    %cst_41 = arith.constant 0.000000e+00 : f32
    "tpu.trace_stop"() : () -> ()
    %39 = vector.broadcast %cst_41 : f32 to vector<1x8xf32>
    %40 = arith.cmpf ogt, %5, %39 : vector<1x8xf32>
    %41 = tpu.iota {dimensions = array<i32: 0>} : vector<8x8xi32>
    %42 = tpu.iota {dimensions = array<i32: 1>} : vector<8x8xi32>
    %43 = arith.cmpi sle, %42, %41 : vector<8x8xi32>
    %44 = vector.broadcast %40 : vector<1x8xi1> to vector<8x8xi1>
    %45 = arith.andi %44, %43 : vector<8x8xi1>
    %cst_42 = arith.constant -1.000000e+10 : f32
    %46 = vector.shape_cast %45 : vector<8x8xi1> to vector<1x8x8xi1>
    %47 = vector.broadcast %46 : vector<1x8x8xi1> to vector<4x8x8xi1>
    %48 = vector.broadcast %cst_42 : f32 to vector<4x8x8xf32>
    %49 = arith.select %47, %38, %48 : vector<4x8x8xi1>, vector<4x8x8xf32>
    %cst_43 = arith.constant dense<0xFF800000> : vector<4x8xf32>
    %50 = vector.multi_reduction <maximumf>, %49, %cst_43 [2] : vector<4x8x8xf32> to vector<4x8xf32>
    %51 = vector.shape_cast %50 : vector<4x8xf32> to vector<4x8x1xf32>
    %52 = vector.broadcast %51 : vector<4x8x1xf32> to vector<4x8x8xf32>
    %53 = arith.subf %49, %52 : vector<4x8x8xf32>
    %54 = math.exp %53 : vector<4x8x8xf32>
    %cst_44 = arith.constant dense<0.000000e+00> : vector<4x8xf32>
    %55 = vector.multi_reduction <add>, %54, %cst_44 [2] : vector<4x8x8xf32> to vector<4x8xf32>
    %56 = vector.shape_cast %55 : vector<4x8xf32> to vector<4x8x1xf32>
    %57 = tpu.reciprocal %56 {approx = true} : vector<4x8x1xf32> -> vector<4x8x1xf32>
    %58 = vector.broadcast %57 : vector<4x8x1xf32> to vector<4x8x8xf32>
    %59 = arith.mulf %54, %58 : vector<4x8x8xf32>
    %60 = arith.truncf %59 : vector<4x8x8xf32> to vector<4x8x8xbf16>
    %61 = arith.truncf %35 : vector<4x8x8xf32> to vector<4x8x8xbf16>
    "tpu.trace_start"() <{level = 10 : i32, message = "hqk,hkd->hqd"}> : () -> ()
    %cst_45 = arith.constant dense<0.000000e+00> : vector<4x8x8xf32>
    %62 = tpu.matmul %60, %61, %cst_45 {dimension_numbers = #tpu.dot_dimension_numbers<[2], [1], [1], [2], [0, 0, 0, 1, 1, 2], [0], [0]>} : vector<4x8x8xbf16>, vector<4x8x8xbf16>, vector<4x8x8xf32> -> vector<4x8x8xf32>
    "tpu.trace_stop"() : () -> ()
    %63 = arith.truncf %62 : vector<4x8x8xf32> to vector<4x8x8xbf16>
    "tpu.trace_start"() <{level = 10 : i32, message = "hqd,hde->hqe"}> : () -> ()
    %cst_46 = arith.constant dense<0.000000e+00> : vector<4x8x32xf32>
    %64 = tpu.matmul %63, %14, %cst_46 {dimension_numbers = #tpu.dot_dimension_numbers<[2], [1], [1], [2], [0, 0, 0, 1, 1, 2], [0], [0]>} : vector<4x8x8xbf16>, vector<4x8x32xbf16>, vector<4x8x32xf32> -> vector<4x8x32xf32>
    "tpu.trace_stop"() : () -> ()
    %cst_47 = arith.constant dense<0.000000e+00> : vector<8x32xf32>
    %65 = vector.multi_reduction <add>, %64, %cst_47 [0] : vector<4x8x32xf32> to vector<8x32xf32>
    %66 = vector.broadcast %15 : vector<1x32xf32> to vector<8x32xf32>
    %67 = arith.addf %65, %66 : vector<8x32xf32>
    %68 = arith.addf %1, %67 : vector<8x32xf32>
    %cst_48 = arith.constant dense<0.000000e+00> : vector<8xf32>
    %69 = vector.multi_reduction <add>, %68, %cst_48 [1] : vector<8x32xf32> to vector<8xf32>
    %70 = vector.shape_cast %69 : vector<8xf32> to vector<8x1xf32>
    %cst_49 = arith.constant 3.200000e+01 : f32
    %71 = vector.broadcast %cst_49 : f32 to vector<8x1xf32>
    %72 = arith.divf %70, %71 : vector<8x1xf32>
    %73 = vector.broadcast %72 : vector<8x1xf32> to vector<8x32xf32>
    %74 = arith.subf %68, %73 : vector<8x32xf32>
    %75 = arith.mulf %74, %74 : vector<8x32xf32>
    %cst_50 = arith.constant dense<0.000000e+00> : vector<8xf32>
    %76 = vector.multi_reduction <add>, %75, %cst_50 [1] : vector<8x32xf32> to vector<8xf32>
    %77 = vector.shape_cast %76 : vector<8xf32> to vector<8x1xf32>
    %cst_51 = arith.constant 3.200000e+01 : f32
    %78 = vector.broadcast %cst_51 : f32 to vector<8x1xf32>
    %79 = arith.divf %77, %78 : vector<8x1xf32>
    %80 = vector.broadcast %72 : vector<8x1xf32> to vector<8x32xf32>
    %81 = arith.subf %68, %80 : vector<8x32xf32>
    %cst_52 = arith.constant 9.99999974E-6 : f32
    %82 = vector.broadcast %cst_52 : f32 to vector<8x1xf32>
    %83 = arith.addf %79, %82 : vector<8x1xf32>
    %84 = math.rsqrt %83 : vector<8x1xf32>
    %85 = vector.broadcast %84 : vector<8x1xf32> to vector<8x32xf32>
    %86 = arith.mulf %81, %85 : vector<8x32xf32>
    %87 = vector.broadcast %16 : vector<1x32xf32> to vector<8x32xf32>
    %88 = arith.mulf %86, %87 : vector<8x32xf32>
    %89 = vector.broadcast %17 : vector<1x32xf32> to vector<8x32xf32>
    %90 = arith.addf %88, %89 : vector<8x32xf32>
    %c0_53 = arith.constant 0 : index
    %c0_54 = arith.constant 0 : index
    %c0_55 = arith.constant 0 : index
    %91 = vector.load %arg15[%c0_53, %c0_54, %c0_55] : memref<4x32x8xbf16, #tpu.memory_space<vmem>>, vector<4x32x8xbf16>
    %c0_56 = arith.constant 0 : index
    %c0_57 = arith.constant 0 : index
    %c0_58 = arith.constant 0 : index
    %92 = vector.load %arg16[%c0_56, %c0_57, %c0_58] : memref<4x1x8xf32, #tpu.memory_space<vmem>>, vector<4x1x8xf32>
    %c0_59 = arith.constant 0 : index
    %c0_60 = arith.constant 0 : index
    %c0_61 = arith.constant 0 : index
    %93 = vector.load %arg17[%c0_59, %c0_60, %c0_61] : memref<4x32x8xbf16, #tpu.memory_space<vmem>>, vector<4x32x8xbf16>
    %c0_62 = arith.constant 0 : index
    %c0_63 = arith.constant 0 : index
    %c0_64 = arith.constant 0 : index
    %94 = vector.load %arg18[%c0_62, %c0_63, %c0_64] : memref<4x1x8xf32, #tpu.memory_space<vmem>>, vector<4x1x8xf32>
    %c0_65 = arith.constant 0 : index
    %c0_66 = arith.constant 0 : index
    %c0_67 = arith.constant 0 : index
    %95 = vector.load %arg19[%c0_65, %c0_66, %c0_67] : memref<4x32x8xbf16, #tpu.memory_space<vmem>>, vector<4x32x8xbf16>
    %c0_68 = arith.constant 0 : index
    %c0_69 = arith.constant 0 : index
    %c0_70 = arith.constant 0 : index
    %96 = vector.load %arg20[%c0_68, %c0_69, %c0_70] : memref<4x1x8xf32, #tpu.memory_space<vmem>>, vector<4x1x8xf32>
    %c0_71 = arith.constant 0 : index
    %c0_72 = arith.constant 0 : index
    %c0_73 = arith.constant 0 : index
    %97 = vector.load %arg21[%c0_71, %c0_72, %c0_73] : memref<4x8x32xbf16, #tpu.memory_space<vmem>>, vector<4x8x32xbf16>
    %c0_74 = arith.constant 0 : index
    %c0_75 = arith.constant 0 : index
    %98 = vector.load %arg22[%c0_74, %c0_75] : memref<1x32xf32, #tpu.memory_space<vmem>>, vector<1x32xf32>
    %c0_76 = arith.constant 0 : index
    %c0_77 = arith.constant 0 : index
    %99 = vector.load %arg23[%c0_76, %c0_77] : memref<1x32xf32, #tpu.memory_space<vmem>>, vector<1x32xf32>
    %c0_78 = arith.constant 0 : index
    %c0_79 = arith.constant 0 : index
    %100 = vector.load %arg24[%c0_78, %c0_79] : memref<1x32xf32, #tpu.memory_space<vmem>>, vector<1x32xf32>
    %101 = arith.truncf %90 : vector<8x32xf32> to vector<8x32xbf16>
    %102 = vector.shape_cast %101 : vector<8x32xbf16> to vector<1x8x32xbf16>
    %103 = vector.broadcast %102 : vector<1x8x32xbf16> to vector<4x8x32xbf16>
    "tpu.trace_start"() <{level = 10 : i32, message = "hld,hde->hle"}> : () -> ()
    %cst_80 = arith.constant dense<0.000000e+00> : vector<4x8x8xf32>
    %104 = tpu.matmul %103, %91, %cst_80 {dimension_numbers = #tpu.dot_dimension_numbers<[2], [1], [1], [2], [0, 0, 0, 1, 1, 2], [0], [0]>} : vector<4x8x32xbf16>, vector<4x32x8xbf16>, vector<4x8x8xf32> -> vector<4x8x8xf32>
    "tpu.trace_stop"() : () -> ()
    %105 = vector.broadcast %92 : vector<4x1x8xf32> to vector<4x8x8xf32>
    %106 = arith.addf %104, %105 : vector<4x8x8xf32>
    %107 = arith.truncf %3 : vector<8x32xf32> to vector<8x32xbf16>
    %108 = vector.shape_cast %107 : vector<8x32xbf16> to vector<1x8x32xbf16>
    %109 = vector.broadcast %108 : vector<1x8x32xbf16> to vector<4x8x32xbf16>
    "tpu.trace_start"() <{level = 10 : i32, message = "hld,hde->hle"}> : () -> ()
    %cst_81 = arith.constant dense<0.000000e+00> : vector<4x8x8xf32>
    %110 = tpu.matmul %109, %93, %cst_81 {dimension_numbers = #tpu.dot_dimension_numbers<[2], [1], [1], [2], [0, 0, 0, 1, 1, 2], [0], [0]>} : vector<4x8x32xbf16>, vector<4x32x8xbf16>, vector<4x8x8xf32> -> vector<4x8x8xf32>
    "tpu.trace_stop"() : () -> ()
    %111 = vector.broadcast %94 : vector<4x1x8xf32> to vector<4x8x8xf32>
    %112 = arith.addf %110, %111 : vector<4x8x8xf32>
    %113 = arith.truncf %3 : vector<8x32xf32> to vector<8x32xbf16>
    %114 = vector.shape_cast %113 : vector<8x32xbf16> to vector<1x8x32xbf16>
    %115 = vector.broadcast %114 : vector<1x8x32xbf16> to vector<4x8x32xbf16>
    "tpu.trace_start"() <{level = 10 : i32, message = "hld,hde->hle"}> : () -> ()
    %cst_82 = arith.constant dense<0.000000e+00> : vector<4x8x8xf32>
    %116 = tpu.matmul %115, %95, %cst_82 {dimension_numbers = #tpu.dot_dimension_numbers<[2], [1], [1], [2], [0, 0, 0, 1, 1, 2], [0], [0]>} : vector<4x8x32xbf16>, vector<4x32x8xbf16>, vector<4x8x8xf32> -> vector<4x8x8xf32>
    "tpu.trace_stop"() : () -> ()
    %117 = vector.broadcast %96 : vector<4x1x8xf32> to vector<4x8x8xf32>
    %118 = arith.addf %116, %117 : vector<4x8x8xf32>
    %119 = arith.truncf %106 : vector<4x8x8xf32> to vector<4x8x8xbf16>
    %120 = arith.truncf %112 : vector<4x8x8xf32> to vector<4x8x8xbf16>
    "tpu.trace_start"() <{level = 10 : i32, message = "hqd,hkd->hqk"}> : () -> ()
    %cst_83 = arith.constant dense<0.000000e+00> : vector<4x8x8xf32>
    %121 = tpu.matmul %119, %120, %cst_83 {dimension_numbers = #tpu.dot_dimension_numbers<[2], [2], [1], [1], [0, 0, 0, 1, 1, 1], [0], [0]>} : vector<4x8x8xbf16>, vector<4x8x8xbf16>, vector<4x8x8xf32> -> vector<4x8x8xf32>
    %cst_84 = arith.constant 0.000000e+00 : f32
    "tpu.trace_stop"() : () -> ()
    %122 = vector.broadcast %cst_84 : f32 to vector<1x8xf32>
    %123 = arith.cmpf ogt, %7, %122 : vector<1x8xf32>
    %cst_85 = arith.constant -1.000000e+10 : f32
    %124 = vector.shape_cast %123 : vector<1x8xi1> to vector<1x1x8xi1>
    %125 = vector.broadcast %124 : vector<1x1x8xi1> to vector<4x8x8xi1>
    %126 = vector.broadcast %cst_85 : f32 to vector<4x8x8xf32>
    %127 = arith.select %125, %121, %126 : vector<4x8x8xi1>, vector<4x8x8xf32>
    %cst_86 = arith.constant dense<0xFF800000> : vector<4x8xf32>
    %128 = vector.multi_reduction <maximumf>, %127, %cst_86 [2] : vector<4x8x8xf32> to vector<4x8xf32>
    %129 = vector.shape_cast %128 : vector<4x8xf32> to vector<4x8x1xf32>
    %130 = vector.broadcast %129 : vector<4x8x1xf32> to vector<4x8x8xf32>
    %131 = arith.subf %127, %130 : vector<4x8x8xf32>
    %132 = math.exp %131 : vector<4x8x8xf32>
    %cst_87 = arith.constant dense<0.000000e+00> : vector<4x8xf32>
    %133 = vector.multi_reduction <add>, %132, %cst_87 [2] : vector<4x8x8xf32> to vector<4x8xf32>
    %134 = vector.shape_cast %133 : vector<4x8xf32> to vector<4x8x1xf32>
    %135 = vector.broadcast %134 : vector<4x8x1xf32> to vector<4x8x8xf32>
    %136 = arith.divf %132, %135 : vector<4x8x8xf32>
    %137 = arith.truncf %136 : vector<4x8x8xf32> to vector<4x8x8xbf16>
    %138 = arith.truncf %118 : vector<4x8x8xf32> to vector<4x8x8xbf16>
    "tpu.trace_start"() <{level = 10 : i32, message = "hqk,hkd->hqd"}> : () -> ()
    %cst_88 = arith.constant dense<0.000000e+00> : vector<4x8x8xf32>
    %139 = tpu.matmul %137, %138, %cst_88 {dimension_numbers = #tpu.dot_dimension_numbers<[2], [1], [1], [2], [0, 0, 0, 1, 1, 2], [0], [0]>} : vector<4x8x8xbf16>, vector<4x8x8xbf16>, vector<4x8x8xf32> -> vector<4x8x8xf32>
    "tpu.trace_stop"() : () -> ()
    %140 = arith.truncf %139 : vector<4x8x8xf32> to vector<4x8x8xbf16>
    "tpu.trace_start"() <{level = 10 : i32, message = "hqd,hde->hqe"}> : () -> ()
    %cst_89 = arith.constant dense<0.000000e+00> : vector<4x8x32xf32>
    %141 = tpu.matmul %140, %97, %cst_89 {dimension_numbers = #tpu.dot_dimension_numbers<[2], [1], [1], [2], [0, 0, 0, 1, 1, 2], [0], [0]>} : vector<4x8x8xbf16>, vector<4x8x32xbf16>, vector<4x8x32xf32> -> vector<4x8x32xf32>
    "tpu.trace_stop"() : () -> ()
    %cst_90 = arith.constant dense<0.000000e+00> : vector<8x32xf32>
    %142 = vector.multi_reduction <add>, %141, %cst_90 [0] : vector<4x8x32xf32> to vector<8x32xf32>
    %143 = vector.broadcast %98 : vector<1x32xf32> to vector<8x32xf32>
    %144 = arith.addf %142, %143 : vector<8x32xf32>
    %145 = arith.addf %90, %144 : vector<8x32xf32>
    %cst_91 = arith.constant dense<0.000000e+00> : vector<8xf32>
    %146 = vector.multi_reduction <add>, %145, %cst_91 [1] : vector<8x32xf32> to vector<8xf32>
    %147 = vector.shape_cast %146 : vector<8xf32> to vector<8x1xf32>
    %cst_92 = arith.constant 3.200000e+01 : f32
    %148 = vector.broadcast %cst_92 : f32 to vector<8x1xf32>
    %149 = arith.divf %147, %148 : vector<8x1xf32>
    %150 = vector.broadcast %149 : vector<8x1xf32> to vector<8x32xf32>
    %151 = arith.subf %145, %150 : vector<8x32xf32>
    %152 = arith.mulf %151, %151 : vector<8x32xf32>
    %cst_93 = arith.constant dense<0.000000e+00> : vector<8xf32>
    %153 = vector.multi_reduction <add>, %152, %cst_93 [1] : vector<8x32xf32> to vector<8xf32>
    %154 = vector.shape_cast %153 : vector<8xf32> to vector<8x1xf32>
    %cst_94 = arith.constant 3.200000e+01 : f32
    %155 = vector.broadcast %cst_94 : f32 to vector<8x1xf32>
    %156 = arith.divf %154, %155 : vector<8x1xf32>
    %157 = vector.broadcast %149 : vector<8x1xf32> to vector<8x32xf32>
    %158 = arith.subf %145, %157 : vector<8x32xf32>
    %cst_95 = arith.constant 9.99999974E-6 : f32
    %159 = vector.broadcast %cst_95 : f32 to vector<8x1xf32>
    %160 = arith.addf %156, %159 : vector<8x1xf32>
    %161 = math.rsqrt %160 : vector<8x1xf32>
    %162 = vector.broadcast %161 : vector<8x1xf32> to vector<8x32xf32>
    %163 = arith.mulf %158, %162 : vector<8x32xf32>
    %164 = vector.broadcast %99 : vector<1x32xf32> to vector<8x32xf32>
    %165 = arith.mulf %163, %164 : vector<8x32xf32>
    %166 = vector.broadcast %100 : vector<1x32xf32> to vector<8x32xf32>
    %167 = arith.addf %165, %166 : vector<8x32xf32>
    %c0_96 = arith.constant 0 : index
    %c0_97 = arith.constant 0 : index
    %168 = vector.load %arg25[%c0_96, %c0_97] : memref<32x64xbf16, #tpu.memory_space<vmem>>, vector<32x64xbf16>
    %c0_98 = arith.constant 0 : index
    %c0_99 = arith.constant 0 : index
    %169 = vector.load %arg26[%c0_98, %c0_99] : memref<1x64xf32, #tpu.memory_space<vmem>>, vector<1x64xf32>
    %c0_100 = arith.constant 0 : index
    %c0_101 = arith.constant 0 : index
    %170 = vector.load %arg27[%c0_100, %c0_101] : memref<64x32xbf16, #tpu.memory_space<vmem>>, vector<64x32xbf16>
    %c0_102 = arith.constant 0 : index
    %c0_103 = arith.constant 0 : index
    %171 = vector.load %arg28[%c0_102, %c0_103] : memref<1x32xf32, #tpu.memory_space<vmem>>, vector<1x32xf32>
    %c0_104 = arith.constant 0 : index
    %c0_105 = arith.constant 0 : index
    %172 = vector.load %arg29[%c0_104, %c0_105] : memref<1x32xf32, #tpu.memory_space<vmem>>, vector<1x32xf32>
    %c0_106 = arith.constant 0 : index
    %c0_107 = arith.constant 0 : index
    %173 = vector.load %arg30[%c0_106, %c0_107] : memref<1x32xf32, #tpu.memory_space<vmem>>, vector<1x32xf32>
    %174 = arith.truncf %167 : vector<8x32xf32> to vector<8x32xbf16>
    %cst_108 = arith.constant dense<0.000000e+00> : vector<8x64xf32>
    %175 = tpu.matmul %174, %168, %cst_108 {dimension_numbers = #tpu.dot_dimension_numbers<[1], [0], [0], [1], [0, 0, 1, 1], [], []>} : vector<8x32xbf16>, vector<32x64xbf16>, vector<8x64xf32> -> vector<8x64xf32>
    %176 = vector.broadcast %169 : vector<1x64xf32> to vector<8x64xf32>
    %177 = arith.addf %175, %176 : vector<8x64xf32>
    %cst_109 = arith.constant 0.000000e+00 : f32
    %178 = vector.broadcast %cst_109 : f32 to vector<8x64xf32>
    %179 = arith.maximumf %177, %178 : vector<8x64xf32>
    %180 = arith.truncf %179 : vector<8x64xf32> to vector<8x64xbf16>
    %cst_110 = arith.constant dense<0.000000e+00> : vector<8x32xf32>
    %181 = tpu.matmul %180, %170, %cst_110 {dimension_numbers = #tpu.dot_dimension_numbers<[1], [0], [0], [1], [0, 0, 1, 1], [], []>} : vector<8x64xbf16>, vector<64x32xbf16>, vector<8x32xf32> -> vector<8x32xf32>
    %182 = vector.broadcast %171 : vector<1x32xf32> to vector<8x32xf32>
    %183 = arith.addf %181, %182 : vector<8x32xf32>
    %184 = arith.addf %167, %183 : vector<8x32xf32>
    %cst_111 = arith.constant dense<0.000000e+00> : vector<8xf32>
    %185 = vector.multi_reduction <add>, %184, %cst_111 [1] : vector<8x32xf32> to vector<8xf32>
    %186 = vector.shape_cast %185 : vector<8xf32> to vector<8x1xf32>
    %cst_112 = arith.constant 3.200000e+01 : f32
    %187 = vector.broadcast %cst_112 : f32 to vector<8x1xf32>
    %188 = arith.divf %186, %187 : vector<8x1xf32>
    %189 = vector.broadcast %188 : vector<8x1xf32> to vector<8x32xf32>
    %190 = arith.subf %184, %189 : vector<8x32xf32>
    %191 = arith.mulf %190, %190 : vector<8x32xf32>
    %cst_113 = arith.constant dense<0.000000e+00> : vector<8xf32>
    %192 = vector.multi_reduction <add>, %191, %cst_113 [1] : vector<8x32xf32> to vector<8xf32>
    %193 = vector.shape_cast %192 : vector<8xf32> to vector<8x1xf32>
    %cst_114 = arith.constant 3.200000e+01 : f32
    %194 = vector.broadcast %cst_114 : f32 to vector<8x1xf32>
    %195 = arith.divf %193, %194 : vector<8x1xf32>
    %196 = vector.broadcast %188 : vector<8x1xf32> to vector<8x32xf32>
    %197 = arith.subf %184, %196 : vector<8x32xf32>
    %cst_115 = arith.constant 9.99999974E-6 : f32
    %198 = vector.broadcast %cst_115 : f32 to vector<8x1xf32>
    %199 = arith.addf %195, %198 : vector<8x1xf32>
    %200 = math.rsqrt %199 : vector<8x1xf32>
    %201 = vector.broadcast %200 : vector<8x1xf32> to vector<8x32xf32>
    %202 = arith.mulf %197, %201 : vector<8x32xf32>
    %203 = vector.broadcast %172 : vector<1x32xf32> to vector<8x32xf32>
    %204 = arith.mulf %202, %203 : vector<8x32xf32>
    %205 = vector.broadcast %173 : vector<1x32xf32> to vector<8x32xf32>
    %206 = arith.addf %204, %205 : vector<8x32xf32>
    %c0_116 = arith.constant 0 : index
    %c0_117 = arith.constant 0 : index
    %c0_118 = arith.constant 0 : index
    %207 = vector.load %arg31[%c0_116, %c0_117, %c0_118] : memref<1x8x32xf32, #tpu.memory_space<vmem>>, vector<1x8x32xf32>
    %208 = vector.shape_cast %207 : vector<1x8x32xf32> to vector<8x32xf32>
    %209 = vector.shape_cast %206 : vector<8x32xf32> to vector<1x8x32xf32>
    tpu.vector_store %arg31[%c0_116, %c0_117, %c0_118], %209 {strides = array<i32>} : memref<1x8x32xf32, #tpu.memory_space<vmem>>, vector<1x8x32xf32>,
    %c0_119 = arith.constant 0 : index
    %c0_120 = arith.constant 0 : index
    %c0_121 = arith.constant 0 : index
    %c0_122 = arith.constant 0 : index
    %210 = vector.load %arg32[%c0_119, %c0_120, %c0_121, %c0_122] : memref<1x4x8x8xf32, #tpu.memory_space<vmem>>, vector<1x4x8x8xf32>
    %211 = vector.shape_cast %210 : vector<1x4x8x8xf32> to vector<4x8x8xf32>
    %212 = vector.shape_cast %136 : vector<4x8x8xf32> to vector<1x4x8x8xf32>
    tpu.vector_store %arg32[%c0_119, %c0_120, %c0_121, %c0_122], %212 {strides = array<i32>} : memref<1x4x8x8xf32, #tpu.memory_space<vmem>>, vector<1x4x8x8xf32>,
    return
  }
  func.func @transform_0(%arg0: i32) -> (i32, i32, i32) {
    %c0_i32 = arith.constant 0 : i32
    %c0_i32_0 = arith.constant 0 : i32
    %c0_i32_1 = arith.constant 0 : i32
    return %arg0, %c0_i32, %c0_i32_0 : i32, i32, i32
  }
  func.func @transform_1(%arg0: i32) -> (i32, i32, i32) {
    %c0_i32 = arith.constant 0 : i32
    %c0_i32_0 = arith.constant 0 : i32
    %c0_i32_1 = arith.constant 0 : i32
    return %arg0, %c0_i32, %c0_i32_0 : i32, i32, i32
  }
  func.func @transform_2(%arg0: i32) -> (i32, i32, i32) {
    %c0_i32 = arith.constant 0 : i32
    %c0_i32_0 = arith.constant 0 : i32
    %c0_i32_1 = arith.constant 0 : i32
    return %arg0, %c0_i32, %c0_i32_0 : i32, i32, i32
  }
  func.func @transform_3(%arg0: i32) -> (i32, i32, i32) {
    %c0_i32 = arith.constant 0 : i32
    %c0_i32_0 = arith.constant 0 : i32
    %c0_i32_1 = arith.constant 0 : i32
    return %arg0, %c0_i32, %c0_i32_0 : i32, i32, i32
  }
  func.func @transform_4(%arg0: i32) -> (i32, i32, i32) {
    %c0_i32 = arith.constant 0 : i32
    %c0_i32_0 = arith.constant 0 : i32
    %c0_i32_1 = arith.constant 0 : i32
    %c0_i32_2 = arith.constant 0 : i32
    return %c0_i32, %c0_i32_0, %c0_i32_1 : i32, i32, i32
  }
  func.func @transform_5(%arg0: i32) -> (i32, i32, i32) {
    %c0_i32 = arith.constant 0 : i32
    %c0_i32_0 = arith.constant 0 : i32
    %c0_i32_1 = arith.constant 0 : i32
    %c0_i32_2 = arith.constant 0 : i32
    return %c0_i32, %c0_i32_0, %c0_i32_1 : i32, i32, i32
  }
  func.func @transform_6(%arg0: i32) -> (i32, i32, i32) {
    %c0_i32 = arith.constant 0 : i32
    %c0_i32_0 = arith.constant 0 : i32
    %c0_i32_1 = arith.constant 0 : i32
    %c0_i32_2 = arith.constant 0 : i32
    return %c0_i32, %c0_i32_0, %c0_i32_1 : i32, i32, i32
  }
  func.func @transform_7(%arg0: i32) -> (i32, i32, i32) {
    %c0_i32 = arith.constant 0 : i32
    %c0_i32_0 = arith.constant 0 : i32
    %c0_i32_1 = arith.constant 0 : i32
    %c0_i32_2 = arith.constant 0 : i32
    return %c0_i32, %c0_i32_0, %c0_i32_1 : i32, i32, i32
  }
  func.func @transform_8(%arg0: i32) -> (i32, i32, i32) {
    %c0_i32 = arith.constant 0 : i32
    %c0_i32_0 = arith.constant 0 : i32
    %c0_i32_1 = arith.constant 0 : i32
    %c0_i32_2 = arith.constant 0 : i32
    return %c0_i32, %c0_i32_0, %c0_i32_1 : i32, i32, i32
  }
  func.func @transform_9(%arg0: i32) -> (i32, i32, i32) {
    %c0_i32 = arith.constant 0 : i32
    %c0_i32_0 = arith.constant 0 : i32
    %c0_i32_1 = arith.constant 0 : i32
    %c0_i32_2 = arith.constant 0 : i32
    return %c0_i32, %c0_i32_0, %c0_i32_1 : i32, i32, i32
  }
  func.func @transform_10(%arg0: i32) -> (i32, i32, i32) {
    %c0_i32 = arith.constant 0 : i32
    %c0_i32_0 = arith.constant 0 : i32
    %c0_i32_1 = arith.constant 0 : i32
    %c0_i32_2 = arith.constant 0 : i32
    return %c0_i32, %c0_i32_0, %c0_i32_1 : i32, i32, i32
  }
  func.func @transform_11(%arg0: i32) -> (i32, i32) {
    %c0_i32 = arith.constant 0 : i32
    %c0_i32_0 = arith.constant 0 : i32
    %c0_i32_1 = arith.constant 0 : i32
    return %c0_i32, %c0_i32_0 : i32, i32
  }
  func.func @transform_12(%arg0: i32) -> (i32, i32) {
    %c0_i32 = arith.constant 0 : i32
    %c0_i32_0 = arith.constant 0 : i32
    %c0_i32_1 = arith.constant 0 : i32
    return %c0_i32, %c0_i32_0 : i32, i32
  }
  func.func @transform_13(%arg0: i32) -> (i32, i32) {
    %c0_i32 = arith.constant 0 : i32
    %c0_i32_0 = arith.constant 0 : i32
    %c0_i32_1 = arith.constant 0 : i32
    return %c0_i32, %c0_i32_0 : i32, i32
  }
  func.func @transform_14(%arg0: i32) -> (i32, i32, i32) {
    %c0_i32 = arith.constant 0 : i32
    %c0_i32_0 = arith.constant 0 : i32
    %c0_i32_1 = arith.constant 0 : i32
    %c0_i32_2 = arith.constant 0 : i32
    return %c0_i32, %c0_i32_0, %c0_i32_1 : i32, i32, i32
  }
  func.func @transform_15(%arg0: i32) -> (i32, i32, i32) {
    %c0_i32 = arith.constant 0 : i32
    %c0_i32_0 = arith.constant 0 : i32
    %c0_i32_1 = arith.constant 0 : i32
    %c0_i32_2 = arith.constant 0 : i32
    return %c0_i32, %c0_i32_0, %c0_i32_1 : i32, i32, i32
  }
  func.func @transform_16(%arg0: i32) -> (i32, i32, i32) {
    %c0_i32 = arith.constant 0 : i32
    %c0_i32_0 = arith.constant 0 : i32
    %c0_i32_1 = arith.constant 0 : i32
    %c0_i32_2 = arith.constant 0 : i32
    return %c0_i32, %c0_i32_0, %c0_i32_1 : i32, i32, i32
  }
  func.func @transform_17(%arg0: i32) -> (i32, i32, i32) {
    %c0_i32 = arith.constant 0 : i32
    %c0_i32_0 = arith.constant 0 : i32
    %c0_i32_1 = arith.constant 0 : i32
    %c0_i32_2 = arith.constant 0 : i32
    return %c0_i32, %c0_i32_0, %c0_i32_1 : i32, i32, i32
  }
  func.func @transform_18(%arg0: i32) -> (i32, i32, i32) {
    %c0_i32 = arith.constant 0 : i32
    %c0_i32_0 = arith.constant 0 : i32
    %c0_i32_1 = arith.constant 0 : i32
    %c0_i32_2 = arith.constant 0 : i32
    return %c0_i32, %c0_i32_0, %c0_i32_1 : i32, i32, i32
  }
  func.func @transform_19(%arg0: i32) -> (i32, i32, i32) {
    %c0_i32 = arith.constant 0 : i32
    %c0_i32_0 = arith.constant 0 : i32
    %c0_i32_1 = arith.constant 0 : i32
    %c0_i32_2 = arith.constant 0 : i32
    return %c0_i32, %c0_i32_0, %c0_i32_1 : i32, i32, i32
  }
  func.func @transform_20(%arg0: i32) -> (i32, i32, i32) {
    %c0_i32 = arith.constant 0 : i32
    %c0_i32_0 = arith.constant 0 : i32
    %c0_i32_1 = arith.constant 0 : i32
    %c0_i32_2 = arith.constant 0 : i32
    return %c0_i32, %c0_i32_0, %c0_i32_1 : i32, i32, i32
  }
  func.func @transform_21(%arg0: i32) -> (i32, i32) {
    %c0_i32 = arith.constant 0 : i32
    %c0_i32_0 = arith.constant 0 : i32
    %c0_i32_1 = arith.constant 0 : i32
    return %c0_i32, %c0_i32_0 : i32, i32
  }
  func.func @transform_22(%arg0: i32) -> (i32, i32) {
    %c0_i32 = arith.constant 0 : i32
    %c0_i32_0 = arith.constant 0 : i32
    %c0_i32_1 = arith.constant 0 : i32
    return %c0_i32, %c0_i32_0 : i32, i32
  }
  func.func @transform_23(%arg0: i32) -> (i32, i32) {
    %c0_i32 = arith.constant 0 : i32
    %c0_i32_0 = arith.constant 0 : i32
    %c0_i32_1 = arith.constant 0 : i32
    return %c0_i32, %c0_i32_0 : i32, i32
  }
  func.func @transform_24(%arg0: i32) -> (i32, i32) {
    %c0_i32 = arith.constant 0 : i32
    %c0_i32_0 = arith.constant 0 : i32
    %c0_i32_1 = arith.constant 0 : i32
    return %c0_i32, %c0_i32_0 : i32, i32
  }
  func.func @transform_25(%arg0: i32) -> (i32, i32) {
    %c0_i32 = arith.constant 0 : i32
    %c0_i32_0 = arith.constant 0 : i32
    %c0_i32_1 = arith.constant 0 : i32
    return %c0_i32, %c0_i32_0 : i32, i32
  }
  func.func @transform_26(%arg0: i32) -> (i32, i32) {
    %c0_i32 = arith.constant 0 : i32
    %c0_i32_0 = arith.constant 0 : i32
    %c0_i32_1 = arith.constant 0 : i32
    return %c0_i32, %c0_i32_0 : i32, i32
  }
  func.func @transform_27(%arg0: i32) -> (i32, i32) {
    %c0_i32 = arith.constant 0 : i32
    %c0_i32_0 = arith.constant 0 : i32
    %c0_i32_1 = arith.constant 0 : i32
    return %c0_i32, %c0_i32_0 : i32, i32
  }
  func.func @transform_28(%arg0: i32) -> (i32, i32) {
    %c0_i32 = arith.constant 0 : i32
    %c0_i32_0 = arith.constant 0 : i32
    %c0_i32_1 = arith.constant 0 : i32
    return %c0_i32, %c0_i32_0 : i32, i32
  }
  func.func @transform_29(%arg0: i32) -> (i32, i32) {
    %c0_i32 = arith.constant 0 : i32
    %c0_i32_0 = arith.constant 0 : i32
    %c0_i32_1 = arith.constant 0 : i32
    return %c0_i32, %c0_i32_0 : i32, i32
  }
  func.func @transform_30(%arg0: i32) -> (i32, i32, i32) {
    %c0_i32 = arith.constant 0 : i32
    %c0_i32_0 = arith.constant 0 : i32
    %c0_i32_1 = arith.constant 0 : i32
    return %arg0, %c0_i32, %c0_i32_0 : i32, i32, i32
  }
  func.func @transform_31(%arg0: i32) -> (i32, i32, i32, i32) {
    %c0_i32 = arith.constant 0 : i32
    %c0_i32_0 = arith.constant 0 : i32
    %c0_i32_1 = arith.constant 0 : i32
    %c0_i32_2 = arith.constant 0 : i32
    return %arg0, %c0_i32, %c0_i32_0, %c0_i32_1 : i32, i32, i32, i32
  }
}

</mosaic_0001>

<bundles_post_ra>
// kernel: seq2seq_forward.9
= control target key start
LH: loop header
LB: loop body
LE: loop exit
PB: predicated region body
PF: predicated region fallthrough
CT: control target
= control target key end

     0   :  { %s159_s0 = inlined_call_operand.vmem [shape: f32[16,32], index: 0, kind: input, shape index: {}]   ;;  %s160_s1 = inlined_call_operand.vmem [shape: bf16[32,128], index: 1, kind: input, shape index: {}]   ;;  %s161_s2 = inlined_call_operand.vmem [shape: f32[1,128], index: 2, kind: input, shape index: {}]   ;;  %s162_s3 = inlined_call_operand.hbm [shape: f32[16,128], index: 3, kind: output, shape index: {}]  }
   0x1   :  { %v87_v0 = vld [vmem:[%s160_s1 + $0x8] sm:$0xff]  ;;  %v86_v1 = vld [vmem:[%s160_s1] sm:$0xff] }
   0x2   :  { %49 = vmatpush.bf16.msra.mxu0 %v87_v0  ;;  %v16_v2 = vld [vmem:[%s159_s0] sm:$0xff]  ;;  %v17_v3 = vld [vmem:[%s159_s0 + $0x8] sm:$0xff] }
   0x3   :  { %8 = vsyncpa [#allocation3], 0  ;;  %v18_v4 = vpack.c.bf16 %v17_v3, %v16_v2  ;;  %vm39_vm0 = vcmask 261120   ;;  %v91_v5 = vld [vmem:[%s161_s2] ss:$0 sm:$0xff]  ;;  %s118_s1 = smov [#allocation2]  }
   0x4   :  { %s63_s22 = sshll.u32 %s118_s1, 4  ;;  %s65_s25 = sshll.u32 %s162_s3, 4  ;;  %s64_s22 = int_to_ptr.vmem [resolvable:$true] %s63_s22  ;;  %s66_s25 = int_to_ptr.hbm [resolvable:$true] %s65_s25 }
   0x5   :  { %s119_s0 = smov 128   ;;  %s120_s26 = smov 8  }
   0x6   :  { %50 = vmatpush.bf16.msra.mxu0 %v86_v1 }
   0x9   :  { %85 = vmatmul.msk.bf16.vlgmr.msra.gmra.mxu0 %vm39_vm0, %v18_v4 }
  0x86   :  { %v52_v6 = vpop.f32.mrf.mxu0 }
  0x87   :  { %v53_v7 = vadd.f32 %v91_v5, %v52_v6 }
  0x89   :  { %57 = vst [vmem:[#allocation2] sm:$0xff] %v53_v7 }
  0x8e   :  { %v54_v8 = vpop.f32.mrf.mxu0 }
  0x8f   :  { %v55_v9 = vadd.f32 %v91_v5, %v54_v8 }
  0x91   :  { %58 = vst [vmem:[#allocation2 + $0x8] sm:$0xff] %v55_v9 }
  0x92   :  { %71 = dma.vmem_to_hbm [thread:$0]  %s64_s22, 256, %s66_s25, [#allocation3], %s119_s0, %s119_s0, %s120_s26  }
  0x93   :  { %116 = dma.done.wait [#allocation3], 256  }
  0x94   :  { %117 = vsyncadd [#allocation3], 4294967040 }
  0x95   :  { %76 = vsyncpa [#allocation3], 1 }

// kernel: seq2seq_forward.5
= control target key start
LH: loop header
LB: loop body
LE: loop exit
PB: predicated region body
PF: predicated region fallthrough
CT: control target
= control target key end

     0   :  { %s1876_s27 = smov 0   ;;  %s2134_s0 = inlined_call_operand.vmem [shape: f32[2,8,32], index: 0, kind: input, shape index: {}]   ;;  %s2135_s1 = inlined_call_operand.vmem [shape: f32[2,1,8], index: 1, kind: input, shape index: {}]   ;;  %s2136_s2 = inlined_call_operand.vmem [shape: bf16[4,32,8], index: 2, kind: input, shape index: {}]   ;;  %s2137_s3 = inlined_call_operand.vmem [shape: f32[4,1,8], index: 3, kind: input, shape index: {}]   ;;  %s2138_s4 = inlined_call_operand.vmem [shape: bf16[4,32,8], index: 4, kind: input, shape index: {}]   ;;  %s2139_s5 = inlined_call_operand.vmem [shape: f32[4,1,8], index: 5, kind: input, shape index: {}]   ;;  %s2140_s6 = inlined_call_operand.vmem [shape: bf16[4,32,8], index: 6, kind: input, shape index: {}]   ;;  %s2141_s7 = inlined_call_operand.vmem [shape: f32[4,1,8], index: 7, kind: input, shape index: {}]   ;;  %s2142_s8 = inlined_call_operand.vmem [shape: bf16[4,8,32], index: 8, kind: input, shape index: {}]   ;;  %s2143_s9 = inlined_call_operand.vmem [shape: f32[1,32], index: 9, kind: input, shape index: {}]   ;;  %s2144_s10 = inlined_call_operand.vmem [shape: f32[1,32], index: 10, kind: input, shape index: {}]   ;;  %s2145_s11 = inlined_call_operand.vmem [shape: f32[1,32], index: 11, kind: input, shape index: {}]   ;;  %s2146_s12 = inlined_call_operand.vmem [shape: bf16[32,64], index: 12, kind: input, shape index: {}]   ;;  %s2147_s13 = inlined_call_operand.vmem [shape: f32[1,64], index: 13, kind: input, shape index: {}]   ;;  %s2148_s14 = inlined_call_operand.vmem [shape: bf16[64,32], index: 14, kind: input, shape index: {}]   ;;  %s2149_s15 = inlined_call_operand.vmem [shape: f32[1,32], index: 15, kind: input, shape index: {}]   ;;  %s2150_s16 = inlined_call_operand.vmem [shape: f32[1,32], index: 16, kind: input, shape index: {}]   ;;  %s2151_s17 = inlined_call_operand.vmem [shape: f32[1,32], index: 17, kind: input, shape index: {}]   ;;  %s2152_s18 = inlined_call_operand.vmem [shape: f32[2,8,32], index: 18, kind: output, shape index: {}]  }
   0x1   :  { %2155 = sst [smem:[#allocation3_spill]] %s2134_s0 }
   0x2   :  { %2156 = sst [smem:[#allocation4_spill]] %s2135_s1 }
   0x3   :  { %2157 = sst [smem:[#allocation5_spill]] %s2136_s2 }
   0x4 LB: > { %2158 = sst [smem:[#allocation2_spill]] %s1777_s27  ;;  %s1535_s28 = sadd.s32 4294967295, %s1777_s27   ;;  %s1777_s27 = sphi %s1876_s27, %s28_s27  }
   0x5   : > { %p1539_p0 = scmp.ge.s32.totalorder %s1777_s27, 1  ;;  %p519_p1 = scmp.lt.s32.totalorder %s1777_s27, 3 }
   0x7   : > { %p520_p2 = pnand %p1539_p0, %p519_p1 }
   0x8   : > { %s2159_s0 = sld [smem:[#allocation5_spill]] (!%p520_p2)  ;;  %p574_p3 = scmp.lt.s32.totalorder (!%p520_p2), %s1535_s28, 1 }
   0x9   : > { %523 = sbr.rel (%p520_p2) target bundleno = 1655 (0x677), region = 92  ;;  %s2160_s26 = sld [smem:[#allocation3_spill]] (!%p520_p2) }
   0xa   : > { %s2161_s2 = sld [smem:[#allocation4_spill]] (!%p520_p2) }
   0xe   : > { %v1691_v0 = vld [vmem:[%s2159_s0 + $0x8] sm:$0xff]  ;;  %v1693_v1 = vld [vmem:[%s2159_s0 + $0x18] sm:$0xff]  ;;  %v1690_v4 = vld [vmem:[%s2159_s0] sm:$0xff]  ;;  %s2166_s28 = smov (!%p574_p3, %s1535_s28), 1  ;;  %vm680_vm0 = vcmask 261120   ;;  %vm1004_vm1 = vcmask 64512  }
   0xf   : > { %v1695_v2 = vld [vmem:[%s2159_s0 + $0x28] sm:$0xff]  ;;  %v1697_v3 = vld [vmem:[%s2159_s0 + $0x38] sm:$0xff]  ;;  %690 = vmatpush.bf16.msra.mxu0 %v1691_v0  ;;  %715 = vmatpush.bf16.msra.mxu1 %v1693_v1  ;;  %v1692_v5 = vld [vmem:[%s2159_s0 + $0x10] sm:$0xff]  ;;  %s1540_s20 = sshll.u32 %s2166_s28, 3  ;;  %vm1144_vm2 = vcmask 1043456   ;;  %vm1424_vm9 = vcmask 523264  }
  0x10   : > { %740 = vmatpush.bf16.msra.mxu2 %v1695_v2  ;;  %765 = vmatpush.bf16.msra.mxu3 %v1697_v3  ;;  %v1694_v6 = vld [vmem:[%s2159_s0 + $0x20] sm:$0xff]  ;;  %v1696_v7 = vld [vmem:[%s2159_s0 + $0x30] sm:$0xff]  ;;  %v1699_v8 = vld [vmem:[%s2138_s4 + $0x8] sm:$0xff]  ;;  %s577_s27 = scalar_lea.vmem %s2160_s26, %s1540_s20  ;;  %s580_s23 = scalar_lea.vmem %s2161_s2, %s2166_s28 }
  0x11   : > { %v1701_v9 = vld [vmem:[%s2138_s4 + $0x18] sm:$0xff]  ;;  %v1703_v10 = vld [vmem:[%s2138_s4 + $0x28] sm:$0xff]  ;;  %v1928_v12 = vld [vmem:[%s577_s27] sm:$0xff]  ;;  %s584_s27 = scalar_lea.vmem %s2152_s18, %s1540_s20 }
  0x12   : > { %v1705_v11 = vld [vmem:[%s2138_s4 + $0x38] sm:$0xff]  ;;  %v1698_v13 = vld [vmem:[%s2138_s4] sm:$0xff]  ;;  %v1700_v14 = vld [vmem:[%s2138_s4 + $0x10] sm:$0xff]  ;;  %v655_v15 = vpack.c.bf16 %v1928_v12, %v1928_v12 }
  0x13   : > { %691 = vmatpush.bf16.msra.mxu0 %v1690_v4  ;;  %716 = vmatpush.bf16.msra.mxu1 %v1692_v5  ;;  %v1702_v16 = vld [vmem:[%s2138_s4 + $0x20] sm:$0xff]  ;;  %v1704_v17 = vld [vmem:[%s2138_s4 + $0x30] sm:$0xff]  ;;  %v1711_v18 = vld [vmem:[%s2140_s6 + $0x28] sm:$0xff] }
  0x14   : > { %741 = vmatpush.bf16.msra.mxu2 %v1694_v6  ;;  %766 = vmatpush.bf16.msra.mxu3 %v1696_v7  ;;  %v1707_v19 = vld [vmem:[%s2140_s6 + $0x8] sm:$0xff]  ;;  %v1709_v20 = vld [vmem:[%s2140_s6 + $0x18] sm:$0xff]  ;;  %v1710_v21 = vld [vmem:[%s2140_s6 + $0x20] sm:$0xff] }
  0x15   : > { %v1706_v22 = vld [vmem:[%s2140_s6] sm:$0xff]  ;;  %v1708_v23 = vld [vmem:[%s2140_s6 + $0x10] sm:$0xff]  ;;  %v1713_v24 = vld [vmem:[%s2140_s6 + $0x38] sm:$0xff] }
  0x16   : > { %1550 = vmatmul.msk.bf16.vlgmr.msra.gmra.mxu0 %vm680_vm0, %v655_v15  ;;  %1559 = vmatmul.msk.bf16.vlgmr.msra.gmra.mxu1 %vm680_vm0, %v655_v15  ;;  %v1712_v25 = vld [vmem:[%s2140_s6 + $0x30] sm:$0xff]  ;;  %v1734_v32 = vld [vmem:[%s2139_s5] ss:$0 sm:$0xff]  ;;  %v1735_v33 = vld [vmem:[%s2139_s5 + $0x1] ss:$0 sm:$0xff] }
  0x17   : > { %802 = vmatpush.bf16.msrb.mxu0 %v1699_v8  ;;  %827 = vmatpush.bf16.msrb.mxu1 %v1701_v9  ;;  %v1731_v40 = vld [vmem:[%s2137_s3 + $0x1] ss:$0 sm:$0xff]  ;;  %v1730_v43 = vld [vmem:[%s2137_s3] ss:$0 sm:$0xff]  ;;  %v1736_v44 = vld [vmem:[%s2139_s5 + $0x2] ss:$0 sm:$0xff] }
  0x18   : > { %1568 = vmatmul.msk.bf16.vlgmr.msra.gmra.mxu2 %vm680_vm0, %v655_v15  ;;  %1577 = vmatmul.msk.bf16.vlgmr.msra.gmra.mxu3 %vm680_vm0, %v655_v15  ;;  %v1737_v45 = vld [vmem:[%s2139_s5 + $0x3] ss:$0 sm:$0xff]  ;;  %v1732_v57 = vld [vmem:[%s2137_s3 + $0x2] ss:$0 sm:$0xff]  ;;  %v1738_v6 = vld [vmem:[%s2141_s7] ss:$0 sm:$0xff] }
  0x19   : > { %852 = vmatpush.bf16.msrb.mxu2 %v1703_v10  ;;  %877 = vmatpush.bf16.msrb.mxu3 %v1705_v11  ;;  %v1733_v58 = vld [vmem:[%s2137_s3 + $0x3] ss:$0 sm:$0xff]  ;;  %v1739_v7 = vld [vmem:[%s2141_s7 + $0x1] ss:$0 sm:$0xff] }
  0x1b   : > { %803 = vmatpush.bf16.msrb.mxu0 %v1698_v13  ;;  %828 = vmatpush.bf16.msrb.mxu1 %v1700_v14  ;;  %v1740_v13 = vld [vmem:[%s2141_s7 + $0x2] ss:$0 sm:$0xff] }
  0x1d   : > { %853 = vmatpush.bf16.msrb.mxu2 %v1702_v16  ;;  %878 = vmatpush.bf16.msrb.mxu3 %v1704_v17 }
  0x1f   : > { %914 = vmatpush.bf16.msra.mxu0 %v1707_v19  ;;  %939 = vmatpush.bf16.msra.mxu1 %v1709_v20 }
  0x21   : > { %964 = vmatpush.bf16.msra.mxu2 %v1711_v18  ;;  %989 = vmatpush.bf16.msra.mxu3 %v1713_v24  ;;  %v1741_v24 = vld [vmem:[%s2141_s7 + $0x3] ss:$0 sm:$0xff] }
  0x23   : > { %915 = vmatpush.bf16.msra.mxu0 %v1706_v22  ;;  %940 = vmatpush.bf16.msra.mxu1 %v1708_v23 }
  0x25   : > { %965 = vmatpush.bf16.msra.mxu2 %v1710_v21  ;;  %990 = vmatpush.bf16.msra.mxu3 %v1712_v25 }
  0x26   : > { %1586 = vmatmul.msk.bf16.vlgmr.msrb.gmra.mxu0 %vm680_vm0, %v655_v15  ;;  %1595 = vmatmul.msk.bf16.vlgmr.msrb.gmra.mxu1 %vm680_vm0, %v655_v15 }
  0x28   : > { %1604 = vmatmul.msk.bf16.vlgmr.msrb.gmra.mxu2 %vm680_vm0, %v655_v15  ;;  %1613 = vmatmul.msk.bf16.vlgmr.msrb.gmra.mxu3 %vm680_vm0, %v655_v15 }
  0x36   : > { %1622 = vmatmul.msk.bf16.vlgmr.msra.gmra.mxu0 %vm680_vm0, %v655_v15  ;;  %1631 = vmatmul.msk.bf16.vlgmr.msra.gmra.mxu1 %vm680_vm0, %v655_v15 }
  0x38   : > { %1640 = vmatmul.msk.bf16.vlgmr.msra.gmra.mxu2 %vm680_vm0, %v655_v15  ;;  %1649 = vmatmul.msk.bf16.vlgmr.msra.gmra.mxu3 %vm680_vm0, %v655_v15 }
  0x93   : > { %v693_v26 = vpop.f32.mrf.mxu0  ;;  %v718_v27 = vpop.f32.mrf.mxu1 }
  0x94   : > { %v719_v48 = vadd.f32 %v1731_v40, %v718_v27  ;;  %v694_v51 = vadd.f32 %v1730_v43, %v693_v26 }
  0x96   : > { %v997_v56 = vpack.c.bf16 %v719_v48, %v719_v48  ;;  %v996_v61 = vpack.c.bf16 %v694_v51, %v694_v51 }
  0x9b   : > { %v743_v28 = vpop.f32.mrf.mxu2  ;;  %v768_v29 = vpop.f32.mrf.mxu3 }
  0x9c   : > { %v695_v30 = vpop.f32.mrf.mxu0  ;;  %v720_v31 = vpop.f32.mrf.mxu1  ;;  %v744_v0 = vadd.f32 %v1732_v57, %v743_v28  ;;  %v769_v1 = vadd.f32 %v1733_v58, %v768_v29 }
  0x9d   : > { %v587_v31 = vld [vmem:[%s580_s23] sm:$0x1] }
  0x9e   : > { %v998_v4 = vpack.c.bf16 %v744_v0, %v744_v0  ;;  %v999_v5 = vpack.c.bf16 %v769_v1, %v769_v1  ;;  %vm1081_vm3 = vcmp.gt.f32.partialorder %v587_v31, 0.0  ;;  %v651_v31 = vld [vmem:[%s2142_s8 + $0xc] sm:$0xf] }
  0xa3   : > { %v745_v34 = vpop.f32.mrf.mxu2  ;;  %v770_v35 = vpop.f32.mrf.mxu3 }
  0xa4   : > { %v805_v36 = vpop.f32.mrf.mxu0  ;;  %v830_v37 = vpop.f32.mrf.mxu1 }
  0xa5   : > { %v806_v38 = vadd.f32 %v1734_v32, %v805_v36  ;;  %v831_v39 = vadd.f32 %v1735_v33, %v830_v37  ;;  %v1779_v32 = vmov 0  }
  0xa6   : > { %v1082_v33 = vsel %vm1081_vm3, 1, %v1779_v32  ;;  %v1283_v32 = vsel %vm1144_vm2, %v651_v31, 0 }
  0xa7   : > { %v1000_v41 = vpack.c.bf16 %v806_v38, %v806_v38  ;;  %v1001_v42 = vpack.c.bf16 %v831_v39, %v831_v39  ;;  %v1083_v34 = vperm.slane %v1082_v33, 0 }
  0xa9   : > { %v1009_v46 = vsel %vm1004_vm1, %v1000_v41, 0  ;;  %v1028_v47 = vsel %vm1004_vm1, %v1001_v42, 0  ;;  %vm2032_vm4 = vcmp.eq.s32.totalorder %v1083_v34, 1 }
  0xaa   : > { %1018 = vmatpush.bf16.xpose.msrb.mxu0 %v1009_v46  ;;  %1037 = vmatpush.bf16.xpose.msrb.mxu1 %v1028_v47 }
  0xab   : > { %v855_v49 = vpop.f32.mrf.mxu2  ;;  %v880_v50 = vpop.f32.mrf.mxu3 }
  0xac   : > { %v856_v52 = vadd.f32 %v1736_v44, %v855_v49  ;;  %v881_v53 = vadd.f32 %v1737_v45, %v880_v50  ;;  %v807_v54 = vpop.f32.mrf.mxu0  ;;  %v832_v55 = vpop.f32.mrf.mxu1 }
  0xae   : > { %v1002_v59 = vpack.c.bf16 %v856_v52, %v856_v52  ;;  %v1003_v60 = vpack.c.bf16 %v881_v53, %v881_v53 }
  0xb0   : > { %v1047_v62 = vsel %vm1004_vm1, %v1002_v59, 0  ;;  %v1066_v63 = vsel %vm1004_vm1, %v1003_v60, 0 }
  0xb1   : > { %1056 = vmatpush.bf16.xpose.msrb.mxu2 %v1047_v62  ;;  %1075 = vmatpush.bf16.xpose.msrb.mxu3 %v1066_v63 }
  0xb2   : > { %1650 = vmatmul.msk.bf16.vlgmr.msrb.gmra.mxu0 %vm1004_vm1, %v996_v61  ;;  %1651 = vmatmul.msk.bf16.vlgmr.msrb.gmra.mxu1 %vm1004_vm1, %v997_v56 }
  0xb3   : > { %v857_v2 = vpop.f32.mrf.mxu2  ;;  %v882_v3 = vpop.f32.mrf.mxu3 }
  0xb4   : > { %v917_v8 = vpop.f32.mrf.mxu0  ;;  %v942_v9 = vpop.f32.mrf.mxu1 }
  0xb5   : > { %v918_v10 = vadd.f32 %v1738_v6, %v917_v8  ;;  %v943_v11 = vadd.f32 %v1739_v7, %v942_v9 }
  0xb7   : > { %v1137_v14 = vpack.c.bf16 %v918_v10, %v918_v10  ;;  %v1138_v15 = vpack.c.bf16 %v943_v11, %v943_v11 }
  0xb8   : > { %1652 = vmatmul.msk.bf16.vlgmr.msrb.gmra.mxu2 %vm1004_vm1, %v998_v4  ;;  %1653 = vmatmul.msk.bf16.vlgmr.msrb.gmra.mxu3 %vm1004_vm1, %v999_v5 }
  0xb9   : > { %v1146_v17 = vsel %vm1144_vm2, %v1137_v14, 0  ;;  %v1165_v18 = vsel %vm1144_vm2, %v1138_v15, 0 }
  0xba   : > { %1155 = vmatpush.bf16.msra.mxu0 %v1146_v17  ;;  %1174 = vmatpush.bf16.msra.mxu1 %v1165_v18 }
  0xbb   : > { %v967_v16 = vpop.f32.mrf.mxu2  ;;  %v992_v25 = vpop.f32.mrf.mxu3 }
  0xbc   : > { %v968_v19 = vadd.f32 %v1740_v13, %v967_v16  ;;  %v919_v21 = vpop.f32.mrf.mxu0  ;;  %v944_v22 = vpop.f32.mrf.mxu1  ;;  %v993_v27 = vadd.f32 %v1741_v24, %v992_v25  ;;  %v648_v25 = vld [vmem:[%s2142_s8] sm:$0xf] }
  0xbe   : > { %v1139_v20 = vpack.c.bf16 %v968_v19, %v968_v19  ;;  %v1140_v28 = vpack.c.bf16 %v993_v27, %v993_v27  ;;  %v649_v27 = vld [vmem:[%s2142_s8 + $0x4] sm:$0xf] }
  0xc0   : > { %v1184_v23 = vsel %vm1144_vm2, %v1139_v20, 0  ;;  %v1203_v29 = vsel %vm1144_vm2, %v1140_v28, 0  ;;  %v1245_v28 = vsel %vm1144_vm2, %v649_v27, 0  ;;  %v1744_v27 = vld [vmem:[%s2145_s11] ss:$0 sm:$0xff] }
  0xc1   : > { %1193 = vmatpush.bf16.msra.mxu2 %v1184_v23  ;;  %1212 = vmatpush.bf16.msra.mxu3 %v1203_v29  ;;  %v650_v29 = vld [vmem:[%s2142_s8 + $0x8] sm:$0xf] }
  0xc2   : > { %1254 = vmatpush.bf16.msrb.mxu1 %v1245_v28 }
  0xc3   : > { %v969_v26 = vpop.f32.mrf.mxu2  ;;  %v994_v30 = vpop.f32.mrf.mxu3 }
  0xc4   : > { %v1226_v26 = vsel %vm1144_vm2, %v648_v25, 0  ;;  %v1264_v30 = vsel %vm1144_vm2, %v650_v29, 0  ;;  %v1743_v25 = vld [vmem:[%s2144_s10] ss:$0 sm:$0xff] }
  0xc5   : > { %1235 = vmatpush.bf16.msrb.mxu0 %v1226_v26  ;;  %1273 = vmatpush.bf16.msrb.mxu2 %v1264_v30 }
  0xc6   : > { %1292 = vmatpush.bf16.msrb.mxu3 %v1283_v32  ;;  %v1717_v32 = vld [vmem:[%s2148_s14 + $0x8] sm:$0xff] }
 0x12f   : > { %v1020_v36 = vpop.f32.mrf.mxu0  ;;  %v1039_v37 = vpop.f32.mrf.mxu1 }
 0x130   : > { %v1085_v38 = vsel %vm2032_vm4, %v1020_v36, -1e+10  ;;  %v1086_v40 = vsel %vm2032_vm4, %v1039_v37, -1e+10 }
 0x131   : > { %v1089_v39 = vsel %vm1004_vm1, %v1085_v38, -inf  ;;  %v1092_v43 = vsel %vm1004_vm1, %v1086_v40, -inf }
 0x132   : > { %1090 = vmax.xlane.f32.xlu1 %v1089_v39 }
 0x137   : > { %v1022_v41 = vpop.f32.mrf.mxu0  ;;  %v1041_v42 = vpop.f32.mrf.mxu1 }
 0x13a   : > { %1093 = vmax.xlane.f32.xlu1 %v1092_v43 }
 0x13b   : > { %v1058_v44 = vpop.f32.mrf.mxu2  ;;  %v1077_v45 = vpop.f32.mrf.mxu3 }
 0x13c   : > { %v1087_v46 = vsel %vm2032_vm4, %v1058_v44, -1e+10  ;;  %v1088_v48 = vsel %vm2032_vm4, %v1077_v45, -1e+10 }
 0x13d   : > { %v1095_v47 = vsel %vm1004_vm1, %v1087_v46, -inf  ;;  %v1098_v51 = vsel %vm1004_vm1, %v1088_v48, -inf }
 0x13e   : > { %1096 = vmax.xlane.f32.xlu0 %v1095_v47 }
 0x143   : > { %v1060_v49 = vpop.f32.mrf.mxu2  ;;  %v1079_v50 = vpop.f32.mrf.mxu3 }
 0x146   : > { %1099 = vmax.xlane.f32.xlu0 %v1098_v51 }
 0x1a5   : > { %v1091_v52 = vpop.xlane.xlu1 %1090 }
 0x1a6   : > { %v1101_v53 = vsub.f32 %v1085_v38, %v1091_v52 }
 0x1a8   : > { %v1105_v54 = vmul.f32 1.442695, %v1101_v53 }
 0x1aa   : > { %1749 = vpow2.f32 %v1105_v54 }
 0x1ad   : > { %v1094_v55 = vpop.xlane.xlu1 %1093 }
 0x1ae   : > { %v1102_v56 = vsub.f32 %v1086_v40, %v1094_v55 }
 0x1b0   : > { %v1750_v57 = vpop.eup %1749  ;;  %v1107_v58 = vmul.f32 1.442695, %v1102_v56 }
 0x1b1   : > { %v1097_v59 = vpop.xlane.xlu0 %1096  ;;  %v1113_v60 = vsel %vm1004_vm1, %v1750_v57, 0.0 }
 0x1b2   : > { %1751 = vpow2.f32 %v1107_v58  ;;  %v1103_v61 = vsub.f32 %v1087_v46, %v1097_v59  ;;  %1114 = vadd.xlane.f32.xlu0 %v1113_v60 }
 0x1b4   : > { %v1109_v62 = vmul.f32 1.442695, %v1103_v61 }
 0x1b6   : > { %1753 = vpow2.f32 %v1109_v62 }
 0x1b8   : > { %v1752_v63 = vpop.eup %1751 }
 0x1b9   : > { %v1100_v0 = vpop.xlane.xlu0 %1099  ;;  %v1116_v1 = vsel %vm1004_vm1, %v1752_v63, 0.0 }
 0x1ba   : > { %v1104_v2 = vsub.f32 %v1088_v48, %v1100_v0  ;;  %1117 = vadd.xlane.f32.xlu1 %v1116_v1  ;;  %v1780_v0 = vmov 32.0  }
 0x1bc   : > { %v1754_v3 = vpop.eup %1753  ;;  %v1111_v4 = vmul.f32 1.442695, %v1104_v2 }
 0x1bd   : > { %v1119_v5 = vsel %vm1004_vm1, %v1754_v3, 0.0 }
 0x1be   : > { %1755 = vpow2.f32 %v1111_v4  ;;  %1120 = vadd.xlane.f32.xlu2 %v1119_v5 }
 0x1c4   : > { %v1756_v6 = vpop.eup %1755 }
 0x1c5   : > { %v1122_v7 = vsel %vm1004_vm1, %v1756_v6, 0.0 }
 0x1c6   : > { %1123 = vadd.xlane.f32.xlu2 %v1122_v7 }
 0x225   : > { %v1115_v8 = vpop.xlane.xlu0 %1114 }
 0x226   : > { %1757 = vrcp.f32 %v1115_v8 }
 0x22c   : > { %v1758_v9 = vpop.eup %1757 }
 0x22d   : > { %v1129_v10 = vmul.f32 %v1758_v9, %v1750_v57  ;;  %v1118_v11 = vpop.xlane.xlu1 %1117  ;;  %v1742_v57 = vld [vmem:[%s2143_s9] ss:$0 sm:$0xff] }
 0x22e   : > { %1759 = vrcp.f32 %v1118_v11 }
 0x22f   : > { %v1133_v13 = vpack.c.bf16 %v1129_v10, %v1129_v10 }
 0x231   : > { %v1121_v14 = vpop.xlane.xlu2 %1120  ;;  %1654 = vmatmul.msk.bf16.vlgmr.msra.gmra.mxu0 %vm1004_vm1, %v1133_v13  ;;  %v1714_v13 = vld [vmem:[%s2146_s12] sm:$0xff] }
 0x232   : > { %1761 = vrcp.f32 %v1121_v14  ;;  %v1719_v14 = vld [vmem:[%s2148_s14 + $0x18] sm:$0xff] }
 0x234   : > { %v1760_v15 = vpop.eup %1759 }
 0x235   : > { %v1130_v16 = vmul.f32 %v1760_v15, %v1752_v63 }
 0x237   : > { %v1134_v17 = vpack.c.bf16 %v1130_v16, %v1130_v16 }
 0x238   : > { %v1762_v18 = vpop.eup %1761 }
 0x239   : > { %v1131_v19 = vmul.f32 %v1762_v18, %v1754_v3  ;;  %v1124_v20 = vpop.xlane.xlu2 %1123  ;;  %1655 = vmatmul.msk.bf16.vlgmr.msra.gmra.mxu1 %vm1004_vm1, %v1134_v17  ;;  %v1718_v17 = vld [vmem:[%s2148_s14 + $0x10] sm:$0xff] }
 0x23a   : > { %1763 = vrcp.f32 %v1124_v20  ;;  %1432 = vmatpush.bf16.msra.mxu1 %v1719_v14 }
 0x23b   : > { %v1135_v21 = vpack.c.bf16 %v1131_v19, %v1131_v19  ;;  %1765 = vrcp.f32 %v1780_v0 }
 0x23d   : > { %1656 = vmatmul.msk.bf16.vlgmr.msra.gmra.mxu2 %vm1004_vm1, %v1135_v21 }
 0x23e   : > { %1433 = vmatpush.bf16.msra.mxu1 %v1718_v17 }
 0x240   : > { %v1764_v22 = vpop.eup %1763 }
 0x241   : > { %v1132_v23 = vmul.f32 %v1764_v22, %v1756_v6  ;;  %v1766_v1 = vpop.eup %1765 }
 0x242   : > { %v1314_v2 = vmul.f32 32.0, %v1766_v1  ;;  %vm1318_vm5 = vweird.f32 %v1766_v1  ;;  %1434 = vmatpush.bf16.msra.mxu1 %v1717_v32 }
 0x243   : > { %v1136_v24 = vpack.c.bf16 %v1132_v23, %v1132_v23 }
 0x244   : > { %v1315_v3 = vsub.f32 1.0, %v1314_v2 }
 0x245   : > { %1657 = vmatmul.msk.bf16.vlgmr.msra.gmra.mxu3 %vm1004_vm1, %v1136_v24 }
 0x246   : > { %v1316_v4 = vmul.f32 %v1766_v1, %v1315_v3 }
 0x248   : > { %v1317_v5 = vadd.f32 %v1766_v1, %v1316_v4 }
 0x24a   : > { %v1319_v6 = vsel %vm1318_vm5, %v1766_v1, %v1317_v5 }
 0x2ae   : > { %v1157_v33 = vpop.f32.mrf.mxu0 }
 0x2af   : > { %v1218_v34 = vpack.c.bf16 %v1157_v33, %v1157_v33  ;;  %v1716_v33 = vld [vmem:[%s2148_s14] sm:$0xff] }
 0x2b0   : > { %1435 = vmatpush.bf16.msra.mxu1 %v1716_v33 }
 0x2b1   : > { %1658 = vmatmul.msk.bf16.vlgmr.msrb.gmra.mxu0 %vm1004_vm1, %v1218_v34  ;;  %v1745_v34 = vld [vmem:[%s2147_s13] ss:$0 sm:$0xff] }
 0x2b6   : > { %v1159_v35 = vpop.f32.mrf.mxu0  ;;  %v1176_v36 = vpop.f32.mrf.mxu1 }
 0x2b7   : > { %v1219_v37 = vpack.c.bf16 %v1176_v36, %v1176_v36 }
 0x2b9   : > { %1659 = vmatmul.msk.bf16.vlgmr.msrb.gmra.mxu1 %vm1004_vm1, %v1219_v37 }
 0x2be   : > { %v1178_v38 = vpop.f32.mrf.mxu1 }
 0x2c0   : > { %v1195_v39 = vpop.f32.mrf.mxu2 }
 0x2c1   : > { %v1220_v40 = vpack.c.bf16 %v1195_v39, %v1195_v39 }
 0x2c3   : > { %1660 = vmatmul.msk.bf16.vlgmr.msrb.gmra.mxu2 %vm1004_vm1, %v1220_v40  ;;  %v1746_v40 = vld [vmem:[%s2149_s15] ss:$0 sm:$0xff] }
 0x2c8   : > { %v1197_v41 = vpop.f32.mrf.mxu2  ;;  %v1214_v42 = vpop.f32.mrf.mxu3 }
 0x2c9   : > { %v1221_v43 = vpack.c.bf16 %v1214_v42, %v1214_v42 }
 0x2cb   : > { %1661 = vmatmul.msk.bf16.vlgmr.msrb.gmra.mxu3 %vm1004_vm1, %v1221_v43 }
 0x2d0   : > { %v1216_v44 = vpop.f32.mrf.mxu3 }
 0x32e   : > { %v1237_v45 = vpop.f32.mrf.mxu0 }
 0x32f   : > { %v1298_v51 = vsel %vm680_vm0, %v1237_v45, 0.0 }
 0x336   : > { %v1239_v46 = vpop.f32.mrf.mxu0  ;;  %v1256_v47 = vpop.f32.mrf.mxu1 }
 0x337   : > { %v1299_v50 = vsel %vm680_vm0, %v1256_v47, 0.0 }
 0x338   : > { %v1300_v53 = vadd.f32 %v1299_v50, %v1298_v51 }
 0x33e   : > { %v1258_v48 = vpop.f32.mrf.mxu1 }
 0x346   : > { %v1275_v49 = vpop.f32.mrf.mxu2 }
 0x347   : > { %v1301_v52 = vsel %vm680_vm0, %v1275_v49, 0.0 }
 0x348   : > { %v1302_v54 = vadd.f32 %v1301_v52, %v1300_v53 }
 0x34e   : > { %v1277_v55 = vpop.f32.mrf.mxu2  ;;  %v1294_v56 = vpop.f32.mrf.mxu3 }
 0x34f   : > { %v1303_v58 = vsel %vm680_vm0, %v1294_v56, 0.0 }
 0x350   : > { %v1304_v59 = vadd.f32 %v1303_v58, %v1302_v54 }
 0x352   : > { %v1308_v60 = vadd.f32 %v1742_v57, %v1304_v59 }
 0x354   : > { %v1309_v61 = vadd.f32 %v1308_v60, %v1928_v12  ;;  %v1715_v12 = vld [vmem:[%s2146_s12 + $0x8] sm:$0xff]  ;;  %v1747_v60 = vld [vmem:[%s2150_s16] ss:$0 sm:$0xff] }
 0x355   : > { %1388 = vmatpush.bf16.msra.mxu0 %v1715_v12 }
 0x356   : > { %v1296_v62 = vpop.f32.mrf.mxu3  ;;  %v1310_v63 = vsel %vm680_vm0, %v1309_v61, 0.0 }
 0x357   : > { %1311 = vadd.xlane.f32.xlu2 %v1310_v63  ;;  %v1748_v62 = vld [vmem:[%s2151_s17] ss:$0 sm:$0xff] }
 0x359   : > { %1389 = vmatpush.bf16.msra.mxu0 %v1714_v13 }
 0x3ca   : > { %v1312_v7 = vpop.xlane.xlu2 %1311 }
 0x3cb   : > { %v1320_v8 = vmul.f32 %v1319_v6, %v1312_v7 }
 0x3cd   : > { %v1321_v9 = vsub.f32 %v1309_v61, %v1320_v8 }
 0x3cf   : > { %v1322_v10 = vmul.f32 %v1321_v9, %v1321_v9 }
 0x3d1   : > { %v1323_v11 = vsel %vm680_vm0, %v1322_v10, 0.0 }
 0x3d2   : > { %1324 = vadd.xlane.f32.xlu0 %v1323_v11 }
 0x445   : > { %v1325_v15 = vpop.xlane.xlu0 %1324 }
 0x446   : > { %v1326_v16 = vmul.f32 %v1325_v15, %v1319_v6 }
 0x448   : > { %v1327_v18 = vadd.f32 1e-05, %v1326_v16 }
 0x44a   : > { %1767 = vrsqrt.f32 %v1327_v18  ;;  %vm1334_vm7 = vweird.f32 %v1327_v18 }
 0x450   : > { %v1768_v19 = vpop.eup %1767 }
 0x451   : > { %v1329_v20 = vmul.f32 %v1768_v19, %v1327_v18  ;;  %vm1335_vm6 = vweird.f32 %v1768_v19 }
 0x452   : > { %vm1336_vm8 = vmor %vm1334_vm7, %vm1335_vm6 }
 0x453   : > { %v1330_v21 = vmul.f32 %v1768_v19, %v1329_v20 }
 0x455   : > { %v1331_v22 = vmul.f32 0.5, %v1330_v21 }
 0x457   : > { %v1332_v23 = vsub.f32 1.5, %v1331_v22 }
 0x459   : > { %v1333_v24 = vmul.f32 %v1768_v19, %v1332_v23 }
 0x45b   : > { %v1337_v26 = vsel %vm1336_vm8, %v1768_v19, %v1333_v24 }
 0x45c   : > { %v1338_v28 = vmul.f32 %v1337_v26, %v1321_v9 }
 0x45e   : > { %v1342_v29 = vmul.f32 %v1743_v25, %v1338_v28 }
 0x460   : > { %v1346_v30 = vadd.f32 %v1744_v27, %v1342_v29 }
 0x462   : > { %v1363_v31 = vpack.c.bf16 %v1346_v30, %v1346_v30 }
 0x464   : > { %1670 = vmatmul.msk.bf16.vlgmr.msra.gmra.mxu0 %vm680_vm0, %v1363_v31 }
 0x4e1   : > { %v1391_v35 = vpop.f32.mrf.mxu0 }
 0x4e2   : > { %v1392_v36 = vadd.f32 %v1745_v34, %v1391_v35 }
 0x4e4   : > { %v1395_v37 = vmax.f32 %v1392_v36, 0.0 }
 0x4e6   : > { %v1396_v38 = vpack.c.bf16 %v1395_v37, %v1395_v37 }
 0x4e8   : > { %1687 = vmatmul.msk.bf16.vlgmr.msra.gmra.mxu1 %vm1424_vm9, %v1396_v38 }
 0x4e9   : > { %v1393_v39 = vpop.f32.mrf.mxu0 }
 0x565   : > { %v1437_v41 = vpop.f32.mrf.mxu1 }
 0x566   : > { %v1438_v42 = vadd.f32 %v1746_v40, %v1437_v41 }
 0x568   : > { %v1441_v43 = vadd.f32 %v1438_v42, %v1346_v30 }
 0x56a   : > { %v1442_v44 = vsel %vm680_vm0, %v1441_v43, 0.0 }
 0x56b   : > { %1443 = vadd.xlane.f32.xlu1 %v1442_v44 }
 0x56d   : > { %v1439_v45 = vpop.f32.mrf.mxu1 }
 0x5de   : > { %v1444_v46 = vpop.xlane.xlu1 %1443 }
 0x5df   : > { %v1445_v47 = vmul.f32 %v1444_v46, %v1319_v6 }
 0x5e1   : > { %v1446_v48 = vsub.f32 %v1441_v43, %v1445_v47 }
 0x5e3   : > { %v1447_v49 = vmul.f32 %v1446_v48, %v1446_v48 }
 0x5e5   : > { %v1448_v50 = vsel %vm680_vm0, %v1447_v49, 0.0 }
 0x5e6   : > { %1449 = vadd.xlane.f32.xlu2 %v1448_v50 }
 0x659   : > { %v1450_v51 = vpop.xlane.xlu2 %1449 }
 0x65a   : > { %v1451_v52 = vmul.f32 %v1450_v51, %v1319_v6 }
 0x65c   : > { %v1452_v53 = vadd.f32 1e-05, %v1451_v52 }
 0x65e   : > { %1769 = vrsqrt.f32 %v1452_v53  ;;  %vm1459_vm11 = vweird.f32 %v1452_v53 }
 0x664   : > { %v1770_v54 = vpop.eup %1769 }
 0x665   : > { %v1454_v55 = vmul.f32 %v1770_v54, %v1452_v53  ;;  %vm1460_vm10 = vweird.f32 %v1770_v54 }
 0x666   : > { %vm1461_vm12 = vmor %vm1459_vm11, %vm1460_vm10 }
 0x667   : > { %v1455_v56 = vmul.f32 %v1770_v54, %v1454_v55 }
 0x669   : > { %v1456_v57 = vmul.f32 0.5, %v1455_v56 }
 0x66b   : > { %v1457_v58 = vsub.f32 1.5, %v1456_v57 }
 0x66d   : > { %v1458_v59 = vmul.f32 %v1770_v54, %v1457_v58 }
 0x66f   : > { %v1462_v61 = vsel %vm1461_vm12, %v1770_v54, %v1458_v59 }
 0x670   : > { %v1463_v63 = vmul.f32 %v1462_v61, %v1446_v48 }
 0x672   : > { %v1467_v0 = vmul.f32 %v1747_v60, %v1463_v63 }
 0x674   : > { %v1471_v1 = vadd.f32 %v1748_v62, %v1467_v0 }
 0x676   : > { %1472 = vst.msk [vmem:[%s584_s27] sm:$0xff] %vm680_vm0, %v1471_v1 }
 0x677 PF: > { %s2164_s24 = sld [smem:[#allocation2_spill]] }
 0x67d   : > { %s28_s27 = sadd.s32 1, %s2164_s24  }
 0x67e   : > { %p25_p4 = scmp.ge.s32.totalorder %s28_s27, 4  }
 0x680   :  { %27 = sbr.rel (!%p25_p4) target bundleno = 4 (0x4), region = 125 }

// kernel: seq2seq_forward.7
= control target key start
LH: loop header
LB: loop body
LE: loop exit
PB: predicated region body
PF: predicated region fallthrough
CT: control target
= control target key end

     0   :  { %s3187_s6 = smov 1   ;;  %s3188_s10 = smov 2   ;;  %s3649_s0 = inlined_call_operand.smem [shape: u32[31], index: -1, kind: input, shape index: {}] }
   0x1   :  { %s3227_s5 = sld [smem:[%s3649_s0]]   ;;  %s3189_s14 = smov 3  }
   0x2   :  { %s3232_s9 = sld [smem:[%s3649_s0 + %s3187_s6]]   ;;  %s3190_s18 = smov 4  }
   0x3   :  { %s3237_s13 = sld [smem:[%s3649_s0 + %s3188_s10]]   ;;  %s3191_s22 = smov 5  }
   0x4   :  { %s3242_s17 = sld [smem:[%s3649_s0 + %s3189_s14]]   ;;  %s3192_s26 = smov 6  }
   0x5   :  { %s3247_s21 = sld [smem:[%s3649_s0 + %s3190_s18]]   ;;  %s3193_s30 = smov 7  }
   0x6   :  { %s3252_s25 = sld [smem:[%s3649_s0 + %s3191_s22]]   ;;  %s3194_s4 = smov 8  }
   0x7   :  { %s3257_s29 = sld [smem:[%s3649_s0 + %s3192_s26]]   ;;  %s3195_s10 = smov 9  }
   0x8   :  { %3657 = sst [smem:[#allocation2_spill]] %s3232_s9  ;;  %s3196_s15 = smov 10  }
   0x9   :  { %s3262_s3 = sld [smem:[%s3649_s0 + %s3193_s30]]   ;;  %s3197_s20 = smov 11  }
   0xa   :  { %3658 = sst [smem:[#allocation3_spill]] %s3242_s17  ;;  %s3198_s26 = smov 12  }
   0xb   :  { %s3267_s8 = sld [smem:[%s3649_s0 + %s3194_s4]]   ;;  %s3199_s1 = smov 13  }
   0xc   :  { %s3272_s14 = sld [smem:[%s3649_s0 + %s3195_s10]]   ;;  %s3200_s7 = smov 14  }
   0xd   :  { %s3277_s19 = sld [smem:[%s3649_s0 + %s3196_s15]]   ;;  %s3201_s15 = smov 15  }
   0xe   :  { %s3282_s24 = sld [smem:[%s3649_s0 + %s3197_s20]]   ;;  %s3202_s22 = smov 16  }
   0xf   :  { %s3287_s30 = sld [smem:[%s3649_s0 + %s3198_s26]]   ;;  %s3203_s28 = smov 17  }
  0x10   :  { %s3292_s6 = sld [smem:[%s3649_s0 + %s3199_s1]]  }
  0x11   :  { %s3297_s12 = sld [smem:[%s3649_s0 + %s3200_s7]]   ;;  %s3204_s7 = smov 18  }
  0x12   :  { %s3302_s20 = sld [smem:[%s3649_s0 + %s3201_s15]]   ;;  %s3205_s15 = smov 19  }
  0x13   :  { %s3307_s27 = sld [smem:[%s3649_s0 + %s3202_s22]]   ;;  %s3206_s22 = smov 20  }
  0x14   :  { %s3312_s4 = sld [smem:[%s3649_s0 + %s3203_s28]]   ;;  %s3207_s28 = smov 21  }
  0x15   :  { %s3317_s17 = sld [smem:[%s3649_s0 + %s3204_s7]]   ;;  %s3208_s7 = smov 22  }
  0x16   :  { %s3327_s9 = sld [smem:[%s3649_s0 + %s3206_s22]]   ;;  %s3210_s22 = smov 24  }
  0x18   :  { %3659 = sst [smem:[#allocation4_spill]] %s3302_s20 }
  0x19   :  { %s3322_s20 = sld [smem:[%s3649_s0 + %s3205_s15]]   ;;  %s3209_s15 = smov 23  }
  0x1a   :  { %3660 = sst [smem:[#allocation5_spill]] %s3312_s4 }
  0x1b   :  { %3661 = sst [smem:[#allocation6_spill]] %s3317_s17 }
  0x1c   :  { %3663 = sst [smem:[#allocation8_spill]] %s3327_s9 }
  0x1d   :  { %s3332_s4 = sld [smem:[%s3649_s0 + %s3207_s28]]   ;;  %s3211_s28 = smov 25  }
  0x1e   :  { %s3337_s17 = sld [smem:[%s3649_s0 + %s3208_s7]]   ;;  %s3212_s7 = smov 26  }
  0x1f   :  { %3662 = sst [smem:[#allocation7_spill]] %s3322_s20 }
  0x20   :  { %s3342_s20 = sld [smem:[%s3649_s0 + %s3209_s15]]   ;;  %s3213_s15 = smov 27  }
  0x21   :  { %s3347_s9 = sld [smem:[%s3649_s0 + %s3210_s22]]   ;;  %s3214_s22 = smov 28  }
  0x23   :  { %3664 = sst [smem:[#allocation9_spill]] %s3332_s4 }
  0x24   :  { %3665 = sst [smem:[#allocation10_spill]] %s3337_s17 }
  0x25   :  { %s3352_s4 = sld [smem:[%s3649_s0 + %s3211_s28]]   ;;  %s3215_s28 = smov 29  }
  0x26   :  { %3666 = sst [smem:[#allocation11_spill]] %s3342_s20 }
  0x27   :  { %3667 = sst [smem:[#allocation12_spill]] %s3347_s9 }
  0x28   :  { %s3357_s17 = sld [smem:[%s3649_s0 + %s3212_s7]]   ;;  %s3216_s7 = smov 30  }
  0x29   :  { %s3362_s20 = sld [smem:[%s3649_s0 + %s3213_s15]]   ;;  %s3379_s15 = smov 0  }
  0x2a   :  { %s3367_s9 = sld [smem:[%s3649_s0 + %s3214_s22]]  }
  0x2b   :  { %3668 = sst [smem:[#allocation13_spill]] %s3352_s4 }
  0x2c   :  { %s3372_s4 = sld [smem:[%s3649_s0 + %s3215_s28]]  }
  0x2e   :  { %3669 = sst [smem:[#allocation14_spill]] %s3357_s17 }
  0x2f   :  { %s3377_s17 = sld [smem:[%s3649_s0 + %s3216_s7]]  }
  0x30 LB: > { %s2735_s16 = sadd.s32 4294967295, %s3185_s15   ;;  %p2739_p0 = scmp.ge.s32.totalorder %s3185_s15, 1  ;;  %s3185_s15 = sphi %s3379_s15, %s71_s15  }
  0x31   : > { %p867_p1 = scmp.lt.s32.totalorder %s3185_s15, 3 }
  0x33   : > { %p868_p2 = pnand %p2739_p0, %p867_p1 }
  0x34   : > { %p953_p3 = scmp.lt.s32.totalorder (!%p868_p2), %s2735_s16, 1  ;;  %s3672_s23 = sld [smem:[#allocation2_spill]] (!%p868_p2) }
  0x35   : > { %871 = sbr.rel (%p868_p2) target bundleno = 2795 (0xaeb), region = 140  ;;  %s3673_s26 = sld [smem:[#allocation6_spill]] (!%p868_p2) }
  0x36   : > { %s3674_s1 = sld [smem:[#allocation5_spill]] (!%p868_p2) }
  0x37   : > { %s3675_s2 = sld [smem:[#allocation4_spill]] (!%p868_p2) }
  0x38   : > { %s3676_s7 = sld [smem:[#allocation7_spill]] (!%p868_p2) }
  0x39   : > { %s3677_s10 = sld [smem:[#allocation3_spill]] (!%p868_p2) }
  0x3a   : > { %v3012_v0 = vld [vmem:[%s3247_s21 + $0x8] sm:$0xff]  ;;  %v3014_v1 = vld [vmem:[%s3247_s21 + $0x18] sm:$0xff]  ;;  %v3011_v4 = vld [vmem:[%s3247_s21] sm:$0xff]  ;;  %s3688_s16 = smov (!%p953_p3, %s2735_s16), 1  ;;  %vm1068_vm0 = vcmask 261120   ;;  %vm1392_vm1 = vcmask 64512  }
  0x3b   : > { %v3016_v2 = vld [vmem:[%s3247_s21 + $0x28] sm:$0xff]  ;;  %v3018_v3 = vld [vmem:[%s3247_s21 + $0x38] sm:$0xff]  ;;  %1078 = vmatpush.bf16.msra.mxu0 %v3012_v0  ;;  %1103 = vmatpush.bf16.msra.mxu1 %v3014_v1  ;;  %v3013_v5 = vld [vmem:[%s3247_s21 + $0x10] sm:$0xff]  ;;  %s3398_s0 = sshll.u32 %s3688_s16, 3  ;;  %vm1540_vm2 = vcmask 1043456   ;;  %s963_s22 = scalar_lea.vmem %s3237_s13, %s3688_s16 }
  0x3c   : > { %1128 = vmatpush.bf16.msra.mxu2 %v3016_v2  ;;  %1153 = vmatpush.bf16.msra.mxu3 %v3018_v3  ;;  %v3015_v6 = vld [vmem:[%s3247_s21 + $0x20] sm:$0xff]  ;;  %v3017_v7 = vld [vmem:[%s3247_s21 + $0x30] sm:$0xff]  ;;  %v3020_v8 = vld [vmem:[%s3257_s29 + $0x8] sm:$0xff]  ;;  %s956_s18 = scalar_lea.vmem %s3227_s5, %s3398_s0  ;;  %s960_s28 = scalar_lea.vmem %s3672_s23, %s3398_s0 }
  0x3d   : > { %v3022_v9 = vld [vmem:[%s3257_s29 + $0x18] sm:$0xff]  ;;  %v3024_v10 = vld [vmem:[%s3257_s29 + $0x28] sm:$0xff]  ;;  %v3406_v12 = vld [vmem:[%s956_s18] sm:$0xff]  ;;  %s3681_s18 = sld [smem:[#allocation9_spill]] }
  0x3e   : > { %v3026_v11 = vld [vmem:[%s3257_s29 + $0x38] sm:$0xff]  ;;  %v3019_v13 = vld [vmem:[%s3257_s29] sm:$0xff]  ;;  %v3021_v14 = vld [vmem:[%s3257_s29 + $0x10] sm:$0xff]  ;;  %v1043_v15 = vpack.c.bf16 %v3406_v12, %v3406_v12  ;;  %s3683_s23 = sld [smem:[#allocation14_spill]] }
  0x3f   : > { %1079 = vmatpush.bf16.msra.mxu0 %v3011_v4  ;;  %1104 = vmatpush.bf16.msra.mxu1 %v3013_v5  ;;  %v3023_v16 = vld [vmem:[%s3257_s29 + $0x20] sm:$0xff]  ;;  %v3025_v17 = vld [vmem:[%s3257_s29 + $0x30] sm:$0xff]  ;;  %v3032_v18 = vld [vmem:[%s3267_s8 + $0x28] sm:$0xff]  ;;  %s966_s11 = scalar_lea.vmem %s3677_s10, %s3688_s16  ;;  %s3680_s16 = sld [smem:[#allocation8_spill]] }
  0x40   : > { %1129 = vmatpush.bf16.msra.mxu2 %v3015_v6  ;;  %1154 = vmatpush.bf16.msra.mxu3 %v3017_v7  ;;  %v3028_v19 = vld [vmem:[%s3267_s8 + $0x8] sm:$0xff]  ;;  %v3030_v20 = vld [vmem:[%s3267_s8 + $0x18] sm:$0xff]  ;;  %v3031_v21 = vld [vmem:[%s3267_s8 + $0x20] sm:$0xff]  ;;  %s3685_s10 = sld [smem:[#allocation11_spill]] }
  0x41   : > { %v3027_v22 = vld [vmem:[%s3267_s8] sm:$0xff]  ;;  %v3029_v23 = vld [vmem:[%s3267_s8 + $0x10] sm:$0xff]  ;;  %v3034_v24 = vld [vmem:[%s3267_s8 + $0x38] sm:$0xff] }
  0x42   : > { %2751 = vmatmul.msk.bf16.vlgmr.msra.gmra.mxu0 %vm1068_vm0, %v1043_v15  ;;  %2760 = vmatmul.msk.bf16.vlgmr.msra.gmra.mxu1 %vm1068_vm0, %v1043_v15  ;;  %v3033_v25 = vld [vmem:[%s3267_s8 + $0x30] sm:$0xff]  ;;  %v3109_v32 = vld [vmem:[%s3262_s3] ss:$0 sm:$0xff]  ;;  %v3110_v33 = vld [vmem:[%s3262_s3 + $0x1] ss:$0 sm:$0xff] }
  0x43   : > { %1190 = vmatpush.bf16.msrb.mxu0 %v3020_v8  ;;  %1215 = vmatpush.bf16.msrb.mxu1 %v3022_v9  ;;  %v3106_v40 = vld [vmem:[%s3252_s25 + $0x1] ss:$0 sm:$0xff]  ;;  %v3105_v43 = vld [vmem:[%s3252_s25] ss:$0 sm:$0xff]  ;;  %v3111_v44 = vld [vmem:[%s3262_s3 + $0x2] ss:$0 sm:$0xff] }
  0x44   : > { %2769 = vmatmul.msk.bf16.vlgmr.msra.gmra.mxu2 %vm1068_vm0, %v1043_v15  ;;  %2778 = vmatmul.msk.bf16.vlgmr.msra.gmra.mxu3 %vm1068_vm0, %v1043_v15  ;;  %v3112_v45 = vld [vmem:[%s3262_s3 + $0x3] ss:$0 sm:$0xff]  ;;  %v3107_v57 = vld [vmem:[%s3252_s25 + $0x2] ss:$0 sm:$0xff]  ;;  %v3113_v6 = vld [vmem:[%s3272_s14] ss:$0 sm:$0xff] }
  0x45   : > { %1240 = vmatpush.bf16.msrb.mxu2 %v3024_v10  ;;  %1265 = vmatpush.bf16.msrb.mxu3 %v3026_v11  ;;  %v3108_v58 = vld [vmem:[%s3252_s25 + $0x3] ss:$0 sm:$0xff]  ;;  %v3114_v7 = vld [vmem:[%s3272_s14 + $0x1] ss:$0 sm:$0xff] }
  0x47   : > { %1191 = vmatpush.bf16.msrb.mxu0 %v3019_v13  ;;  %1216 = vmatpush.bf16.msrb.mxu1 %v3021_v14  ;;  %v3115_v13 = vld [vmem:[%s3272_s14 + $0x2] ss:$0 sm:$0xff] }
  0x49   : > { %1241 = vmatpush.bf16.msrb.mxu2 %v3023_v16  ;;  %1266 = vmatpush.bf16.msrb.mxu3 %v3025_v17 }
  0x4b   : > { %1302 = vmatpush.bf16.msra.mxu0 %v3028_v19  ;;  %1327 = vmatpush.bf16.msra.mxu1 %v3030_v20 }
  0x4d   : > { %1352 = vmatpush.bf16.msra.mxu2 %v3032_v18  ;;  %1377 = vmatpush.bf16.msra.mxu3 %v3034_v24  ;;  %v3116_v24 = vld [vmem:[%s3272_s14 + $0x3] ss:$0 sm:$0xff] }
  0x4f   : > { %1303 = vmatpush.bf16.msra.mxu0 %v3027_v22  ;;  %1328 = vmatpush.bf16.msra.mxu1 %v3029_v23 }
  0x51   : > { %1353 = vmatpush.bf16.msra.mxu2 %v3031_v21  ;;  %1378 = vmatpush.bf16.msra.mxu3 %v3033_v25 }
  0x52   : > { %2787 = vmatmul.msk.bf16.vlgmr.msrb.gmra.mxu0 %vm1068_vm0, %v1043_v15  ;;  %2796 = vmatmul.msk.bf16.vlgmr.msrb.gmra.mxu1 %vm1068_vm0, %v1043_v15 }
  0x54   : > { %2805 = vmatmul.msk.bf16.vlgmr.msrb.gmra.mxu2 %vm1068_vm0, %v1043_v15  ;;  %2814 = vmatmul.msk.bf16.vlgmr.msrb.gmra.mxu3 %vm1068_vm0, %v1043_v15 }
  0x62   : > { %2823 = vmatmul.msk.bf16.vlgmr.msra.gmra.mxu0 %vm1068_vm0, %v1043_v15  ;;  %2832 = vmatmul.msk.bf16.vlgmr.msra.gmra.mxu1 %vm1068_vm0, %v1043_v15 }
  0x64   : > { %2841 = vmatmul.msk.bf16.vlgmr.msra.gmra.mxu2 %vm1068_vm0, %v1043_v15  ;;  %2850 = vmatmul.msk.bf16.vlgmr.msra.gmra.mxu3 %vm1068_vm0, %v1043_v15 }
  0xbf   : > { %v1081_v26 = vpop.f32.mrf.mxu0  ;;  %v1106_v27 = vpop.f32.mrf.mxu1 }
  0xc0   : > { %v1107_v48 = vadd.f32 %v3106_v40, %v1106_v27  ;;  %v1082_v51 = vadd.f32 %v3105_v43, %v1081_v26 }
  0xc2   : > { %v1385_v56 = vpack.c.bf16 %v1107_v48, %v1107_v48  ;;  %v1384_v61 = vpack.c.bf16 %v1082_v51, %v1082_v51 }
  0xc7   : > { %v1131_v28 = vpop.f32.mrf.mxu2  ;;  %v1156_v29 = vpop.f32.mrf.mxu3 }
  0xc8   : > { %v1083_v30 = vpop.f32.mrf.mxu0  ;;  %v1108_v31 = vpop.f32.mrf.mxu1  ;;  %v1132_v0 = vadd.f32 %v3107_v57, %v1131_v28  ;;  %v1157_v1 = vadd.f32 %v3108_v58, %v1156_v29 }
  0xc9   : > { %v974_v31 = vld [vmem:[%s963_s22] sm:$0x1]  ;;  %s3682_s22 = sld [smem:[#allocation12_spill]] }
  0xca   : > { %v1386_v4 = vpack.c.bf16 %v1132_v0, %v1132_v0  ;;  %v1387_v5 = vpack.c.bf16 %v1157_v1, %v1157_v1  ;;  %vm1469_vm3 = vcmp.gt.f32.partialorder %v974_v31, 0.0 }
  0xcf   : > { %v1133_v34 = vpop.f32.mrf.mxu2  ;;  %v1158_v35 = vpop.f32.mrf.mxu3 }
  0xd0   : > { %v1193_v36 = vpop.f32.mrf.mxu0  ;;  %v1218_v37 = vpop.f32.mrf.mxu1 }
  0xd1   : > { %v1194_v38 = vadd.f32 %v3109_v32, %v1193_v36  ;;  %v1219_v39 = vadd.f32 %v3110_v33, %v1218_v37  ;;  %v1470_v32 = vlaneseq  ;;  %v3217_v33 = vmov 0  }
  0xd2   : > { %v1475_v34 = vsel %vm1469_vm3, 1, %v3217_v33 }
  0xd3   : > { %v1388_v41 = vpack.c.bf16 %v1194_v38, %v1194_v38  ;;  %v1389_v42 = vpack.c.bf16 %v1219_v39, %v1219_v39  ;;  %v1471_v35 = vshrl.u32 %v1470_v32, 7  ;;  %v1473_v36 = vand.u32 127, %v1470_v32  ;;  %v1038_v32 = vld [vmem:[%s3277_s19 + $0x8] sm:$0xf] }
  0xd4   : > { %v1476_v37 = vperm.slane %v1475_v34, 0  ;;  %v1660_v34 = vsel %vm1540_vm2, %v1038_v32, 0 }
  0xd5   : > { %v1397_v46 = vsel %vm1392_vm1, %v1388_v41, 0  ;;  %v1416_v47 = vsel %vm1392_vm1, %v1389_v42, 0  ;;  %vm1474_vm4 = vcmp.le.s32.totalorder %v1473_v36, %v1471_v35  ;;  %v1039_v35 = vld [vmem:[%s3277_s19 + $0xc] sm:$0xf] }
  0xd6   : > { %1406 = vmatpush.bf16.xpose.msrb.mxu0 %v1397_v46  ;;  %1425 = vmatpush.bf16.xpose.msrb.mxu1 %v1416_v47  ;;  %vm1477_vm5 = vcmp.eq.s32.totalorder %v1476_v37, 1  ;;  %v1679_v36 = vsel %vm1540_vm2, %v1039_v35, 0  ;;  %v3049_v35 = vld [vmem:[%s3307_s27 + $0x30] sm:$0xff] }
  0xd7   : > { %v1243_v49 = vpop.f32.mrf.mxu2  ;;  %v1268_v50 = vpop.f32.mrf.mxu3  ;;  %vm3461_vm6 = vmand %vm1477_vm5, %vm1474_vm4 }
  0xd8   : > { %v1244_v52 = vadd.f32 %v3111_v44, %v1243_v49  ;;  %v1269_v53 = vadd.f32 %v3112_v45, %v1268_v50  ;;  %v1195_v54 = vpop.f32.mrf.mxu0  ;;  %v1220_v55 = vpop.f32.mrf.mxu1 }
  0xda   : > { %v1390_v59 = vpack.c.bf16 %v1244_v52, %v1244_v52  ;;  %v1391_v60 = vpack.c.bf16 %v1269_v53, %v1269_v53 }
  0xdc   : > { %v1435_v62 = vsel %vm1392_vm1, %v1390_v59, 0  ;;  %v1454_v63 = vsel %vm1392_vm1, %v1391_v60, 0 }
  0xdd   : > { %1444 = vmatpush.bf16.xpose.msrb.mxu2 %v1435_v62  ;;  %1463 = vmatpush.bf16.xpose.msrb.mxu3 %v1454_v63 }
  0xde   : > { %2851 = vmatmul.msk.bf16.vlgmr.msrb.gmra.mxu0 %vm1392_vm1, %v1384_v61  ;;  %2852 = vmatmul.msk.bf16.vlgmr.msrb.gmra.mxu1 %vm1392_vm1, %v1385_v56 }
  0xdf   : > { %v1245_v2 = vpop.f32.mrf.mxu2  ;;  %v1270_v3 = vpop.f32.mrf.mxu3 }
  0xe0   : > { %v1305_v8 = vpop.f32.mrf.mxu0  ;;  %v1330_v9 = vpop.f32.mrf.mxu1 }
  0xe1   : > { %v1306_v10 = vadd.f32 %v3113_v6, %v1305_v8  ;;  %v1331_v11 = vadd.f32 %v3114_v7, %v1330_v9 }
  0xe3   : > { %v1533_v14 = vpack.c.bf16 %v1306_v10, %v1306_v10  ;;  %v1534_v15 = vpack.c.bf16 %v1331_v11, %v1331_v11 }
  0xe4   : > { %2853 = vmatmul.msk.bf16.vlgmr.msrb.gmra.mxu2 %vm1392_vm1, %v1386_v4  ;;  %2854 = vmatmul.msk.bf16.vlgmr.msrb.gmra.mxu3 %vm1392_vm1, %v1387_v5 }
  0xe5   : > { %v1542_v17 = vsel %vm1540_vm2, %v1533_v14, 0  ;;  %v1561_v18 = vsel %vm1540_vm2, %v1534_v15, 0 }
  0xe6   : > { %1551 = vmatpush.bf16.msra.mxu0 %v1542_v17  ;;  %1570 = vmatpush.bf16.msra.mxu1 %v1561_v18 }
  0xe7   : > { %v1355_v16 = vpop.f32.mrf.mxu2  ;;  %v1380_v26 = vpop.f32.mrf.mxu3 }
  0xe8   : > { %v1356_v19 = vadd.f32 %v3115_v13, %v1355_v16  ;;  %v1307_v21 = vpop.f32.mrf.mxu0  ;;  %v1332_v22 = vpop.f32.mrf.mxu1  ;;  %v1381_v27 = vadd.f32 %v3116_v24, %v1380_v26 }
  0xea   : > { %v1535_v20 = vpack.c.bf16 %v1356_v19, %v1356_v19  ;;  %v1536_v28 = vpack.c.bf16 %v1381_v27, %v1381_v27 }
  0xec   : > { %v1580_v23 = vsel %vm1540_vm2, %v1535_v20, 0  ;;  %v1599_v29 = vsel %vm1540_vm2, %v1536_v28, 0  ;;  %v1036_v28 = vld [vmem:[%s3277_s19] sm:$0xf] }
  0xed   : > { %1589 = vmatpush.bf16.msra.mxu2 %v1580_v23  ;;  %1608 = vmatpush.bf16.msra.mxu3 %v1599_v29  ;;  %v1622_v29 = vsel %vm1540_vm2, %v1036_v28, 0 }
  0xee   : > { %1631 = vmatpush.bf16.msrb.mxu0 %v1622_v29  ;;  %v3050_v29 = vld [vmem:[%s3307_s27 + $0x38] sm:$0xff] }
  0xef   : > { %v1357_v25 = vpop.f32.mrf.mxu2  ;;  %v1382_v30 = vpop.f32.mrf.mxu3 }
  0xf0   : > { %v1037_v30 = vld [vmem:[%s3277_s19 + $0x4] sm:$0xf] }
  0xf1   : > { %v1641_v31 = vsel %vm1540_vm2, %v1037_v30, 0  ;;  %1669 = vmatpush.bf16.msrb.mxu2 %v1660_v34  ;;  %1688 = vmatpush.bf16.msrb.mxu3 %v1679_v36  ;;  %v3043_v30 = vld [vmem:[%s3307_s27] sm:$0xff] }
  0xf2   : > { %1650 = vmatpush.bf16.msrb.mxu1 %v1641_v31  ;;  %v3045_v31 = vld [vmem:[%s3307_s27 + $0x10] sm:$0xff]  ;;  %v3047_v34 = vld [vmem:[%s3307_s27 + $0x20] sm:$0xff] }
 0x15b   : > { %v1408_v39 = vpop.f32.mrf.mxu0  ;;  %v1427_v40 = vpop.f32.mrf.mxu1 }
 0x15c   : > { %v1481_v41 = vsel %vm3461_vm6, %v1408_v39, -1e+10  ;;  %v1482_v43 = vsel %vm3461_vm6, %v1427_v40, -1e+10 }
 0x15d   : > { %v1485_v42 = vsel %vm1392_vm1, %v1481_v41, -inf  ;;  %v1488_v46 = vsel %vm1392_vm1, %v1482_v43, -inf }
 0x15e   : > { %1486 = vmax.xlane.f32.xlu1 %v1485_v42 }
 0x163   : > { %v1410_v44 = vpop.f32.mrf.mxu0  ;;  %v1429_v45 = vpop.f32.mrf.mxu1 }
 0x166   : > { %1489 = vmax.xlane.f32.xlu1 %v1488_v46 }
 0x167   : > { %v1446_v47 = vpop.f32.mrf.mxu2  ;;  %v1465_v48 = vpop.f32.mrf.mxu3 }
 0x168   : > { %v1483_v49 = vsel %vm3461_vm6, %v1446_v47, -1e+10  ;;  %v1484_v51 = vsel %vm3461_vm6, %v1465_v48, -1e+10 }
 0x169   : > { %v1491_v50 = vsel %vm1392_vm1, %v1483_v49, -inf  ;;  %v1494_v54 = vsel %vm1392_vm1, %v1484_v51, -inf }
 0x16a   : > { %1492 = vmax.xlane.f32.xlu0 %v1491_v50 }
 0x16f   : > { %v1448_v52 = vpop.f32.mrf.mxu2  ;;  %v1467_v53 = vpop.f32.mrf.mxu3 }
 0x172   : > { %1495 = vmax.xlane.f32.xlu0 %v1494_v54 }
 0x1d1   : > { %v1487_v55 = vpop.xlane.xlu1 %1486 }
 0x1d2   : > { %v1497_v56 = vsub.f32 %v1481_v41, %v1487_v55 }
 0x1d4   : > { %v1501_v57 = vmul.f32 1.442695, %v1497_v56 }
 0x1d6   : > { %3139 = vpow2.f32 %v1501_v57 }
 0x1d9   : > { %v1490_v58 = vpop.xlane.xlu1 %1489 }
 0x1da   : > { %v1498_v59 = vsub.f32 %v1482_v43, %v1490_v58 }
 0x1dc   : > { %v3140_v60 = vpop.eup %3139  ;;  %v1503_v61 = vmul.f32 1.442695, %v1498_v59 }
 0x1dd   : > { %v1493_v62 = vpop.xlane.xlu0 %1492  ;;  %v1509_v63 = vsel %vm1392_vm1, %v3140_v60, 0.0 }
 0x1de   : > { %3141 = vpow2.f32 %v1503_v61  ;;  %v1499_v0 = vsub.f32 %v1483_v49, %v1493_v62  ;;  %1510 = vadd.xlane.f32.xlu0 %v1509_v63  ;;  %v3117_v61 = vld [vmem:[%s3282_s24] ss:$0 sm:$0xff] }
 0x1e0   : > { %v1505_v1 = vmul.f32 1.442695, %v1499_v0 }
 0x1e2   : > { %3143 = vpow2.f32 %v1505_v1 }
 0x1e4   : > { %v3142_v2 = vpop.eup %3141 }
 0x1e5   : > { %v1496_v3 = vpop.xlane.xlu0 %1495  ;;  %v1512_v4 = vsel %vm1392_vm1, %v3142_v2, 0.0 }
 0x1e6   : > { %v1500_v5 = vsub.f32 %v1484_v51, %v1496_v3  ;;  %1513 = vadd.xlane.f32.xlu1 %v1512_v4  ;;  %v3218_v4 = vmov 32.0  }
 0x1e8   : > { %v3144_v6 = vpop.eup %3143  ;;  %v1507_v7 = vmul.f32 1.442695, %v1500_v5 }
 0x1e9   : > { %v1515_v8 = vsel %vm1392_vm1, %v3144_v6, 0.0 }
 0x1ea   : > { %3145 = vpow2.f32 %v1507_v7  ;;  %1516 = vadd.xlane.f32.xlu2 %v1515_v8 }
 0x1f0   : > { %v3146_v9 = vpop.eup %3145 }
 0x1f1   : > { %v1518_v10 = vsel %vm1392_vm1, %v3146_v9, 0.0 }
 0x1f2   : > { %1519 = vadd.xlane.f32.xlu2 %v1518_v10 }
 0x251   : > { %v1511_v11 = vpop.xlane.xlu0 %1510 }
 0x252   : > { %3147 = vrcp.f32 %v1511_v11 }
 0x258   : > { %v3148_v13 = vpop.eup %3147 }
 0x259   : > { %v1525_v14 = vmul.f32 %v3148_v13, %v3140_v60  ;;  %v1514_v15 = vpop.xlane.xlu1 %1513 }
 0x25a   : > { %3149 = vrcp.f32 %v1514_v15 }
 0x25b   : > { %v1529_v16 = vpack.c.bf16 %v1525_v14, %v1525_v14 }
 0x25d   : > { %v1517_v17 = vpop.xlane.xlu2 %1516  ;;  %2855 = vmatmul.msk.bf16.vlgmr.msra.gmra.mxu0 %vm1392_vm1, %v1529_v16  ;;  %v3036_v16 = vld [vmem:[%s3297_s12 + $0x8] sm:$0xff] }
 0x25e   : > { %3151 = vrcp.f32 %v1517_v17  ;;  %v3038_v17 = vld [vmem:[%s3297_s12 + $0x18] sm:$0xff]  ;;  %1844 = vmatpush.bf16.msra.mxu0 %v3036_v16 }
 0x260   : > { %v3150_v18 = vpop.eup %3149 }
 0x261   : > { %v1526_v19 = vmul.f32 %v3150_v18, %v3142_v2  ;;  %v3040_v18 = vld [vmem:[%s3297_s12 + $0x28] sm:$0xff] }
 0x263   : > { %v1530_v20 = vpack.c.bf16 %v1526_v19, %v1526_v19  ;;  %v3042_v19 = vld [vmem:[%s3297_s12 + $0x38] sm:$0xff] }
 0x264   : > { %v3152_v21 = vpop.eup %3151 }
 0x265   : > { %v1527_v22 = vmul.f32 %v3152_v21, %v3144_v6  ;;  %v1520_v23 = vpop.xlane.xlu2 %1519  ;;  %2856 = vmatmul.msk.bf16.vlgmr.msra.gmra.mxu1 %vm1392_vm1, %v1530_v20  ;;  %v3035_v20 = vld [vmem:[%s3297_s12] sm:$0xff]  ;;  %v3037_v21 = vld [vmem:[%s3297_s12 + $0x10] sm:$0xff] }
 0x266   : > { %3153 = vrcp.f32 %v1520_v23  ;;  %1869 = vmatpush.bf16.msra.mxu1 %v3038_v17  ;;  %v3041_v23 = vld [vmem:[%s3297_s12 + $0x30] sm:$0xff]  ;;  %1845 = vmatpush.bf16.msra.mxu0 %v3035_v20 }
 0x267   : > { %v1531_v24 = vpack.c.bf16 %v1527_v22, %v1527_v22  ;;  %3155 = vrcp.f32 %v3218_v4  ;;  %v3039_v22 = vld [vmem:[%s3297_s12 + $0x20] sm:$0xff] }
 0x269   : > { %2857 = vmatmul.msk.bf16.vlgmr.msra.gmra.mxu2 %vm1392_vm1, %v1531_v24 }
 0x26a   : > { %1894 = vmatpush.bf16.msra.mxu2 %v3040_v18  ;;  %1870 = vmatpush.bf16.msra.mxu1 %v3037_v21 }
 0x26c   : > { %v3154_v25 = vpop.eup %3153 }
 0x26d   : > { %v1528_v26 = vmul.f32 %v3154_v25, %v3146_v9  ;;  %v3156_v5 = vpop.eup %3155  ;;  %v3044_v25 = vld [vmem:[%s3307_s27 + $0x8] sm:$0xff] }
 0x26e   : > { %v1710_v6 = vmul.f32 32.0, %v3156_v5  ;;  %vm1714_vm7 = vweird.f32 %v3156_v5  ;;  %1895 = vmatpush.bf16.msra.mxu2 %v3039_v22 }
 0x26f   : > { %v1532_v27 = vpack.c.bf16 %v1528_v26, %v1528_v26  ;;  %v3046_v26 = vld [vmem:[%s3307_s27 + $0x18] sm:$0xff] }
 0x270   : > { %v1711_v7 = vsub.f32 1.0, %v1710_v6 }
 0x271   : > { %2858 = vmatmul.msk.bf16.vlgmr.msra.gmra.mxu3 %vm1392_vm1, %v1532_v27  ;;  %v3048_v27 = vld [vmem:[%s3307_s27 + $0x28] sm:$0xff] }
 0x272   : > { %v1712_v8 = vmul.f32 %v3156_v5, %v1711_v7  ;;  %1919 = vmatpush.bf16.msra.mxu3 %v3042_v19 }
 0x274   : > { %v1713_v9 = vadd.f32 %v3156_v5, %v1712_v8 }
 0x276   : > { %v3504_v10 = vsel %vm1714_vm7, %v3156_v5, %v1713_v9  ;;  %1920 = vmatpush.bf16.msra.mxu3 %v3041_v23  ;;  %v3120_v9 = vld [vmem:[%s3675_s2] ss:$0 sm:$0xff] }
 0x2da   : > { %v1553_v37 = vpop.f32.mrf.mxu0 }
 0x2db   : > { %v1614_v38 = vpack.c.bf16 %v1553_v37, %v1553_v37 }
 0x2dd   : > { %2859 = vmatmul.msk.bf16.vlgmr.msrb.gmra.mxu0 %vm1392_vm1, %v1614_v38 }
 0x2de   : > { %1960 = vmatpush.bf16.msrb.mxu0 %v3044_v25 }
 0x2e2   : > { %v1555_v39 = vpop.f32.mrf.mxu0  ;;  %v1572_v40 = vpop.f32.mrf.mxu1  ;;  %1961 = vmatpush.bf16.msrb.mxu0 %v3043_v30 }
 0x2e3   : > { %v1615_v41 = vpack.c.bf16 %v1572_v40, %v1572_v40 }
 0x2e5   : > { %2860 = vmatmul.msk.bf16.vlgmr.msrb.gmra.mxu1 %vm1392_vm1, %v1615_v41 }
 0x2e6   : > { %1985 = vmatpush.bf16.msrb.mxu1 %v3046_v26  ;;  %v3122_v26 = vld [vmem:[%s3675_s2 + $0x2] ss:$0 sm:$0xff] }
 0x2ea   : > { %v1574_v42 = vpop.f32.mrf.mxu1  ;;  %1986 = vmatpush.bf16.msrb.mxu1 %v3045_v31 }
 0x2eb   : > { %v3118_v42 = vld [vmem:[%s3287_s30] ss:$0 sm:$0xff] }
 0x2ec   : > { %v1591_v43 = vpop.f32.mrf.mxu2 }
 0x2ed   : > { %v1616_v44 = vpack.c.bf16 %v1591_v43, %v1591_v43 }
 0x2ef   : > { %2861 = vmatmul.msk.bf16.vlgmr.msrb.gmra.mxu2 %vm1392_vm1, %v1616_v44  ;;  %v3119_v44 = vld [vmem:[%s3292_s6] ss:$0 sm:$0xff] }
 0x2f0   : > { %2010 = vmatpush.bf16.msrb.mxu2 %v3048_v27  ;;  %v3123_v27 = vld [vmem:[%s3675_s2 + $0x3] ss:$0 sm:$0xff] }
 0x2f4   : > { %v1593_v45 = vpop.f32.mrf.mxu2  ;;  %v1610_v46 = vpop.f32.mrf.mxu3  ;;  %2011 = vmatpush.bf16.msrb.mxu2 %v3047_v34 }
 0x2f5   : > { %v1617_v47 = vpack.c.bf16 %v1610_v46, %v1610_v46 }
 0x2f7   : > { %2862 = vmatmul.msk.bf16.vlgmr.msrb.gmra.mxu3 %vm1392_vm1, %v1617_v47 }
 0x2f8   : > { %2035 = vmatpush.bf16.msrb.mxu3 %v3050_v29 }
 0x2fc   : > { %v1612_v48 = vpop.f32.mrf.mxu3  ;;  %2036 = vmatpush.bf16.msrb.mxu3 %v3049_v35 }
 0x35a   : > { %v1633_v49 = vpop.f32.mrf.mxu0 }
 0x35b   : > { %v1694_v55 = vsel %vm1068_vm0, %v1633_v49, 0.0  ;;  %v973_v49 = vld [vmem:[%s960_s28] sm:$0xff]  ;;  %s3684_s28 = sld [smem:[#allocation10_spill]] }
 0x362   : > { %v1635_v50 = vpop.f32.mrf.mxu0  ;;  %v1652_v51 = vpop.f32.mrf.mxu1 }
 0x363   : > { %v1695_v54 = vsel %vm1068_vm0, %v1652_v51, 0.0  ;;  %v1926_v50 = vpack.c.bf16 %v973_v49, %v973_v49  ;;  %v3056_v51 = vld [vmem:[%s3673_s26 + $0x28] sm:$0xff] }
 0x364   : > { %v1696_v57 = vadd.f32 %v1695_v54, %v1694_v55  ;;  %v3058_v54 = vld [vmem:[%s3673_s26 + $0x38] sm:$0xff]  ;;  %v3055_v55 = vld [vmem:[%s3673_s26 + $0x20] sm:$0xff] }
 0x36a   : > { %v1654_v52 = vpop.f32.mrf.mxu1 }
 0x36b   : > { %v3052_v52 = vld [vmem:[%s3673_s26 + $0x8] sm:$0xff] }
 0x372   : > { %v1671_v53 = vpop.f32.mrf.mxu2 }
 0x373   : > { %v1697_v56 = vsel %vm1068_vm0, %v1671_v53, 0.0  ;;  %v3054_v53 = vld [vmem:[%s3673_s26 + $0x18] sm:$0xff] }
 0x374   : > { %v1698_v58 = vadd.f32 %v1697_v56, %v1696_v57  ;;  %v3051_v56 = vld [vmem:[%s3673_s26] sm:$0xff]  ;;  %v3053_v57 = vld [vmem:[%s3673_s26 + $0x10] sm:$0xff] }
 0x37a   : > { %v1673_v59 = vpop.f32.mrf.mxu2  ;;  %v1690_v60 = vpop.f32.mrf.mxu3 }
 0x37b   : > { %v1699_v62 = vsel %vm1068_vm0, %v1690_v60, 0.0 }
 0x37c   : > { %v1700_v63 = vadd.f32 %v1699_v62, %v1698_v58  ;;  %v3057_v58 = vld [vmem:[%s3673_s26 + $0x30] sm:$0xff] }
 0x37e   : > { %v1704_v0 = vadd.f32 %v3117_v61, %v1700_v63 }
 0x380   : > { %v1705_v1 = vadd.f32 %v1704_v0, %v3406_v12 }
 0x382   : > { %v1692_v2 = vpop.f32.mrf.mxu3  ;;  %v1706_v3 = vsel %vm1068_vm0, %v1705_v1, 0.0 }
 0x383   : > { %1707 = vadd.xlane.f32.xlu2 %v1706_v3  ;;  %v3125_v2 = vld [vmem:[%s3674_s1 + $0x1] ss:$0 sm:$0xff] }
 0x3f6   : > { %v1708_v12 = vpop.xlane.xlu2 %1707 }
 0x3f7   : > { %v1716_v11 = vmul.f32 %v3504_v10, %v1708_v12 }
 0x3f9   : > { %v1717_v13 = vsub.f32 %v1705_v1, %v1716_v11  ;;  %v3124_v1 = vld [vmem:[%s3674_s1] ss:$0 sm:$0xff] }
 0x3fb   : > { %v1718_v14 = vmul.f32 %v1717_v13, %v1717_v13 }
 0x3fd   : > { %v1719_v15 = vsel %vm1068_vm0, %v1718_v14, 0.0  ;;  %v3126_v14 = vld [vmem:[%s3674_s1 + $0x2] ss:$0 sm:$0xff] }
 0x3fe   : > { %1720 = vadd.xlane.f32.xlu0 %v1719_v15  ;;  %v3127_v15 = vld [vmem:[%s3674_s1 + $0x3] ss:$0 sm:$0xff] }
 0x471   : > { %v1721_v24 = vpop.xlane.xlu0 %1720 }
 0x472   : > { %v1722_v28 = vmul.f32 %v1721_v24, %v3504_v10 }
 0x474   : > { %v1723_v32 = vadd.f32 1e-05, %v1722_v28 }
 0x476   : > { %3157 = vrsqrt.f32 %v1723_v32  ;;  %vm1730_vm9 = vweird.f32 %v1723_v32 }
 0x47c   : > { %v3158_v36 = vpop.eup %3157 }
 0x47d   : > { %v1725_v37 = vmul.f32 %v3158_v36, %v1723_v32  ;;  %vm1731_vm8 = vweird.f32 %v3158_v36 }
 0x47e   : > { %vm1732_vm10 = vmor %vm1730_vm9, %vm1731_vm8 }
 0x47f   : > { %v1726_v38 = vmul.f32 %v3158_v36, %v1725_v37 }
 0x481   : > { %v1727_v39 = vmul.f32 0.5, %v1726_v38 }
 0x483   : > { %v1728_v40 = vsub.f32 1.5, %v1727_v39 }
 0x485   : > { %v1729_v41 = vmul.f32 %v3158_v36, %v1728_v40 }
 0x487   : > { %v1733_v43 = vsel %vm1732_vm10, %v3158_v36, %v1729_v41  ;;  %v3128_v41 = vld [vmem:[%s3676_s7] ss:$0 sm:$0xff] }
 0x488   : > { %v1734_v45 = vmul.f32 %v1733_v43, %v1717_v13  ;;  %v3121_v13 = vld [vmem:[%s3675_s2 + $0x1] ss:$0 sm:$0xff] }
 0x48a   : > { %v1738_v46 = vmul.f32 %v3118_v42, %v1734_v45  ;;  %v3129_v42 = vld [vmem:[%s3676_s7 + $0x1] ss:$0 sm:$0xff] }
 0x48c   : > { %v3527_v47 = vadd.f32 %v3119_v44, %v1738_v46 }
 0x48e   : > { %v1810_v48 = vpack.c.bf16 %v3527_v47, %v3527_v47 }
 0x490   : > { %2871 = vmatmul.msk.bf16.vlgmr.msra.gmra.mxu0 %vm1068_vm0, %v1810_v48  ;;  %2880 = vmatmul.msk.bf16.vlgmr.msra.gmra.mxu1 %vm1068_vm0, %v1810_v48 }
 0x491   : > { %2889 = vmatmul.msk.bf16.vlgmr.msra.gmra.mxu2 %vm1068_vm0, %v1810_v48  ;;  %2898 = vmatmul.msk.bf16.vlgmr.msra.gmra.mxu3 %vm1068_vm0, %v1810_v48  ;;  %v3130_v48 = vld [vmem:[%s3676_s7 + $0x2] ss:$0 sm:$0xff] }
 0x492   : > { %2122 = vmatpush.bf16.msra.mxu2 %v3056_v51  ;;  %2072 = vmatpush.bf16.msra.mxu0 %v3052_v52  ;;  %v3131_v52 = vld [vmem:[%s3676_s7 + $0x3] ss:$0 sm:$0xff] }
 0x493   : > { %2097 = vmatpush.bf16.msra.mxu1 %v3054_v53  ;;  %2147 = vmatpush.bf16.msra.mxu3 %v3058_v54 }
 0x496   : > { %2123 = vmatpush.bf16.msra.mxu2 %v3055_v55  ;;  %2073 = vmatpush.bf16.msra.mxu0 %v3051_v56 }
 0x497   : > { %2098 = vmatpush.bf16.msra.mxu1 %v3053_v57  ;;  %2148 = vmatpush.bf16.msra.mxu3 %v3057_v58 }
 0x4a0   : > { %2907 = vmatmul.msk.bf16.vlgmr.msrb.gmra.mxu0 %vm1068_vm0, %v1926_v50  ;;  %2916 = vmatmul.msk.bf16.vlgmr.msrb.gmra.mxu1 %vm1068_vm0, %v1926_v50 }
 0x4a1   : > { %2925 = vmatmul.msk.bf16.vlgmr.msrb.gmra.mxu2 %vm1068_vm0, %v1926_v50  ;;  %2934 = vmatmul.msk.bf16.vlgmr.msrb.gmra.mxu3 %vm1068_vm0, %v1926_v50 }
 0x4b0   : > { %2943 = vmatmul.msk.bf16.vlgmr.msra.gmra.mxu0 %vm1068_vm0, %v1926_v50  ;;  %2952 = vmatmul.msk.bf16.vlgmr.msra.gmra.mxu1 %vm1068_vm0, %v1926_v50 }
 0x4b1   : > { %2961 = vmatmul.msk.bf16.vlgmr.msra.gmra.mxu2 %vm1068_vm0, %v1926_v50  ;;  %2970 = vmatmul.msk.bf16.vlgmr.msra.gmra.mxu3 %vm1068_vm0, %v1926_v50 }
 0x50d   : > { %v1847_v59 = vpop.f32.mrf.mxu0  ;;  %v1872_v60 = vpop.f32.mrf.mxu1 }
 0x50e   : > { %v1848_v20 = vadd.f32 %v3120_v9, %v1847_v59  ;;  %v1873_v21 = vadd.f32 %v3121_v13, %v1872_v60 }
 0x510   : > { %v2154_v30 = vpack.c.bf16 %v1848_v20, %v1848_v20  ;;  %v2155_v31 = vpack.c.bf16 %v1873_v21, %v1873_v21 }
 0x514   : > { %v1897_v61 = vpop.f32.mrf.mxu2  ;;  %v1922_v62 = vpop.f32.mrf.mxu3 }
 0x515   : > { %v1849_v63 = vpop.f32.mrf.mxu0  ;;  %v1874_v0 = vpop.f32.mrf.mxu1  ;;  %v1898_v35 = vadd.f32 %v3122_v26, %v1897_v61  ;;  %v1923_v36 = vadd.f32 %v3123_v27, %v1922_v62 }
 0x517   : > { %v2156_v39 = vpack.c.bf16 %v1898_v35, %v1898_v35  ;;  %v2157_v40 = vpack.c.bf16 %v1923_v36, %v1923_v36 }
 0x51c   : > { %v1899_v3 = vpop.f32.mrf.mxu2  ;;  %v1924_v4 = vpop.f32.mrf.mxu3 }
 0x51d   : > { %v1963_v5 = vpop.f32.mrf.mxu0  ;;  %v1988_v6 = vpop.f32.mrf.mxu1 }
 0x51e   : > { %v1964_v7 = vadd.f32 %v3124_v1, %v1963_v5  ;;  %v1989_v8 = vadd.f32 %v3125_v2, %v1988_v6  ;;  %v975_v2 = vld [vmem:[%s966_s11] sm:$0x1]  ;;  %s3686_s11 = sld [smem:[#allocation13_spill]] }
 0x51f   : > { %vm2238_vm11 = vcmp.gt.f32.partialorder %v975_v2, 0.0  ;;  %v1804_v2 = vld [vmem:[%s3680_s16 + $0x4] sm:$0xf] }
 0x520   : > { %v2158_v12 = vpack.c.bf16 %v1964_v7, %v1964_v7  ;;  %v2159_v11 = vpack.c.bf16 %v1989_v8, %v1989_v8  ;;  %v2239_v3 = vsel %vm2238_vm11, 1, %v3217_v33 }
 0x521   : > { %v2240_v4 = vperm.slane %v2239_v3, 0  ;;  %v2401_v3 = vsel %vm1540_vm2, %v1804_v2, 0 }
 0x522   : > { %v2166_v16 = vsel %vm1392_vm1, %v2158_v12, 0  ;;  %v2185_v17 = vsel %vm1392_vm1, %v2159_v11, 0 }
 0x523   : > { %2175 = vmatpush.bf16.xpose.msrb.mxu0 %v2166_v16  ;;  %2194 = vmatpush.bf16.xpose.msrb.mxu1 %v2185_v17  ;;  %vm3580_vm12 = vcmp.eq.s32.totalorder %v2240_v4, 1 }
 0x524   : > { %v2013_v18 = vpop.f32.mrf.mxu2  ;;  %v2038_v19 = vpop.f32.mrf.mxu3 }
 0x525   : > { %v2014_v22 = vadd.f32 %v3126_v14, %v2013_v18  ;;  %v2039_v23 = vadd.f32 %v3127_v15, %v2038_v19  ;;  %v1965_v24 = vpop.f32.mrf.mxu0  ;;  %v1990_v25 = vpop.f32.mrf.mxu1 }
 0x527   : > { %v2160_v28 = vpack.c.bf16 %v2014_v22, %v2014_v22  ;;  %v2161_v29 = vpack.c.bf16 %v2039_v23, %v2039_v23 }
 0x529   : > { %v2204_v32 = vsel %vm1392_vm1, %v2160_v28, 0  ;;  %v2223_v34 = vsel %vm1392_vm1, %v2161_v29, 0 }
 0x52a   : > { %2213 = vmatpush.bf16.xpose.msrb.mxu2 %v2204_v32  ;;  %2232 = vmatpush.bf16.xpose.msrb.mxu3 %v2223_v34 }
 0x52b   : > { %2971 = vmatmul.msk.bf16.vlgmr.msrb.gmra.mxu0 %vm1392_vm1, %v2154_v30  ;;  %2972 = vmatmul.msk.bf16.vlgmr.msrb.gmra.mxu1 %vm1392_vm1, %v2155_v31 }
 0x52c   : > { %v2015_v37 = vpop.f32.mrf.mxu2  ;;  %v2040_v38 = vpop.f32.mrf.mxu3 }
 0x52d   : > { %v2075_v43 = vpop.f32.mrf.mxu0  ;;  %v2100_v44 = vpop.f32.mrf.mxu1 }
 0x52e   : > { %v2076_v45 = vadd.f32 %v3128_v41, %v2075_v43  ;;  %v2101_v46 = vadd.f32 %v3129_v42, %v2100_v44 }
 0x530   : > { %v2294_v49 = vpack.c.bf16 %v2076_v45, %v2076_v45  ;;  %v2295_v50 = vpack.c.bf16 %v2101_v46, %v2101_v46 }
 0x531   : > { %2973 = vmatmul.msk.bf16.vlgmr.msrb.gmra.mxu2 %vm1392_vm1, %v2156_v39  ;;  %2974 = vmatmul.msk.bf16.vlgmr.msrb.gmra.mxu3 %vm1392_vm1, %v2157_v40 }
 0x532   : > { %v2302_v53 = vsel %vm1540_vm2, %v2294_v49, 0  ;;  %v2321_v54 = vsel %vm1540_vm2, %v2295_v50, 0 }
 0x533   : > { %2311 = vmatpush.bf16.msra.mxu0 %v2302_v53  ;;  %2330 = vmatpush.bf16.msra.mxu1 %v2321_v54 }
 0x534   : > { %v2125_v51 = vpop.f32.mrf.mxu2  ;;  %v2150_v57 = vpop.f32.mrf.mxu3 }
 0x535   : > { %v2126_v55 = vadd.f32 %v3130_v48, %v2125_v51  ;;  %v2077_v58 = vpop.f32.mrf.mxu0  ;;  %v2102_v59 = vpop.f32.mrf.mxu1  ;;  %v2151_v60 = vadd.f32 %v3131_v52, %v2150_v57 }
 0x537   : > { %v2296_v56 = vpack.c.bf16 %v2126_v55, %v2126_v55  ;;  %v2297_v62 = vpack.c.bf16 %v2151_v60, %v2151_v60  ;;  %v1803_v60 = vld [vmem:[%s3680_s16] sm:$0xf]  ;;  %2410 = vmatpush.bf16.msrb.mxu1 %v2401_v3 }
 0x539   : > { %v2340_v61 = vsel %vm1540_vm2, %v2296_v56, 0  ;;  %v2359_v63 = vsel %vm1540_vm2, %v2297_v62, 0  ;;  %v1805_v62 = vld [vmem:[%s3680_s16 + $0x8] sm:$0xf] }
 0x53a   : > { %2349 = vmatpush.bf16.msra.mxu2 %v2340_v61  ;;  %2368 = vmatpush.bf16.msra.mxu3 %v2359_v63  ;;  %v2382_v61 = vsel %vm1540_vm2, %v1803_v60, 0  ;;  %v1806_v63 = vld [vmem:[%s3680_s16 + $0xc] sm:$0xf] }
 0x53b   : > { %2391 = vmatpush.bf16.msrb.mxu0 %v2382_v61  ;;  %v3062_v61 = vld [vmem:[%s3683_s23 + $0x8] sm:$0xff] }
 0x53c   : > { %v2127_v0 = vpop.f32.mrf.mxu2  ;;  %v2152_v1 = vpop.f32.mrf.mxu3 }
 0x53d   : > { %v2420_v0 = vsel %vm1540_vm2, %v1805_v62, 0  ;;  %v2439_v1 = vsel %vm1540_vm2, %v1806_v63, 0  ;;  %v3061_v62 = vld [vmem:[%s3683_s23] sm:$0xff] }
 0x53e   : > { %2429 = vmatpush.bf16.msrb.mxu2 %v2420_v0  ;;  %2448 = vmatpush.bf16.msrb.mxu3 %v2439_v1  ;;  %v3135_v63 = vld [vmem:[%s3686_s11] ss:$0 sm:$0xff] }
 0x5a8   : > { %v2177_v6 = vpop.f32.mrf.mxu0  ;;  %v2196_v7 = vpop.f32.mrf.mxu1 }
 0x5a9   : > { %v2242_v8 = vsel %vm3580_vm12, %v2177_v6, -1e+10  ;;  %v2243_v18 = vsel %vm3580_vm12, %v2196_v7, -1e+10 }
 0x5aa   : > { %v2246_v9 = vsel %vm1392_vm1, %v2242_v8, -inf  ;;  %v2249_v21 = vsel %vm1392_vm1, %v2243_v18, -inf }
 0x5ab   : > { %2247 = vmax.xlane.f32.xlu0 %v2246_v9 }
 0x5b0   : > { %v2179_v12 = vpop.f32.mrf.mxu0  ;;  %v2198_v11 = vpop.f32.mrf.mxu1 }
 0x5b4   : > { %v2215_v13 = vpop.f32.mrf.mxu2  ;;  %v2234_v14 = vpop.f32.mrf.mxu3 }
 0x5b5   : > { %v2244_v33 = vsel %vm3580_vm12, %v2215_v13, -1e+10  ;;  %v2245_v15 = vsel %vm3580_vm12, %v2234_v14, -1e+10 }
 0x5b6   : > { %v2255_v16 = vsel %vm1392_vm1, %v2245_v15, -inf  ;;  %v2252_v17 = vsel %vm1392_vm1, %v2244_v33, -inf }
 0x5b7   : > { %2256 = vmax.xlane.f32.xlu2 %v2255_v16  ;;  %2253 = vmax.xlane.f32.xlu1 %v2252_v17 }
 0x5bc   : > { %v2217_v19 = vpop.f32.mrf.mxu2  ;;  %v2236_v20 = vpop.f32.mrf.mxu3 }
 0x5bf   : > { %2250 = vmax.xlane.f32.xlu1 %v2249_v21 }
 0x61e   : > { %v2248_v22 = vpop.xlane.xlu0 %2247 }
 0x61f   : > { %v2258_v23 = vsub.f32 %v2242_v8, %v2248_v22 }
 0x621   : > { %v2262_v24 = vmul.f32 1.442695, %v2258_v23 }
 0x623   : > { %3159 = vpow2.f32 %v2262_v24 }
 0x629   : > { %v3160_v25 = vpop.eup %3159 }
 0x62a   : > { %v2257_v26 = vpop.xlane.xlu2 %2256  ;;  %v2254_v27 = vpop.xlane.xlu1 %2253  ;;  %v2270_v28 = vsel %vm1392_vm1, %v3160_v25, 0.0 }
 0x62b   : > { %v2261_v29 = vsub.f32 %v2245_v15, %v2257_v26  ;;  %v2260_v30 = vsub.f32 %v2244_v33, %v2254_v27  ;;  %2271 = vadd.xlane.f32.xlu1 %v2270_v28  ;;  %v3132_v26 = vld [vmem:[%s3681_s18] ss:$0 sm:$0xff]  ;;  %s970_s18 = scalar_lea.vmem %s3377_s17, %s3398_s0 }
 0x62d   : > { %v2268_v31 = vmul.f32 1.442695, %v2261_v29  ;;  %v2266_v32 = vmul.f32 1.442695, %v2260_v30 }
 0x62f   : > { %3161 = vpow2.f32 %v2268_v31 }
 0x630   : > { %3163 = vpow2.f32 %v2266_v32 }
 0x632   : > { %v2251_v34 = vpop.xlane.xlu1 %2250 }
 0x633   : > { %v2259_v35 = vsub.f32 %v2243_v18, %v2251_v34 }
 0x635   : > { %v3162_v36 = vpop.eup %3161  ;;  %v2264_v37 = vmul.f32 1.442695, %v2259_v35 }
 0x636   : > { %v3164_v38 = vpop.eup %3163  ;;  %v2279_v39 = vsel %vm1392_vm1, %v3162_v36, 0.0 }
 0x637   : > { %3165 = vpow2.f32 %v2264_v37  ;;  %v2276_v40 = vsel %vm1392_vm1, %v3164_v38, 0.0  ;;  %2280 = vadd.xlane.f32.xlu0 %v2279_v39 }
 0x638   : > { %2277 = vadd.xlane.f32.xlu2 %v2276_v40 }
 0x63d   : > { %v3166_v41 = vpop.eup %3165 }
 0x63e   : > { %v2273_v42 = vsel %vm1392_vm1, %v3166_v41, 0.0 }
 0x640   : > { %2274 = vadd.xlane.f32.xlu2 %v2273_v42  ;;  %v3059_v42 = vld [vmem:[%s3682_s22] sm:$0xff] }
 0x69e   : > { %v2272_v43 = vpop.xlane.xlu1 %2271 }
 0x69f   : > { %3167 = vrcp.f32 %v2272_v43  ;;  %v3064_v43 = vld [vmem:[%s3683_s23 + $0x18] sm:$0xff] }
 0x6a5   : > { %v3168_v44 = vpop.eup %3167 }
 0x6a6   : > { %v2286_v45 = vmul.f32 %v3168_v44, %v3160_v25 }
 0x6a8   : > { %v2290_v46 = vpack.c.bf16 %v2286_v45, %v2286_v45  ;;  %v3063_v45 = vld [vmem:[%s3683_s23 + $0x10] sm:$0xff] }
 0x6aa   : > { %2975 = vmatmul.msk.bf16.vlgmr.msra.gmra.mxu0 %vm1392_vm1, %v2290_v46  ;;  %v2281_v48 = vpop.xlane.xlu0 %2280 }
 0x6ab   : > { %v2278_v49 = vpop.xlane.xlu2 %2277  ;;  %3169 = vrcp.f32 %v2281_v48 }
 0x6ac   : > { %3171 = vrcp.f32 %v2278_v49 }
 0x6b1   : > { %v3170_v50 = vpop.eup %3169 }
 0x6b2   : > { %v3172_v51 = vpop.eup %3171  ;;  %v2289_v52 = vmul.f32 %v3170_v50, %v3162_v36 }
 0x6b3   : > { %v2288_v53 = vmul.f32 %v3172_v51, %v3164_v38  ;;  %v2275_v54 = vpop.xlane.xlu2 %2274 }
 0x6b4   : > { %v2293_v55 = vpack.c.bf16 %v2289_v52, %v2289_v52  ;;  %3173 = vrcp.f32 %v2275_v54  ;;  %v3133_v54 = vld [vmem:[%s3684_s28] ss:$0 sm:$0xff] }
 0x6b5   : > { %v2292_v56 = vpack.c.bf16 %v2288_v53, %v2288_v53 }
 0x6b6   : > { %2978 = vmatmul.msk.bf16.vlgmr.msra.gmra.mxu3 %vm1392_vm1, %v2293_v55 }
 0x6b7   : > { %2977 = vmatmul.msk.bf16.vlgmr.msra.gmra.mxu2 %vm1392_vm1, %v2292_v56  ;;  %v3134_v56 = vld [vmem:[%s3685_s10] ss:$0 sm:$0xff] }
 0x6ba   : > { %v3174_v57 = vpop.eup %3173 }
 0x6bb   : > { %v2287_v58 = vmul.f32 %v3174_v57, %v3166_v41  ;;  %v3060_v41 = vld [vmem:[%s3682_s22 + $0x8] sm:$0xff] }
 0x6bc   : > { %2537 = vmatpush.bf16.msra.mxu0 %v3060_v41 }
 0x6bd   : > { %v2291_v59 = vpack.c.bf16 %v2287_v58, %v2287_v58 }
 0x6bf   : > { %2976 = vmatmul.msk.bf16.vlgmr.msra.gmra.mxu1 %vm1392_vm1, %v2291_v59 }
 0x6c0   : > { %2538 = vmatpush.bf16.msra.mxu0 %v3059_v42  ;;  %2581 = vmatpush.bf16.msra.mxu1 %v3064_v43 }
 0x6c4   : > { %2582 = vmatpush.bf16.msra.mxu1 %v3063_v45 }
 0x6c8   : > { %2583 = vmatpush.bf16.msra.mxu1 %v3062_v61 }
 0x6cc   : > { %2584 = vmatpush.bf16.msra.mxu1 %v3061_v62 }
 0x727   : > { %v2313_v4 = vpop.f32.mrf.mxu0 }
 0x728   : > { %v2374_v5 = vpack.c.bf16 %v2313_v4, %v2313_v4 }
 0x72a   : > { %2979 = vmatmul.msk.bf16.vlgmr.msrb.gmra.mxu0 %vm1392_vm1, %v2374_v5  ;;  %v3136_v5 = vld [vmem:[%s3362_s20] ss:$0 sm:$0xff] }
 0x72f   : > { %v2315_v6 = vpop.f32.mrf.mxu0 }
 0x739   : > { %v2370_v7 = vpop.f32.mrf.mxu3 }
 0x73a   : > { %v2351_v8 = vpop.f32.mrf.mxu2  ;;  %v2377_v9 = vpack.c.bf16 %v2370_v7, %v2370_v7 }
 0x73b   : > { %v2376_v12 = vpack.c.bf16 %v2351_v8, %v2351_v8 }
 0x73c   : > { %v2332_v11 = vpop.f32.mrf.mxu1  ;;  %2982 = vmatmul.msk.bf16.vlgmr.msrb.gmra.mxu3 %vm1392_vm1, %v2377_v9 }
 0x73d   : > { %v2375_v13 = vpack.c.bf16 %v2332_v11, %v2332_v11  ;;  %2981 = vmatmul.msk.bf16.vlgmr.msrb.gmra.mxu2 %vm1392_vm1, %v2376_v12 }
 0x73f   : > { %2980 = vmatmul.msk.bf16.vlgmr.msrb.gmra.mxu1 %vm1392_vm1, %v2375_v13  ;;  %vm2573_vm1 = vcmask 523264  }
 0x741   : > { %v2372_v14 = vpop.f32.mrf.mxu3 }
 0x742   : > { %v2353_v33 = vpop.f32.mrf.mxu2 }
 0x744   : > { %v2334_v15 = vpop.f32.mrf.mxu1 }
 0x7a7   : > { %v2393_v16 = vpop.f32.mrf.mxu0 }
 0x7a8   : > { %v2454_v20 = vsel %vm1068_vm0, %v2393_v16, 0.0 }
 0x7af   : > { %v2395_v17 = vpop.f32.mrf.mxu0 }
 0x7bc   : > { %v2412_v18 = vpop.f32.mrf.mxu1 }
 0x7bd   : > { %v2455_v19 = vsel %vm1068_vm0, %v2412_v18, 0.0 }
 0x7be   : > { %v2456_v22 = vadd.f32 %v2455_v19, %v2454_v20 }
 0x7bf   : > { %v2450_v21 = vpop.f32.mrf.mxu3 }
 0x7c0   : > { %v2431_v23 = vpop.f32.mrf.mxu2  ;;  %v2459_v27 = vsel %vm1068_vm0, %v2450_v21, 0.0 }
 0x7c1   : > { %v2457_v24 = vsel %vm1068_vm0, %v2431_v23, 0.0 }
 0x7c2   : > { %v2458_v25 = vadd.f32 %v2457_v24, %v2456_v22 }
 0x7c4   : > { %v2460_v28 = vadd.f32 %v2459_v27, %v2458_v25  ;;  %v2414_v29 = vpop.f32.mrf.mxu1  ;;  %v3137_v25 = vld [vmem:[%s3367_s9] ss:$0 sm:$0xff] }
 0x7c5   : > { %v3138_v27 = vld [vmem:[%s3372_s4] ss:$0 sm:$0xff] }
 0x7c6   : > { %v2464_v30 = vadd.f32 %v3132_v26, %v2460_v28 }
 0x7c7   : > { %v2452_v31 = vpop.f32.mrf.mxu3 }
 0x7c8   : > { %v2433_v32 = vpop.f32.mrf.mxu2  ;;  %v2465_v34 = vadd.f32 %v2464_v30, %v3527_v47 }
 0x7ca   : > { %v2466_v35 = vsel %vm1068_vm0, %v2465_v34, 0.0 }
 0x7cb   : > { %2467 = vadd.xlane.f32.xlu0 %v2466_v35 }
 0x83e   : > { %v2468_v36 = vpop.xlane.xlu0 %2467 }
 0x83f   : > { %v2469_v37 = vmul.f32 %v2468_v36, %v3504_v10 }
 0x841   : > { %v2470_v38 = vsub.f32 %v2465_v34, %v2469_v37 }
 0x843   : > { %v2471_v39 = vmul.f32 %v2470_v38, %v2470_v38 }
 0x845   : > { %v2472_v40 = vsel %vm1068_vm0, %v2471_v39, 0.0 }
 0x846   : > { %2473 = vadd.xlane.f32.xlu1 %v2472_v40 }
 0x8b9   : > { %v2474_v44 = vpop.xlane.xlu1 %2473 }
 0x8ba   : > { %v2475_v47 = vmul.f32 %v2474_v44, %v3504_v10 }
 0x8bc   : > { %v2476_v46 = vadd.f32 1e-05, %v2475_v47 }
 0x8be   : > { %3175 = vrsqrt.f32 %v2476_v46  ;;  %vm2483_vm14 = vweird.f32 %v2476_v46 }
 0x8c4   : > { %v3176_v48 = vpop.eup %3175 }
 0x8c5   : > { %v2478_v49 = vmul.f32 %v3176_v48, %v2476_v46  ;;  %vm2484_vm13 = vweird.f32 %v3176_v48 }
 0x8c6   : > { %vm2485_vm15 = vmor %vm2483_vm14, %vm2484_vm13 }
 0x8c7   : > { %v2479_v50 = vmul.f32 %v3176_v48, %v2478_v49 }
 0x8c9   : > { %v2480_v51 = vmul.f32 0.5, %v2479_v50 }
 0x8cb   : > { %v2481_v52 = vsub.f32 1.5, %v2480_v51 }
 0x8cd   : > { %v2482_v53 = vmul.f32 %v3176_v48, %v2481_v52 }
 0x8cf   : > { %v2486_v55 = vsel %vm2485_vm15, %v3176_v48, %v2482_v53 }
 0x8d0   : > { %v2487_v57 = vmul.f32 %v2486_v55, %v2470_v38 }
 0x8d2   : > { %v2491_v58 = vmul.f32 %v3133_v54, %v2487_v57 }
 0x8d4   : > { %v2495_v59 = vadd.f32 %v3134_v56, %v2491_v58 }
 0x8d6   : > { %v2512_v60 = vpack.c.bf16 %v2495_v59, %v2495_v59 }
 0x8d8   : > { %2991 = vmatmul.msk.bf16.vlgmr.msra.gmra.mxu0 %vm1068_vm0, %v2512_v60 }
 0x955   : > { %v2540_v0 = vpop.f32.mrf.mxu0 }
 0x956   : > { %v2541_v1 = vadd.f32 %v3135_v63, %v2540_v0 }
 0x958   : > { %v2544_v2 = vmax.f32 %v2541_v1, 0.0 }
 0x95a   : > { %v2545_v3 = vpack.c.bf16 %v2544_v2, %v2544_v2 }
 0x95c   : > { %3008 = vmatmul.msk.bf16.vlgmr.msra.gmra.mxu1 %vm2573_vm1, %v2545_v3 }
 0x95d   : > { %v2542_v4 = vpop.f32.mrf.mxu0 }
 0x9d9   : > { %v2586_v6 = vpop.f32.mrf.mxu1 }
 0x9da   : > { %v2587_v7 = vadd.f32 %v3136_v5, %v2586_v6 }
 0x9dc   : > { %v2590_v8 = vadd.f32 %v2587_v7, %v2495_v59 }
 0x9de   : > { %v2591_v9 = vsel %vm1068_vm0, %v2590_v8, 0.0 }
 0x9df   : > { %2592 = vadd.xlane.f32.xlu2 %v2591_v9 }
 0x9e1   : > { %v2588_v12 = vpop.f32.mrf.mxu1 }
 0xa52   : > { %v2593_v11 = vpop.xlane.xlu2 %2592 }
 0xa53   : > { %v2594_v13 = vmul.f32 %v2593_v11, %v3504_v10 }
 0xa55   : > { %v2595_v14 = vsub.f32 %v2590_v8, %v2594_v13 }
 0xa57   : > { %v2596_v33 = vmul.f32 %v2595_v14, %v2595_v14 }
 0xa59   : > { %v2597_v15 = vsel %vm1068_vm0, %v2596_v33, 0.0 }
 0xa5a   : > { %2598 = vadd.xlane.f32.xlu0 %v2597_v15 }
 0xacd   : > { %v2599_v16 = vpop.xlane.xlu0 %2598 }
 0xace   : > { %v2600_v17 = vmul.f32 %v2599_v16, %v3504_v10 }
 0xad0   : > { %v2601_v18 = vadd.f32 1e-05, %v2600_v17 }
 0xad2   : > { %3177 = vrsqrt.f32 %v2601_v18  ;;  %vm2608_vm3 = vweird.f32 %v2601_v18 }
 0xad8   : > { %v3178_v19 = vpop.eup %3177 }
 0xad9   : > { %v2603_v20 = vmul.f32 %v3178_v19, %v2601_v18  ;;  %vm2609_vm2 = vweird.f32 %v3178_v19 }
 0xada   : > { %vm2610_vm4 = vmor %vm2608_vm3, %vm2609_vm2 }
 0xadb   : > { %v2604_v21 = vmul.f32 %v3178_v19, %v2603_v20 }
 0xadd   : > { %v2605_v22 = vmul.f32 0.5, %v2604_v21 }
 0xadf   : > { %v2606_v23 = vsub.f32 1.5, %v2605_v22 }
 0xae1   : > { %v2607_v24 = vmul.f32 %v3178_v19, %v2606_v23 }
 0xae3   : > { %v2611_v26 = vsel %vm2610_vm4, %v3178_v19, %v2607_v24 }
 0xae4   : > { %v2612_v28 = vmul.f32 %v2611_v26, %v2595_v14 }
 0xae6   : > { %v2616_v29 = vmul.f32 %v3137_v25, %v2612_v28 }
 0xae8   : > { %v2620_v10 = vadd.f32 %v3138_v27, %v2616_v29 }
 0xaea   : > { %2621 = vst.msk [vmem:[%s970_s18] sm:$0xff] %vm1068_vm0, %v2620_v10 }
 0xaeb PF: > { %s71_s15 = sadd.s32 1, %s3185_s15  }
 0xaec   : > { %p68_p4 = scmp.ge.s32.totalorder %s71_s15, 4  }
 0xaee   :  { %70 = sbr.rel (!%p68_p4) target bundleno = 48 (0x30), region = 209 }

// kernel: seq2seq_forward.8
= control target key start
LH: loop header
LB: loop body
LE: loop exit
PB: predicated region body
PF: predicated region fallthrough
CT: control target
= control target key end

     0   :  { %s3433_s6 = smov 1   ;;  %s3434_s10 = smov 2   ;;  %s3995_s0 = inlined_call_operand.smem [shape: u32[32], index: -1, kind: input, shape index: {}] }
   0x1   :  { %s3476_s5 = sld [smem:[%s3995_s0]]   ;;  %s3435_s14 = smov 3  }
   0x2   :  { %s3481_s9 = sld [smem:[%s3995_s0 + %s3433_s6]]   ;;  %s3436_s18 = smov 4  }
   0x3   :  { %s3486_s13 = sld [smem:[%s3995_s0 + %s3434_s10]]   ;;  %s3437_s22 = smov 5  }
   0x4   :  { %s3491_s17 = sld [smem:[%s3995_s0 + %s3435_s14]]   ;;  %s3438_s26 = smov 6  }
   0x5   :  { %s3496_s21 = sld [smem:[%s3995_s0 + %s3436_s18]]   ;;  %s3439_s30 = smov 7  }
   0x6   :  { %s3501_s25 = sld [smem:[%s3995_s0 + %s3437_s22]]   ;;  %s3440_s4 = smov 8  }
   0x7   :  { %4015 = sst [smem:[#allocation5_spill]] %s3476_s5  ;;  %s3441_s10 = smov 9  }
   0x8   :  { %4016 = sst [smem:[#allocation6_spill]] %s3481_s9  ;;  %s3442_s15 = smov 10  }
   0x9   :  { %4017 = sst [smem:[#allocation7_spill]] %s3486_s13  ;;  %s3443_s20 = smov 11  }
   0xa   :  { %4018 = sst [smem:[#allocation8_spill]] %s3491_s17  ;;  %s3445_s1 = smov 13  }
   0xb   :  { %s3506_s29 = sld [smem:[%s3995_s0 + %s3438_s26]]   ;;  %s3444_s26 = smov 12  }
   0xc   :  { %s3511_s3 = sld [smem:[%s3995_s0 + %s3439_s30]]   ;;  %s3446_s7 = smov 14  }
   0xd   :  { %s3516_s8 = sld [smem:[%s3995_s0 + %s3440_s4]]   ;;  %s3448_s22 = smov 16  }
   0xe   :  { %s3521_s14 = sld [smem:[%s3995_s0 + %s3441_s10]]   ;;  %s3449_s28 = smov 17  }
   0xf   :  { %s3526_s19 = sld [smem:[%s3995_s0 + %s3442_s15]]   ;;  %s3447_s15 = smov 15  }
  0x10   :  { %s3531_s24 = sld [smem:[%s3995_s0 + %s3443_s20]]  }
  0x11   :  { %s3536_s30 = sld [smem:[%s3995_s0 + %s3444_s26]]  }
  0x12   :  { %4019 = sst [smem:[#allocation9_spill]] %s3511_s3 }
  0x13   :  { %4020 = sst [smem:[#allocation10_spill]] %s3516_s8 }
  0x14   :  { %4021 = sst [smem:[#allocation11_spill]] %s3521_s14 }
  0x15   :  { %s3541_s6 = sld [smem:[%s3995_s0 + %s3445_s1]]  }
  0x16   :  { %s3546_s12 = sld [smem:[%s3995_s0 + %s3446_s7]]   ;;  %s3450_s7 = smov 18  }
  0x17   :  { %s3551_s20 = sld [smem:[%s3995_s0 + %s3447_s15]]   ;;  %s3451_s15 = smov 19  }
  0x18   :  { %s3556_s27 = sld [smem:[%s3995_s0 + %s3448_s22]]   ;;  %s3452_s22 = smov 20  }
  0x19   :  { %s3561_s4 = sld [smem:[%s3995_s0 + %s3449_s28]]   ;;  %s3453_s28 = smov 21  }
  0x1a   :  { %s3566_s17 = sld [smem:[%s3995_s0 + %s3450_s7]]   ;;  %s3454_s7 = smov 22  }
  0x1b   :  { %4022 = sst [smem:[#allocation12_spill]] %s3541_s6 }
  0x1c   :  { %4023 = sst [smem:[#allocation13_spill]] %s3546_s12 }
  0x1d   :  { %4024 = sst [smem:[#allocation14_spill]] %s3551_s20 }
  0x1e   :  { %s3571_s20 = sld [smem:[%s3995_s0 + %s3451_s15]]   ;;  %s3455_s15 = smov 23  }
  0x1f   :  { %4025 = sst [smem:[#allocation15_spill]] %s3561_s4 }
  0x20   :  { %4026 = sst [smem:[#allocation16_spill]] %s3566_s17 }
  0x21   :  { %s3576_s9 = sld [smem:[%s3995_s0 + %s3452_s22]]   ;;  %s3456_s22 = smov 24  }
  0x22   :  { %s3581_s4 = sld [smem:[%s3995_s0 + %s3453_s28]]   ;;  %s3457_s28 = smov 25  }
  0x23   :  { %s3586_s17 = sld [smem:[%s3995_s0 + %s3454_s7]]   ;;  %s3458_s7 = smov 26  }
  0x24   :  { %4027 = sst [smem:[#allocation17_spill]] %s3571_s20 }
  0x25   :  { %s3591_s20 = sld [smem:[%s3995_s0 + %s3455_s15]]   ;;  %s3459_s15 = smov 27  }
  0x27   :  { %4028 = sst [smem:[#allocation18_spill]] %s3576_s9 }
  0x28   :  { %4029 = sst [smem:[#allocation19_spill]] %s3581_s4 }
  0x29   :  { %4030 = sst [smem:[#allocation20_spill]] %s3586_s17 }
  0x2a   :  { %s3596_s9 = sld [smem:[%s3995_s0 + %s3456_s22]]   ;;  %s3460_s22 = smov 28  }
  0x2b   :  { %4031 = sst [smem:[#allocation21_spill]] %s3591_s20 }
  0x2c   :  { %s3601_s4 = sld [smem:[%s3995_s0 + %s3457_s28]]   ;;  %s3461_s28 = smov 29  }
  0x2d   :  { %s3606_s17 = sld [smem:[%s3995_s0 + %s3458_s7]]   ;;  %s3462_s7 = smov 30  }
  0x2e   :  { %s3611_s20 = sld [smem:[%s3995_s0 + %s3459_s15]]   ;;  %s3463_s15 = smov 31  }
  0x30   :  { %4032 = sst [smem:[#allocation22_spill]] %s3596_s9 }
  0x31   :  { %s3616_s9 = sld [smem:[%s3995_s0 + %s3460_s22]]  }
  0x32   :  { %4033 = sst [smem:[#allocation23_spill]] %s3601_s4 }
  0x33   :  { %4034 = sst [smem:[#allocation24_spill]] %s3606_s17 }
  0x34   :  { %4035 = sst [smem:[#allocation25_spill]] %s3611_s20 }
  0x35   :  { %s3621_s4 = sld [smem:[%s3995_s0 + %s3461_s28]]  }
  0x36   :  { %s3626_s17 = sld [smem:[%s3995_s0 + %s3462_s7]]  }
  0x37   :  { %s3631_s20 = sld [smem:[%s3995_s0 + %s3463_s15]]  }
  0x38   :  { %69 = vsyncpa [#allocation3], 0 }
  0x39   :  { %71 = vsyncpa [#allocation3 + $0x1], 0  ;;  %s3633_s22 = smov 0   ;;  %s3635_s23 = smov 0  }
  0x3a   :  { %s3637_s26 = smov 0   ;;  %s3639_s28 = smov 0  }
  0x3b LB: > { %s4036_s14 = sld [smem:[#allocation11_spill]]  ;;  %s3654_s0 = sadd.s32 4294967295, %s3431_s28   ;;  %s3431_s28 = sphi %s3639_s28, %s4067_s28   ;;  %s3427_s26 = sphi %s3637_s26, %s4066_s26   ;;  %s3423_s23 = sphi %s3635_s23, %s4065_s23   ;;  %s3419_s22 = sphi %s3633_s22, %s4064_s22  }
  0x3c   : > { %s4037_s12 = sld [smem:[#allocation13_spill]]  ;;  %s2887_s1 = sadd.s32 4294967294, %s3431_s28  }
  0x3d   : > { %s4038_s8 = sld [smem:[#allocation10_spill]]  ;;  %s3658_s2 = sadd.s32 1, %s3431_s28  }
  0x3e   : > { %s4039_s3 = sld [smem:[#allocation9_spill]]  ;;  %s760_s7 = sadd.s32 1, %s3427_s26 }
  0x3f   : > { %s757_s10 = ssub.s32 %s3431_s28, %s3658_s2  ;;  %p770_p0 = scmp.ne.s32.totalorder %s3427_s26, %s3423_s23 }
  0x40   : > { %p758_p1 = scmp.eq.s32.totalorder %s757_s10, 0  ;;  %p771_p2 = scmp.eq.s32.totalorder %s3654_s0, 1 }
  0x41   : > { %p776_p3 = scmp.ne.s32.totalorder %s3423_s23, %s3419_s22  ;;  %p777_p4 = scmp.eq.s32.totalorder %s2887_s1, 1 }
  0x42   : > { %s3669_s11 = scalar_select %p758_p1, %s3427_s26, %s760_s7  }
  0x43   : > { %p3671_p5 = por %p771_p2, %p770_p0  ;;  %p3675_p6 = por %p777_p4, %p776_p3 }
  0x44   : > { %p2890_p7 = scmp.ge.s32.totalorder %s3431_s28, 1  ;;  %p899_p8 = scmp.lt.s32.totalorder %s3431_s28, 3 }
  0x46   : > { %p900_p9 = pnand %p2890_p7, %p899_p8 }
  0x47   : > { %s4042_s5 = sld [smem:[#allocation5_spill]] (!%p900_p9)  ;;  %p992_p10 = scmp.lt.s32.totalorder (!%p900_p9), %s3654_s0, 1 }
  0x48   : > { %903 = sbr.rel (%p900_p9) target bundleno = 2824 (0xb08), region = 140  ;;  %s4043_s13 = sld [smem:[#allocation7_spill]] (!%p900_p9) }
  0x49   : > { %s4046_s6 = sld [smem:[#allocation12_spill]] (!%p900_p9) }
  0x4d   : > { %v3167_v0 = vld [vmem:[%s3496_s21 + $0x8] sm:$0xff]  ;;  %v3169_v1 = vld [vmem:[%s3496_s21 + $0x18] sm:$0xff]  ;;  %v3166_v4 = vld [vmem:[%s3496_s21] sm:$0xff]  ;;  %s3689_s18 = scalar_select %p992_p10, %s3654_s0, 1  ;;  %vm1107_vm0 = vcmask 261120   ;;  %vm1431_vm1 = vcmask 64512  }
  0x4e   : > { %v3171_v2 = vld [vmem:[%s3496_s21 + $0x28] sm:$0xff]  ;;  %v3173_v3 = vld [vmem:[%s3496_s21 + $0x38] sm:$0xff]  ;;  %1117 = vmatpush.bf16.msra.mxu0 %v3167_v0  ;;  %1142 = vmatpush.bf16.msra.mxu1 %v3169_v1  ;;  %v3168_v5 = vld [vmem:[%s3496_s21 + $0x10] sm:$0xff]  ;;  %vm1579_vm2 = vcmask 1043456  }
  0x4f   : > { %1167 = vmatpush.bf16.msra.mxu2 %v3171_v2  ;;  %1192 = vmatpush.bf16.msra.mxu3 %v3173_v3  ;;  %v3170_v6 = vld [vmem:[%s3496_s21 + $0x20] sm:$0xff]  ;;  %v3172_v7 = vld [vmem:[%s3496_s21 + $0x30] sm:$0xff]  ;;  %s3694_s1 = sshll.u32 %s3689_s18, 3  ;;  %v3175_v8 = vld [vmem:[%s3506_s29 + $0x8] sm:$0xff]  ;;  %s1002_s10 = scalar_lea.vmem %s4043_s13, %s3689_s18 }
  0x50   : > { %v3177_v9 = vld [vmem:[%s3506_s29 + $0x18] sm:$0xff]  ;;  %s995_s7 = scalar_lea.vmem %s4042_s5, %s3694_s1  ;;  %v3179_v10 = vld [vmem:[%s3506_s29 + $0x28] sm:$0xff]  ;;  %v3174_v13 = vld [vmem:[%s3506_s29] sm:$0xff]  ;;  %s4052_s5 = sld [smem:[#allocation8_spill]] }
  0x51   : > { %v3181_v11 = vld [vmem:[%s3506_s29 + $0x38] sm:$0xff]  ;;  %v3702_v12 = vld [vmem:[%s995_s7] sm:$0xff]  ;;  %v3176_v14 = vld [vmem:[%s3506_s29 + $0x10] sm:$0xff]  ;;  %s4047_s7 = sld [smem:[#allocation6_spill]] }
  0x52   : > { %1118 = vmatpush.bf16.msra.mxu0 %v3166_v4  ;;  %1143 = vmatpush.bf16.msra.mxu1 %v3168_v5  ;;  %v1082_v15 = vpack.c.bf16 %v3702_v12, %v3702_v12  ;;  %v3178_v16 = vld [vmem:[%s3506_s29 + $0x20] sm:$0xff]  ;;  %v3180_v17 = vld [vmem:[%s3506_s29 + $0x30] sm:$0xff]  ;;  %v3187_v18 = vld [vmem:[%s4038_s8 + $0x28] sm:$0xff] }
  0x53   : > { %1168 = vmatpush.bf16.msra.mxu2 %v3170_v6  ;;  %1193 = vmatpush.bf16.msra.mxu3 %v3172_v7  ;;  %v3183_v19 = vld [vmem:[%s4038_s8 + $0x8] sm:$0xff]  ;;  %v3185_v20 = vld [vmem:[%s4038_s8 + $0x18] sm:$0xff]  ;;  %v3186_v21 = vld [vmem:[%s4038_s8 + $0x20] sm:$0xff] }
  0x54   : > { %v3182_v22 = vld [vmem:[%s4038_s8] sm:$0xff]  ;;  %v3184_v23 = vld [vmem:[%s4038_s8 + $0x10] sm:$0xff]  ;;  %v3189_v24 = vld [vmem:[%s4038_s8 + $0x38] sm:$0xff] }
  0x55   : > { %2903 = vmatmul.msk.bf16.vlgmr.msra.gmra.mxu0 %vm1107_vm0, %v1082_v15  ;;  %2912 = vmatmul.msk.bf16.vlgmr.msra.gmra.mxu1 %vm1107_vm0, %v1082_v15  ;;  %v3188_v25 = vld [vmem:[%s4038_s8 + $0x30] sm:$0xff]  ;;  %v3299_v32 = vld [vmem:[%s4039_s3] ss:$0 sm:$0xff]  ;;  %v3300_v33 = vld [vmem:[%s4039_s3 + $0x1] ss:$0 sm:$0xff]  ;;  %s4060_s8 = sld [smem:[#allocation21_spill]] }
  0x56   : > { %1229 = vmatpush.bf16.msrb.mxu0 %v3175_v8  ;;  %1254 = vmatpush.bf16.msrb.mxu1 %v3177_v9  ;;  %v3296_v40 = vld [vmem:[%s3501_s25 + $0x1] ss:$0 sm:$0xff]  ;;  %v3295_v43 = vld [vmem:[%s3501_s25] ss:$0 sm:$0xff]  ;;  %v3301_v44 = vld [vmem:[%s4039_s3 + $0x2] ss:$0 sm:$0xff] }
  0x57   : > { %2921 = vmatmul.msk.bf16.vlgmr.msra.gmra.mxu2 %vm1107_vm0, %v1082_v15  ;;  %2930 = vmatmul.msk.bf16.vlgmr.msra.gmra.mxu3 %vm1107_vm0, %v1082_v15  ;;  %v3302_v45 = vld [vmem:[%s4039_s3 + $0x3] ss:$0 sm:$0xff]  ;;  %v3297_v57 = vld [vmem:[%s3501_s25 + $0x2] ss:$0 sm:$0xff]  ;;  %v3303_v6 = vld [vmem:[%s4036_s14] ss:$0 sm:$0xff]  ;;  %s999_s3 = scalar_lea.vmem %s4047_s7, %s3694_s1 }
  0x58   : > { %1279 = vmatpush.bf16.msrb.mxu2 %v3179_v10  ;;  %1304 = vmatpush.bf16.msrb.mxu3 %v3181_v11  ;;  %v3298_v58 = vld [vmem:[%s3501_s25 + $0x3] ss:$0 sm:$0xff]  ;;  %v3304_v7 = vld [vmem:[%s4036_s14 + $0x1] ss:$0 sm:$0xff]  ;;  %s4050_s7 = sld [smem:[#allocation14_spill]] }
  0x5a   : > { %1230 = vmatpush.bf16.msrb.mxu0 %v3174_v13  ;;  %1255 = vmatpush.bf16.msrb.mxu1 %v3176_v14  ;;  %v3305_v13 = vld [vmem:[%s4036_s14 + $0x2] ss:$0 sm:$0xff] }
  0x5c   : > { %1280 = vmatpush.bf16.msrb.mxu2 %v3178_v16  ;;  %1305 = vmatpush.bf16.msrb.mxu3 %v3180_v17 }
  0x5e   : > { %1341 = vmatpush.bf16.msra.mxu0 %v3183_v19  ;;  %1366 = vmatpush.bf16.msra.mxu1 %v3185_v20 }
  0x60   : > { %1391 = vmatpush.bf16.msra.mxu2 %v3187_v18  ;;  %1416 = vmatpush.bf16.msra.mxu3 %v3189_v24  ;;  %v3306_v24 = vld [vmem:[%s4036_s14 + $0x3] ss:$0 sm:$0xff] }
  0x62   : > { %1342 = vmatpush.bf16.msra.mxu0 %v3182_v22  ;;  %1367 = vmatpush.bf16.msra.mxu1 %v3184_v23 }
  0x64   : > { %1392 = vmatpush.bf16.msra.mxu2 %v3186_v21  ;;  %1417 = vmatpush.bf16.msra.mxu3 %v3188_v25 }
  0x65   : > { %2939 = vmatmul.msk.bf16.vlgmr.msrb.gmra.mxu0 %vm1107_vm0, %v1082_v15  ;;  %2948 = vmatmul.msk.bf16.vlgmr.msrb.gmra.mxu1 %vm1107_vm0, %v1082_v15 }
  0x67   : > { %2957 = vmatmul.msk.bf16.vlgmr.msrb.gmra.mxu2 %vm1107_vm0, %v1082_v15  ;;  %2966 = vmatmul.msk.bf16.vlgmr.msrb.gmra.mxu3 %vm1107_vm0, %v1082_v15 }
  0x75   : > { %2975 = vmatmul.msk.bf16.vlgmr.msra.gmra.mxu0 %vm1107_vm0, %v1082_v15  ;;  %2984 = vmatmul.msk.bf16.vlgmr.msra.gmra.mxu1 %vm1107_vm0, %v1082_v15 }
  0x77   : > { %2993 = vmatmul.msk.bf16.vlgmr.msra.gmra.mxu2 %vm1107_vm0, %v1082_v15  ;;  %3002 = vmatmul.msk.bf16.vlgmr.msra.gmra.mxu3 %vm1107_vm0, %v1082_v15 }
  0xd2   : > { %v1120_v26 = vpop.f32.mrf.mxu0  ;;  %v1145_v27 = vpop.f32.mrf.mxu1 }
  0xd3   : > { %v1146_v48 = vadd.f32 %v3296_v40, %v1145_v27  ;;  %v1121_v51 = vadd.f32 %v3295_v43, %v1120_v26 }
  0xd5   : > { %v1424_v56 = vpack.c.bf16 %v1146_v48, %v1146_v48  ;;  %v1423_v61 = vpack.c.bf16 %v1121_v51, %v1121_v51 }
  0xda   : > { %v1170_v28 = vpop.f32.mrf.mxu2  ;;  %v1195_v29 = vpop.f32.mrf.mxu3 }
  0xdb   : > { %v1122_v30 = vpop.f32.mrf.mxu0  ;;  %v1147_v31 = vpop.f32.mrf.mxu1  ;;  %v1171_v0 = vadd.f32 %v3297_v57, %v1170_v28  ;;  %v1196_v1 = vadd.f32 %v3298_v58, %v1195_v29 }
  0xdc   : > { %v1013_v31 = vld [vmem:[%s1002_s10] sm:$0x1]  ;;  %s4048_s10 = sld [smem:[#allocation16_spill]] }
  0xdd   : > { %v1425_v4 = vpack.c.bf16 %v1171_v0, %v1171_v0  ;;  %v1426_v5 = vpack.c.bf16 %v1196_v1, %v1196_v1  ;;  %vm1508_vm3 = vcmp.gt.f32.partialorder %v1013_v31, 0.0 }
  0xe2   : > { %v1172_v34 = vpop.f32.mrf.mxu2  ;;  %v1197_v35 = vpop.f32.mrf.mxu3 }
  0xe3   : > { %v1232_v36 = vpop.f32.mrf.mxu0  ;;  %v1257_v37 = vpop.f32.mrf.mxu1 }
  0xe4   : > { %v1233_v38 = vadd.f32 %v3299_v32, %v1232_v36  ;;  %v1258_v39 = vadd.f32 %v3300_v33, %v1257_v37  ;;  %v1509_v32 = vlaneseq  ;;  %v3464_v33 = vmov 0  }
  0xe5   : > { %v1514_v34 = vsel %vm1508_vm3, 1, %v3464_v33 }
  0xe6   : > { %v1427_v41 = vpack.c.bf16 %v1233_v38, %v1233_v38  ;;  %v1428_v42 = vpack.c.bf16 %v1258_v39, %v1258_v39  ;;  %v1510_v35 = vshrl.u32 %v1509_v32, 7  ;;  %v1512_v36 = vand.u32 127, %v1509_v32  ;;  %v1077_v32 = vld [vmem:[%s3526_s19 + $0x8] sm:$0xf] }
  0xe7   : > { %v1515_v37 = vperm.slane %v1514_v34, 0  ;;  %v1699_v34 = vsel %vm1579_vm2, %v1077_v32, 0 }
  0xe8   : > { %v1436_v46 = vsel %vm1431_vm1, %v1427_v41, 0  ;;  %v1455_v47 = vsel %vm1431_vm1, %v1428_v42, 0  ;;  %vm1513_vm4 = vcmp.le.s32.totalorder %v1512_v36, %v1510_v35  ;;  %v1078_v35 = vld [vmem:[%s3526_s19 + $0xc] sm:$0xf] }
  0xe9   : > { %1445 = vmatpush.bf16.xpose.msrb.mxu0 %v1436_v46  ;;  %1464 = vmatpush.bf16.xpose.msrb.mxu1 %v1455_v47  ;;  %vm1516_vm5 = vcmp.eq.s32.totalorder %v1515_v37, 1  ;;  %v1718_v36 = vsel %vm1579_vm2, %v1078_v35, 0  ;;  %v3204_v35 = vld [vmem:[%s3556_s27 + $0x30] sm:$0xff] }
  0xea   : > { %v1282_v49 = vpop.f32.mrf.mxu2  ;;  %v1307_v50 = vpop.f32.mrf.mxu3  ;;  %vm3757_vm6 = vmand %vm1516_vm5, %vm1513_vm4 }
  0xeb   : > { %v1283_v52 = vadd.f32 %v3301_v44, %v1282_v49  ;;  %v1308_v53 = vadd.f32 %v3302_v45, %v1307_v50  ;;  %v1234_v54 = vpop.f32.mrf.mxu0  ;;  %v1259_v55 = vpop.f32.mrf.mxu1 }
  0xed   : > { %v1429_v59 = vpack.c.bf16 %v1283_v52, %v1283_v52  ;;  %v1430_v60 = vpack.c.bf16 %v1308_v53, %v1308_v53 }
  0xef   : > { %v1474_v62 = vsel %vm1431_vm1, %v1429_v59, 0  ;;  %v1493_v63 = vsel %vm1431_vm1, %v1430_v60, 0 }
  0xf0   : > { %1483 = vmatpush.bf16.xpose.msrb.mxu2 %v1474_v62  ;;  %1502 = vmatpush.bf16.xpose.msrb.mxu3 %v1493_v63 }
  0xf1   : > { %3003 = vmatmul.msk.bf16.vlgmr.msrb.gmra.mxu0 %vm1431_vm1, %v1423_v61  ;;  %3004 = vmatmul.msk.bf16.vlgmr.msrb.gmra.mxu1 %vm1431_vm1, %v1424_v56 }
  0xf2   : > { %v1284_v2 = vpop.f32.mrf.mxu2  ;;  %v1309_v3 = vpop.f32.mrf.mxu3 }
  0xf3   : > { %v1344_v8 = vpop.f32.mrf.mxu0  ;;  %v1369_v9 = vpop.f32.mrf.mxu1 }
  0xf4   : > { %v1345_v10 = vadd.f32 %v3303_v6, %v1344_v8  ;;  %v1370_v11 = vadd.f32 %v3304_v7, %v1369_v9 }
  0xf6   : > { %v1572_v14 = vpack.c.bf16 %v1345_v10, %v1345_v10  ;;  %v1573_v15 = vpack.c.bf16 %v1370_v11, %v1370_v11 }
  0xf7   : > { %3005 = vmatmul.msk.bf16.vlgmr.msrb.gmra.mxu2 %vm1431_vm1, %v1425_v4  ;;  %3006 = vmatmul.msk.bf16.vlgmr.msrb.gmra.mxu3 %vm1431_vm1, %v1426_v5 }
  0xf8   : > { %v1581_v17 = vsel %vm1579_vm2, %v1572_v14, 0  ;;  %v1600_v18 = vsel %vm1579_vm2, %v1573_v15, 0 }
  0xf9   : > { %1590 = vmatpush.bf16.msra.mxu0 %v1581_v17  ;;  %1609 = vmatpush.bf16.msra.mxu1 %v1600_v18 }
  0xfa   : > { %v1394_v16 = vpop.f32.mrf.mxu2  ;;  %v1419_v26 = vpop.f32.mrf.mxu3 }
  0xfb   : > { %v1395_v19 = vadd.f32 %v3305_v13, %v1394_v16  ;;  %v1346_v21 = vpop.f32.mrf.mxu0  ;;  %v1371_v22 = vpop.f32.mrf.mxu1  ;;  %v1420_v27 = vadd.f32 %v3306_v24, %v1419_v26 }
  0xfd   : > { %v1574_v20 = vpack.c.bf16 %v1395_v19, %v1395_v19  ;;  %v1575_v28 = vpack.c.bf16 %v1420_v27, %v1420_v27 }
  0xff   : > { %v1619_v23 = vsel %vm1579_vm2, %v1574_v20, 0  ;;  %v1638_v29 = vsel %vm1579_vm2, %v1575_v28, 0  ;;  %v1075_v28 = vld [vmem:[%s3526_s19] sm:$0xf] }
 0x100   : > { %1628 = vmatpush.bf16.msra.mxu2 %v1619_v23  ;;  %1647 = vmatpush.bf16.msra.mxu3 %v1638_v29  ;;  %v1661_v29 = vsel %vm1579_vm2, %v1075_v28, 0 }
 0x101   : > { %1670 = vmatpush.bf16.msrb.mxu0 %v1661_v29  ;;  %v3205_v29 = vld [vmem:[%s3556_s27 + $0x38] sm:$0xff] }
 0x102   : > { %v1396_v25 = vpop.f32.mrf.mxu2  ;;  %v1421_v30 = vpop.f32.mrf.mxu3 }
 0x103   : > { %v1076_v30 = vld [vmem:[%s3526_s19 + $0x4] sm:$0xf] }
 0x104   : > { %v1680_v31 = vsel %vm1579_vm2, %v1076_v30, 0  ;;  %1708 = vmatpush.bf16.msrb.mxu2 %v1699_v34  ;;  %1727 = vmatpush.bf16.msrb.mxu3 %v1718_v36  ;;  %v3198_v30 = vld [vmem:[%s3556_s27] sm:$0xff] }
 0x105   : > { %1689 = vmatpush.bf16.msrb.mxu1 %v1680_v31  ;;  %v3200_v31 = vld [vmem:[%s3556_s27 + $0x10] sm:$0xff]  ;;  %v3202_v34 = vld [vmem:[%s3556_s27 + $0x20] sm:$0xff] }
 0x16e   : > { %v1447_v39 = vpop.f32.mrf.mxu0  ;;  %v1466_v40 = vpop.f32.mrf.mxu1 }
 0x16f   : > { %v1520_v41 = vsel %vm3757_vm6, %v1447_v39, -1e+10  ;;  %v1521_v43 = vsel %vm3757_vm6, %v1466_v40, -1e+10 }
 0x170   : > { %v1524_v42 = vsel %vm1431_vm1, %v1520_v41, -inf  ;;  %v1527_v46 = vsel %vm1431_vm1, %v1521_v43, -inf }
 0x171   : > { %1525 = vmax.xlane.f32.xlu1 %v1524_v42 }
 0x176   : > { %v1449_v44 = vpop.f32.mrf.mxu0  ;;  %v1468_v45 = vpop.f32.mrf.mxu1 }
 0x179   : > { %1528 = vmax.xlane.f32.xlu1 %v1527_v46 }
 0x17a   : > { %v1485_v47 = vpop.f32.mrf.mxu2  ;;  %v1504_v48 = vpop.f32.mrf.mxu3 }
 0x17b   : > { %v1522_v49 = vsel %vm3757_vm6, %v1485_v47, -1e+10  ;;  %v1523_v51 = vsel %vm3757_vm6, %v1504_v48, -1e+10 }
 0x17c   : > { %v1530_v50 = vsel %vm1431_vm1, %v1522_v49, -inf  ;;  %v1533_v54 = vsel %vm1431_vm1, %v1523_v51, -inf }
 0x17d   : > { %1531 = vmax.xlane.f32.xlu0 %v1530_v50 }
 0x182   : > { %v1487_v52 = vpop.f32.mrf.mxu2  ;;  %v1506_v53 = vpop.f32.mrf.mxu3 }
 0x185   : > { %1534 = vmax.xlane.f32.xlu0 %v1533_v54 }
 0x1e4   : > { %v1526_v55 = vpop.xlane.xlu1 %1525 }
 0x1e5   : > { %v1536_v56 = vsub.f32 %v1520_v41, %v1526_v55 }
 0x1e7   : > { %v1540_v57 = vmul.f32 1.442695, %v1536_v56 }
 0x1e9   : > { %3329 = vpow2.f32 %v1540_v57 }
 0x1ec   : > { %v1529_v58 = vpop.xlane.xlu1 %1528 }
 0x1ed   : > { %v1537_v59 = vsub.f32 %v1521_v43, %v1529_v58 }
 0x1ef   : > { %v3330_v60 = vpop.eup %3329  ;;  %v1542_v61 = vmul.f32 1.442695, %v1537_v59 }
 0x1f0   : > { %v1532_v62 = vpop.xlane.xlu0 %1531  ;;  %v1548_v63 = vsel %vm1431_vm1, %v3330_v60, 0.0 }
 0x1f1   : > { %3331 = vpow2.f32 %v1542_v61  ;;  %v1538_v0 = vsub.f32 %v1522_v49, %v1532_v62  ;;  %1549 = vadd.xlane.f32.xlu0 %v1548_v63  ;;  %v3307_v61 = vld [vmem:[%s3531_s24] ss:$0 sm:$0xff] }
 0x1f3   : > { %v1544_v1 = vmul.f32 1.442695, %v1538_v0 }
 0x1f5   : > { %3333 = vpow2.f32 %v1544_v1 }
 0x1f7   : > { %v3332_v2 = vpop.eup %3331 }
 0x1f8   : > { %v1535_v3 = vpop.xlane.xlu0 %1534  ;;  %v1551_v4 = vsel %vm1431_vm1, %v3332_v2, 0.0 }
 0x1f9   : > { %v1539_v5 = vsub.f32 %v1523_v51, %v1535_v3  ;;  %1552 = vadd.xlane.f32.xlu1 %v1551_v4  ;;  %v3465_v4 = vmov 32.0  }
 0x1fb   : > { %v3334_v6 = vpop.eup %3333  ;;  %v1546_v7 = vmul.f32 1.442695, %v1539_v5 }
 0x1fc   : > { %v1554_v8 = vsel %vm1431_vm1, %v3334_v6, 0.0 }
 0x1fd   : > { %3335 = vpow2.f32 %v1546_v7  ;;  %1555 = vadd.xlane.f32.xlu2 %v1554_v8 }
 0x203   : > { %v3336_v9 = vpop.eup %3335 }
 0x204   : > { %v1557_v10 = vsel %vm1431_vm1, %v3336_v9, 0.0 }
 0x205   : > { %1558 = vadd.xlane.f32.xlu2 %v1557_v10 }
 0x264   : > { %v1550_v11 = vpop.xlane.xlu0 %1549 }
 0x265   : > { %3337 = vrcp.f32 %v1550_v11 }
 0x26b   : > { %v3338_v13 = vpop.eup %3337 }
 0x26c   : > { %v1564_v14 = vmul.f32 %v3338_v13, %v3330_v60  ;;  %v1553_v15 = vpop.xlane.xlu1 %1552 }
 0x26d   : > { %3339 = vrcp.f32 %v1553_v15 }
 0x26e   : > { %v1568_v16 = vpack.c.bf16 %v1564_v14, %v1564_v14 }
 0x270   : > { %v1556_v17 = vpop.xlane.xlu2 %1555  ;;  %3007 = vmatmul.msk.bf16.vlgmr.msra.gmra.mxu0 %vm1431_vm1, %v1568_v16  ;;  %v3191_v16 = vld [vmem:[%s4037_s12 + $0x8] sm:$0xff] }
 0x271   : > { %3341 = vrcp.f32 %v1556_v17  ;;  %v3193_v17 = vld [vmem:[%s4037_s12 + $0x18] sm:$0xff]  ;;  %1883 = vmatpush.bf16.msra.mxu0 %v3191_v16 }
 0x273   : > { %v3340_v18 = vpop.eup %3339 }
 0x274   : > { %v1565_v19 = vmul.f32 %v3340_v18, %v3332_v2  ;;  %v3195_v18 = vld [vmem:[%s4037_s12 + $0x28] sm:$0xff] }
 0x276   : > { %v1569_v20 = vpack.c.bf16 %v1565_v19, %v1565_v19  ;;  %v3197_v19 = vld [vmem:[%s4037_s12 + $0x38] sm:$0xff] }
 0x277   : > { %v3342_v21 = vpop.eup %3341 }
 0x278   : > { %v1566_v22 = vmul.f32 %v3342_v21, %v3334_v6  ;;  %v1559_v23 = vpop.xlane.xlu2 %1558  ;;  %3008 = vmatmul.msk.bf16.vlgmr.msra.gmra.mxu1 %vm1431_vm1, %v1569_v20  ;;  %v3190_v20 = vld [vmem:[%s4037_s12] sm:$0xff]  ;;  %v3192_v21 = vld [vmem:[%s4037_s12 + $0x10] sm:$0xff] }
 0x279   : > { %3343 = vrcp.f32 %v1559_v23  ;;  %1908 = vmatpush.bf16.msra.mxu1 %v3193_v17  ;;  %v3196_v23 = vld [vmem:[%s4037_s12 + $0x30] sm:$0xff]  ;;  %1884 = vmatpush.bf16.msra.mxu0 %v3190_v20 }
 0x27a   : > { %v1570_v24 = vpack.c.bf16 %v1566_v22, %v1566_v22  ;;  %3345 = vrcp.f32 %v3465_v4  ;;  %v3194_v22 = vld [vmem:[%s4037_s12 + $0x20] sm:$0xff] }
 0x27c   : > { %3009 = vmatmul.msk.bf16.vlgmr.msra.gmra.mxu2 %vm1431_vm1, %v1570_v24 }
 0x27d   : > { %1933 = vmatpush.bf16.msra.mxu2 %v3195_v18  ;;  %1909 = vmatpush.bf16.msra.mxu1 %v3192_v21 }
 0x27f   : > { %v3344_v25 = vpop.eup %3343 }
 0x280   : > { %v1567_v26 = vmul.f32 %v3344_v25, %v3336_v9  ;;  %v3346_v5 = vpop.eup %3345  ;;  %v3199_v25 = vld [vmem:[%s3556_s27 + $0x8] sm:$0xff] }
 0x281   : > { %v1749_v6 = vmul.f32 32.0, %v3346_v5  ;;  %vm1753_vm7 = vweird.f32 %v3346_v5  ;;  %1934 = vmatpush.bf16.msra.mxu2 %v3194_v22 }
 0x282   : > { %v1571_v27 = vpack.c.bf16 %v1567_v26, %v1567_v26  ;;  %v3201_v26 = vld [vmem:[%s3556_s27 + $0x18] sm:$0xff] }
 0x283   : > { %v1750_v7 = vsub.f32 1.0, %v1749_v6 }
 0x284   : > { %3010 = vmatmul.msk.bf16.vlgmr.msra.gmra.mxu3 %vm1431_vm1, %v1571_v27  ;;  %v3203_v27 = vld [vmem:[%s3556_s27 + $0x28] sm:$0xff] }
 0x285   : > { %v1751_v8 = vmul.f32 %v3346_v5, %v1750_v7  ;;  %1958 = vmatpush.bf16.msra.mxu3 %v3197_v19 }
 0x287   : > { %v1752_v9 = vadd.f32 %v3346_v5, %v1751_v8 }
 0x289   : > { %v3800_v10 = vsel %vm1753_vm7, %v3346_v5, %v1752_v9  ;;  %1959 = vmatpush.bf16.msra.mxu3 %v3196_v23  ;;  %v3310_v9 = vld [vmem:[%s4050_s7] ss:$0 sm:$0xff] }
 0x2ed   : > { %v1592_v37 = vpop.f32.mrf.mxu0 }
 0x2ee   : > { %v1653_v38 = vpack.c.bf16 %v1592_v37, %v1592_v37 }
 0x2f0   : > { %3011 = vmatmul.msk.bf16.vlgmr.msrb.gmra.mxu0 %vm1431_vm1, %v1653_v38 }
 0x2f1   : > { %1999 = vmatpush.bf16.msrb.mxu0 %v3199_v25 }
 0x2f5   : > { %v1594_v39 = vpop.f32.mrf.mxu0  ;;  %v1611_v40 = vpop.f32.mrf.mxu1  ;;  %2000 = vmatpush.bf16.msrb.mxu0 %v3198_v30 }
 0x2f6   : > { %v1654_v41 = vpack.c.bf16 %v1611_v40, %v1611_v40 }
 0x2f8   : > { %3012 = vmatmul.msk.bf16.vlgmr.msrb.gmra.mxu1 %vm1431_vm1, %v1654_v41 }
 0x2f9   : > { %2024 = vmatpush.bf16.msrb.mxu1 %v3201_v26  ;;  %v3312_v26 = vld [vmem:[%s4050_s7 + $0x2] ss:$0 sm:$0xff] }
 0x2fd   : > { %v1613_v42 = vpop.f32.mrf.mxu1  ;;  %2025 = vmatpush.bf16.msrb.mxu1 %v3200_v31 }
 0x2fe   : > { %v3308_v42 = vld [vmem:[%s3536_s30] ss:$0 sm:$0xff] }
 0x2ff   : > { %v1630_v43 = vpop.f32.mrf.mxu2 }
 0x300   : > { %v1655_v44 = vpack.c.bf16 %v1630_v43, %v1630_v43 }
 0x302   : > { %3013 = vmatmul.msk.bf16.vlgmr.msrb.gmra.mxu2 %vm1431_vm1, %v1655_v44  ;;  %v3309_v44 = vld [vmem:[%s4046_s6] ss:$0 sm:$0xff]  ;;  %s4057_s6 = sld [smem:[#allocation22_spill]] }
 0x303   : > { %2049 = vmatpush.bf16.msrb.mxu2 %v3203_v27  ;;  %v3313_v27 = vld [vmem:[%s4050_s7 + $0x3] ss:$0 sm:$0xff] }
 0x307   : > { %v1632_v45 = vpop.f32.mrf.mxu2  ;;  %v1649_v46 = vpop.f32.mrf.mxu3  ;;  %2050 = vmatpush.bf16.msrb.mxu2 %v3202_v34 }
 0x308   : > { %v1656_v47 = vpack.c.bf16 %v1649_v46, %v1649_v46 }
 0x30a   : > { %3014 = vmatmul.msk.bf16.vlgmr.msrb.gmra.mxu3 %vm1431_vm1, %v1656_v47 }
 0x30b   : > { %2074 = vmatpush.bf16.msrb.mxu3 %v3205_v29 }
 0x30f   : > { %v1651_v48 = vpop.f32.mrf.mxu3  ;;  %2075 = vmatpush.bf16.msrb.mxu3 %v3204_v35 }
 0x36d   : > { %v1672_v49 = vpop.f32.mrf.mxu0 }
 0x36e   : > { %v1733_v55 = vsel %vm1107_vm0, %v1672_v49, 0.0  ;;  %v1012_v49 = vld [vmem:[%s999_s3] sm:$0xff]  ;;  %s4049_s3 = sld [smem:[#allocation15_spill]] }
 0x375   : > { %v1674_v50 = vpop.f32.mrf.mxu0  ;;  %v1691_v51 = vpop.f32.mrf.mxu1 }
 0x376   : > { %v1734_v54 = vsel %vm1107_vm0, %v1691_v51, 0.0  ;;  %v1965_v50 = vpack.c.bf16 %v1012_v49, %v1012_v49  ;;  %v3211_v51 = vld [vmem:[%s4048_s10 + $0x28] sm:$0xff] }
 0x377   : > { %v1735_v57 = vadd.f32 %v1734_v54, %v1733_v55  ;;  %v3213_v54 = vld [vmem:[%s4048_s10 + $0x38] sm:$0xff]  ;;  %v3210_v55 = vld [vmem:[%s4048_s10 + $0x20] sm:$0xff] }
 0x37d   : > { %v1693_v52 = vpop.f32.mrf.mxu1 }
 0x37e   : > { %v3207_v52 = vld [vmem:[%s4048_s10 + $0x8] sm:$0xff] }
 0x385   : > { %v1710_v53 = vpop.f32.mrf.mxu2 }
 0x386   : > { %v1736_v56 = vsel %vm1107_vm0, %v1710_v53, 0.0  ;;  %v3209_v53 = vld [vmem:[%s4048_s10 + $0x18] sm:$0xff] }
 0x387   : > { %v1737_v58 = vadd.f32 %v1736_v56, %v1735_v57  ;;  %v3206_v56 = vld [vmem:[%s4048_s10] sm:$0xff]  ;;  %v3208_v57 = vld [vmem:[%s4048_s10 + $0x10] sm:$0xff] }
 0x38d   : > { %v1712_v59 = vpop.f32.mrf.mxu2  ;;  %v1729_v60 = vpop.f32.mrf.mxu3 }
 0x38e   : > { %v1738_v62 = vsel %vm1107_vm0, %v1729_v60, 0.0 }
 0x38f   : > { %v1739_v63 = vadd.f32 %v1738_v62, %v1737_v58  ;;  %v3212_v58 = vld [vmem:[%s4048_s10 + $0x30] sm:$0xff]  ;;  %s4062_s10 = sld [smem:[#allocation25_spill]] }
 0x391   : > { %v1743_v0 = vadd.f32 %v3307_v61, %v1739_v63 }
 0x393   : > { %v1744_v1 = vadd.f32 %v1743_v0, %v3702_v12 }
 0x395   : > { %v1731_v2 = vpop.f32.mrf.mxu3  ;;  %v1745_v3 = vsel %vm1107_vm0, %v1744_v1, 0.0 }
 0x396   : > { %1746 = vadd.xlane.f32.xlu2 %v1745_v3  ;;  %v3315_v2 = vld [vmem:[%s4049_s3 + $0x1] ss:$0 sm:$0xff] }
 0x409   : > { %v1747_v12 = vpop.xlane.xlu2 %1746 }
 0x40a   : > { %v1755_v11 = vmul.f32 %v3800_v10, %v1747_v12 }
 0x40c   : > { %v1756_v13 = vsub.f32 %v1744_v1, %v1755_v11  ;;  %v3314_v1 = vld [vmem:[%s4049_s3] ss:$0 sm:$0xff] }
 0x40e   : > { %v1757_v14 = vmul.f32 %v1756_v13, %v1756_v13 }
 0x410   : > { %v1758_v15 = vsel %vm1107_vm0, %v1757_v14, 0.0  ;;  %v3316_v14 = vld [vmem:[%s4049_s3 + $0x2] ss:$0 sm:$0xff] }
 0x411   : > { %1759 = vadd.xlane.f32.xlu0 %v1758_v15  ;;  %v3317_v15 = vld [vmem:[%s4049_s3 + $0x3] ss:$0 sm:$0xff]  ;;  %s4051_s3 = sld [smem:[#allocation17_spill]] }
 0x484   : > { %v1760_v24 = vpop.xlane.xlu0 %1759 }
 0x485   : > { %v1761_v28 = vmul.f32 %v1760_v24, %v3800_v10 }
 0x487   : > { %v1762_v32 = vadd.f32 1e-05, %v1761_v28 }
 0x489   : > { %3347 = vrsqrt.f32 %v1762_v32  ;;  %vm1769_vm9 = vweird.f32 %v1762_v32 }
 0x48f   : > { %v3348_v36 = vpop.eup %3347 }
 0x490   : > { %v1764_v37 = vmul.f32 %v3348_v36, %v1762_v32  ;;  %vm1770_vm8 = vweird.f32 %v3348_v36 }
 0x491   : > { %vm1771_vm10 = vmor %vm1769_vm9, %vm1770_vm8 }
 0x492   : > { %v1765_v38 = vmul.f32 %v3348_v36, %v1764_v37 }
 0x494   : > { %v1766_v39 = vmul.f32 0.5, %v1765_v38 }
 0x496   : > { %v1767_v40 = vsub.f32 1.5, %v1766_v39 }
 0x498   : > { %v1768_v41 = vmul.f32 %v3348_v36, %v1767_v40 }
 0x49a   : > { %v1772_v43 = vsel %vm1771_vm10, %v3348_v36, %v1768_v41  ;;  %v3318_v41 = vld [vmem:[%s4051_s3] ss:$0 sm:$0xff] }
 0x49b   : > { %v1773_v45 = vmul.f32 %v1772_v43, %v1756_v13  ;;  %v3311_v13 = vld [vmem:[%s4050_s7 + $0x1] ss:$0 sm:$0xff]  ;;  %s4058_s7 = sld [smem:[#allocation24_spill]] }
 0x49d   : > { %v1777_v46 = vmul.f32 %v3308_v42, %v1773_v45  ;;  %v3319_v42 = vld [vmem:[%s4051_s3 + $0x1] ss:$0 sm:$0xff] }
 0x49f   : > { %v3823_v47 = vadd.f32 %v3309_v44, %v1777_v46 }
 0x4a1   : > { %v1849_v48 = vpack.c.bf16 %v3823_v47, %v3823_v47 }
 0x4a3   : > { %3023 = vmatmul.msk.bf16.vlgmr.msra.gmra.mxu0 %vm1107_vm0, %v1849_v48  ;;  %3032 = vmatmul.msk.bf16.vlgmr.msra.gmra.mxu1 %vm1107_vm0, %v1849_v48 }
 0x4a4   : > { %3041 = vmatmul.msk.bf16.vlgmr.msra.gmra.mxu2 %vm1107_vm0, %v1849_v48  ;;  %3050 = vmatmul.msk.bf16.vlgmr.msra.gmra.mxu3 %vm1107_vm0, %v1849_v48  ;;  %v3320_v48 = vld [vmem:[%s4051_s3 + $0x2] ss:$0 sm:$0xff] }
 0x4a5   : > { %2161 = vmatpush.bf16.msra.mxu2 %v3211_v51  ;;  %2111 = vmatpush.bf16.msra.mxu0 %v3207_v52  ;;  %v3321_v52 = vld [vmem:[%s4051_s3 + $0x3] ss:$0 sm:$0xff]  ;;  %s1005_s3 = scalar_lea.vmem %s4052_s5, %s3689_s18  ;;  %s4006_s5 = sand.u32 1, %s3423_s23  }
 0x4a6   : > { %2136 = vmatpush.bf16.msra.mxu1 %v3209_v53  ;;  %2186 = vmatpush.bf16.msra.mxu3 %v3213_v54  ;;  %s2891_s18 = sshll.u32 %s4006_s5, 5  ;;  %s4056_s5 = sld [smem:[#allocation19_spill]] }
 0x4a9   : > { %2162 = vmatpush.bf16.msra.mxu2 %v3210_v55  ;;  %2112 = vmatpush.bf16.msra.mxu0 %v3206_v56 }
 0x4aa   : > { %2137 = vmatpush.bf16.msra.mxu1 %v3208_v57  ;;  %2187 = vmatpush.bf16.msra.mxu3 %v3212_v58 }
 0x4b3   : > { %3059 = vmatmul.msk.bf16.vlgmr.msrb.gmra.mxu0 %vm1107_vm0, %v1965_v50  ;;  %3068 = vmatmul.msk.bf16.vlgmr.msrb.gmra.mxu1 %vm1107_vm0, %v1965_v50 }
 0x4b4   : > { %3077 = vmatmul.msk.bf16.vlgmr.msrb.gmra.mxu2 %vm1107_vm0, %v1965_v50  ;;  %3086 = vmatmul.msk.bf16.vlgmr.msrb.gmra.mxu3 %vm1107_vm0, %v1965_v50 }
 0x4c3   : > { %3095 = vmatmul.msk.bf16.vlgmr.msra.gmra.mxu0 %vm1107_vm0, %v1965_v50  ;;  %3104 = vmatmul.msk.bf16.vlgmr.msra.gmra.mxu1 %vm1107_vm0, %v1965_v50 }
 0x4c4   : > { %3113 = vmatmul.msk.bf16.vlgmr.msra.gmra.mxu2 %vm1107_vm0, %v1965_v50  ;;  %3122 = vmatmul.msk.bf16.vlgmr.msra.gmra.mxu3 %vm1107_vm0, %v1965_v50 }
 0x520   : > { %v1886_v59 = vpop.f32.mrf.mxu0  ;;  %v1911_v60 = vpop.f32.mrf.mxu1 }
 0x521   : > { %v1887_v20 = vadd.f32 %v3310_v9, %v1886_v59  ;;  %v1912_v21 = vadd.f32 %v3311_v13, %v1911_v60 }
 0x523   : > { %v2193_v30 = vpack.c.bf16 %v1887_v20, %v1887_v20  ;;  %v2194_v31 = vpack.c.bf16 %v1912_v21, %v1912_v21 }
 0x527   : > { %v1936_v61 = vpop.f32.mrf.mxu2  ;;  %v1961_v62 = vpop.f32.mrf.mxu3 }
 0x528   : > { %v1888_v63 = vpop.f32.mrf.mxu0  ;;  %v1913_v0 = vpop.f32.mrf.mxu1  ;;  %v1937_v35 = vadd.f32 %v3312_v26, %v1936_v61  ;;  %v1962_v36 = vadd.f32 %v3313_v27, %v1961_v62 }
 0x52a   : > { %v2195_v39 = vpack.c.bf16 %v1937_v35, %v1937_v35  ;;  %v2196_v40 = vpack.c.bf16 %v1962_v36, %v1962_v36 }
 0x52f   : > { %v1938_v3 = vpop.f32.mrf.mxu2  ;;  %v1963_v4 = vpop.f32.mrf.mxu3 }
 0x530   : > { %v2002_v5 = vpop.f32.mrf.mxu0  ;;  %v2027_v6 = vpop.f32.mrf.mxu1 }
 0x531   : > { %v2003_v7 = vadd.f32 %v3314_v1, %v2002_v5  ;;  %v2028_v8 = vadd.f32 %v3315_v2, %v2027_v6  ;;  %v1014_v2 = vld [vmem:[%s1005_s3] sm:$0x1]  ;;  %s3908_s3 = scalar_lea.vmem [#allocation2], %s2891_s18  ;;  %s4055_s18 = sld [smem:[#allocation18_spill]] }
 0x532   : > { %vm2277_vm11 = vcmp.gt.f32.partialorder %v1014_v2, 0.0 }
 0x533   : > { %v2197_v12 = vpack.c.bf16 %v2003_v7, %v2003_v7  ;;  %v2198_v11 = vpack.c.bf16 %v2028_v8, %v2028_v8  ;;  %v2278_v3 = vsel %vm2277_vm11, 1, %v3464_v33 }
 0x534   : > { %v2279_v4 = vperm.slane %v2278_v3, 0 }
 0x535   : > { %v2205_v16 = vsel %vm1431_vm1, %v2197_v12, 0  ;;  %v2224_v17 = vsel %vm1431_vm1, %v2198_v11, 0 }
 0x536   : > { %2214 = vmatpush.bf16.xpose.msrb.mxu0 %v2205_v16  ;;  %2233 = vmatpush.bf16.xpose.msrb.mxu1 %v2224_v17  ;;  %vm3876_vm12 = vcmp.eq.s32.totalorder %v2279_v4, 1 }
 0x537   : > { %v2052_v18 = vpop.f32.mrf.mxu2  ;;  %v2077_v19 = vpop.f32.mrf.mxu3 }
 0x538   : > { %v2053_v22 = vadd.f32 %v3316_v14, %v2052_v18  ;;  %v2078_v23 = vadd.f32 %v3317_v15, %v2077_v19  ;;  %v2004_v24 = vpop.f32.mrf.mxu0  ;;  %v2029_v25 = vpop.f32.mrf.mxu1 }
 0x53a   : > { %v2199_v28 = vpack.c.bf16 %v2053_v22, %v2053_v22  ;;  %v2200_v29 = vpack.c.bf16 %v2078_v23, %v2078_v23 }
 0x53c   : > { %v2243_v32 = vsel %vm1431_vm1, %v2199_v28, 0  ;;  %v2262_v34 = vsel %vm1431_vm1, %v2200_v29, 0 }
 0x53d   : > { %2252 = vmatpush.bf16.xpose.msrb.mxu2 %v2243_v32  ;;  %2271 = vmatpush.bf16.xpose.msrb.mxu3 %v2262_v34 }
 0x53e   : > { %3123 = vmatmul.msk.bf16.vlgmr.msrb.gmra.mxu0 %vm1431_vm1, %v2193_v30  ;;  %3124 = vmatmul.msk.bf16.vlgmr.msrb.gmra.mxu1 %vm1431_vm1, %v2194_v31 }
 0x53f   : > { %v2054_v37 = vpop.f32.mrf.mxu2  ;;  %v2079_v38 = vpop.f32.mrf.mxu3 }
 0x540   : > { %v2114_v43 = vpop.f32.mrf.mxu0  ;;  %v2139_v44 = vpop.f32.mrf.mxu1 }
 0x541   : > { %v2115_v45 = vadd.f32 %v3318_v41, %v2114_v43  ;;  %v2140_v46 = vadd.f32 %v3319_v42, %v2139_v44 }
 0x543   : > { %v2385_v49 = vpack.c.bf16 %v2115_v45, %v2115_v45  ;;  %v2386_v50 = vpack.c.bf16 %v2140_v46, %v2140_v46 }
 0x544   : > { %3125 = vmatmul.msk.bf16.vlgmr.msrb.gmra.mxu2 %vm1431_vm1, %v2195_v39  ;;  %3126 = vmatmul.msk.bf16.vlgmr.msrb.gmra.mxu3 %vm1431_vm1, %v2196_v40 }
 0x545   : > { %v2393_v53 = vsel %vm1579_vm2, %v2385_v49, 0  ;;  %v2412_v54 = vsel %vm1579_vm2, %v2386_v50, 0 }
 0x546   : > { %2402 = vmatpush.bf16.msra.mxu0 %v2393_v53  ;;  %2421 = vmatpush.bf16.msra.mxu1 %v2412_v54 }
 0x547   : > { %v2164_v51 = vpop.f32.mrf.mxu2  ;;  %v2189_v57 = vpop.f32.mrf.mxu3 }
 0x548   : > { %v2165_v55 = vadd.f32 %v3320_v48, %v2164_v51  ;;  %v2116_v58 = vpop.f32.mrf.mxu0  ;;  %v2141_v59 = vpop.f32.mrf.mxu1  ;;  %v2190_v60 = vadd.f32 %v3321_v52, %v2189_v57 }
 0x54a   : > { %v2387_v56 = vpack.c.bf16 %v2165_v55, %v2165_v55  ;;  %v2388_v62 = vpack.c.bf16 %v2190_v60, %v2190_v60 }
 0x54c   : > { %v2431_v61 = vsel %vm1579_vm2, %v2387_v56, 0  ;;  %v2450_v63 = vsel %vm1579_vm2, %v2388_v62, 0 }
 0x54d   : > { %2440 = vmatpush.bf16.msra.mxu2 %v2431_v61  ;;  %2459 = vmatpush.bf16.msra.mxu3 %v2450_v63 }
 0x54f   : > { %v2166_v0 = vpop.f32.mrf.mxu2  ;;  %v2191_v1 = vpop.f32.mrf.mxu3 }
 0x5bb   : > { %v2216_v6 = vpop.f32.mrf.mxu0  ;;  %v2235_v7 = vpop.f32.mrf.mxu1 }
 0x5bc   : > { %v2281_v8 = vsel %vm3876_vm12, %v2216_v6, -1e+10  ;;  %v2282_v18 = vsel %vm3876_vm12, %v2235_v7, -1e+10 }
 0x5bd   : > { %v2285_v9 = vsel %vm1431_vm1, %v2281_v8, -inf  ;;  %v2288_v21 = vsel %vm1431_vm1, %v2282_v18, -inf }
 0x5be   : > { %2286 = vmax.xlane.f32.xlu0 %v2285_v9 }
 0x5c3   : > { %v2218_v12 = vpop.f32.mrf.mxu0  ;;  %v2237_v11 = vpop.f32.mrf.mxu1 }
 0x5c7   : > { %v2254_v13 = vpop.f32.mrf.mxu2  ;;  %v2273_v14 = vpop.f32.mrf.mxu3 }
 0x5c8   : > { %v2283_v33 = vsel %vm3876_vm12, %v2254_v13, -1e+10  ;;  %v2284_v15 = vsel %vm3876_vm12, %v2273_v14, -1e+10 }
 0x5c9   : > { %v2294_v16 = vsel %vm1431_vm1, %v2284_v15, -inf  ;;  %v2291_v17 = vsel %vm1431_vm1, %v2283_v33, -inf }
 0x5ca   : > { %2295 = vmax.xlane.f32.xlu2 %v2294_v16  ;;  %2292 = vmax.xlane.f32.xlu1 %v2291_v17 }
 0x5cf   : > { %v2256_v19 = vpop.f32.mrf.mxu2  ;;  %v2275_v20 = vpop.f32.mrf.mxu3 }
 0x5d2   : > { %2289 = vmax.xlane.f32.xlu1 %v2288_v21 }
 0x631   : > { %v2287_v22 = vpop.xlane.xlu0 %2286 }
 0x632   : > { %v2297_v23 = vsub.f32 %v2281_v8, %v2287_v22 }
 0x634   : > { %v2301_v24 = vmul.f32 1.442695, %v2297_v23 }
 0x636   : > { %3349 = vpow2.f32 %v2301_v24 }
 0x63c   : > { %v3350_v25 = vpop.eup %3349 }
 0x63d   : > { %v2296_v26 = vpop.xlane.xlu2 %2295  ;;  %v2293_v27 = vpop.xlane.xlu1 %2292  ;;  %v2309_v28 = vsel %vm1431_vm1, %v3350_v25, 0.0 }
 0x63e   : > { %v2300_v29 = vsub.f32 %v2284_v15, %v2296_v26  ;;  %v2299_v30 = vsub.f32 %v2283_v33, %v2293_v27  ;;  %2310 = vadd.xlane.f32.xlu1 %v2309_v28 }
 0x640   : > { %v2307_v31 = vmul.f32 1.442695, %v2300_v29  ;;  %v2305_v32 = vmul.f32 1.442695, %v2299_v30 }
 0x642   : > { %3351 = vpow2.f32 %v2307_v31 }
 0x643   : > { %3353 = vpow2.f32 %v2305_v32  ;;  %v1842_v32 = vld [vmem:[%s4055_s18] sm:$0xf] }
 0x645   : > { %v2290_v34 = vpop.xlane.xlu1 %2289 }
 0x646   : > { %v2298_v35 = vsub.f32 %v2282_v18, %v2290_v34  ;;  %v2473_v34 = vsel %vm1579_vm2, %v1842_v32, 0 }
 0x647   : > { %2482 = vmatpush.bf16.msrb.mxu0 %v2473_v34  ;;  %v3217_v34 = vld [vmem:[%s4058_s7 + $0x8] sm:$0xff] }
 0x648   : > { %v3893_v36 = vpop.eup %3351  ;;  %v2303_v37 = vmul.f32 1.442695, %v2298_v35  ;;  %v1844_v35 = vld [vmem:[%s4055_s18 + $0x8] sm:$0xf] }
 0x649   : > { %v3895_v38 = vpop.eup %3353  ;;  %v2318_v39 = vsel %vm1431_vm1, %v3893_v36, 0.0 }
 0x64a   : > { %3355 = vpow2.f32 %v2303_v37  ;;  %v2315_v40 = vsel %vm1431_vm1, %v3895_v38, 0.0  ;;  %2319 = vadd.xlane.f32.xlu0 %v2318_v39  ;;  %v2511_v37 = vsel %vm1579_vm2, %v1844_v35, 0  ;;  %v1843_v39 = vld [vmem:[%s4055_s18 + $0x4] sm:$0xf] }
 0x64b   : > { %2316 = vadd.xlane.f32.xlu2 %v2315_v40  ;;  %2520 = vmatpush.bf16.msrb.mxu2 %v2511_v37  ;;  %v2492_v40 = vsel %vm1579_vm2, %v1843_v39, 0  ;;  %v3216_v35 = vld [vmem:[%s4058_s7] sm:$0xff] }
 0x64c   : > { %2501 = vmatpush.bf16.msrb.mxu1 %v2492_v40 }
 0x650   : > { %v3901_v41 = vpop.eup %3355 }
 0x651   : > { %v2312_v42 = vsel %vm1431_vm1, %v3901_v41, 0.0 }
 0x653   : > { %2313 = vadd.xlane.f32.xlu2 %v2312_v42 }
 0x6b1   : > { %v2311_v43 = vpop.xlane.xlu1 %2310 }
 0x6b2   : > { %3357 = vrcp.f32 %v2311_v43  ;;  %v2332_v48 = vand.u32 2147483648, %v2311_v43  ;;  %v2330_v50 = vand.u32 2147483647, %v2311_v43  ;;  %vm2326_vm14 = vweird.f32 %v2311_v43 }
 0x6b4   : > { %v2333_v54 = vor.u32 1.1754944e-38, %v2332_v48  ;;  %vm2331_vm3 = vcmp.eq.f32.partialorder %v2330_v50, 8.507059e+37 }
 0x6b8   : > { %v3358_v44 = vpop.eup %3357 }
 0x6b9   : > { %v2322_v45 = vmul.f32 %v3358_v44, %v2311_v43  ;;  %vm2327_vm13 = vweird.f32 %v3358_v44 }
 0x6ba   : > { %vm2328_vm15 = vmor %vm2326_vm14, %vm2327_vm13 }
 0x6bb   : > { %v2323_v46 = vsub.f32 1.0, %v2322_v45 }
 0x6bd   : > { %v2324_v49 = vmul.f32 %v3358_v44, %v2323_v46  ;;  %v2320_v51 = vpop.xlane.xlu0 %2319 }
 0x6be   : > { %v2317_v52 = vpop.xlane.xlu2 %2316  ;;  %3359 = vrcp.f32 %v2320_v51  ;;  %v2377_v2 = vand.u32 2147483648, %v2320_v51  ;;  %v2375_v5 = vand.u32 2147483647, %v2320_v51  ;;  %vm2371_vm6 = vweird.f32 %v2320_v51 }
 0x6bf   : > { %v2325_v53 = vadd.f32 %v3358_v44, %v2324_v49  ;;  %3361 = vrcp.f32 %v2317_v52  ;;  %v2362_v3 = vand.u32 2147483648, %v2317_v52  ;;  %v2360_v7 = vand.u32 2147483647, %v2317_v52 }
 0x6c0   : > { %vm2356_vm7 = vweird.f32 %v2317_v52  ;;  %v2378_v12 = vor.u32 1.1754944e-38, %v2377_v2  ;;  %vm2376_vm10 = vcmp.eq.f32.partialorder %v2375_v5, 8.507059e+37 }
 0x6c1   : > { %v2329_v55 = vsel %vm2328_vm15, %v3358_v44, %v2325_v53  ;;  %v2363_v13 = vor.u32 1.1754944e-38, %v2362_v3  ;;  %vm2361_vm11 = vcmp.eq.f32.partialorder %v2360_v7, 8.507059e+37 }
 0x6c2   : > { %v2334_v56 = vsel %vm2331_vm3, %v2333_v54, %v2329_v55 }
 0x6c3   : > { %v2335_v57 = vmul.f32 %v3350_v25, %v2334_v56 }
 0x6c4   : > { %v3360_v58 = vpop.eup %3359 }
 0x6c5   : > { %v3362_v59 = vpop.eup %3361  ;;  %2713 = vst.msk [vmem:[%s3908_s3] sm:$0xff] %vm1431_vm1, %v2335_v57  ;;  %v2367_v60 = vmul.f32 %v3360_v58, %v2320_v51  ;;  %v2381_v61 = vpack.c.bf16 %v2335_v57, %v2335_v57  ;;  %vm2372_vm4 = vweird.f32 %v3360_v58 }
 0x6c6   : > { %v2352_v62 = vmul.f32 %v3362_v59, %v2317_v52  ;;  %v2314_v63 = vpop.xlane.xlu2 %2313  ;;  %vm2357_vm5 = vweird.f32 %v3362_v59  ;;  %vm2373_vm8 = vmor %vm2371_vm6, %vm2372_vm4  ;;  %vm2664_vm4 = vcmask 523264  }
 0x6c7   : > { %v2368_v0 = vsub.f32 1.0, %v2367_v60  ;;  %3363 = vrcp.f32 %v2314_v63  ;;  %3127 = vmatmul.msk.bf16.vlgmr.msra.gmra.mxu0 %vm1431_vm1, %v2381_v61  ;;  %vm2358_vm9 = vmor %vm2356_vm7, %vm2357_vm5  ;;  %v2347_v21 = vand.u32 2147483648, %v2314_v63  ;;  %v2345_v24 = vand.u32 2147483647, %v2314_v63 }
 0x6c8   : > { %v2353_v1 = vsub.f32 1.0, %v2352_v62  ;;  %vm2341_vm13 = vweird.f32 %v2314_v63 }
 0x6c9   : > { %v2369_v4 = vmul.f32 %v3360_v58, %v2368_v0  ;;  %v2348_v27 = vor.u32 1.1754944e-38, %v2347_v21  ;;  %vm2346_vm15 = vcmp.eq.f32.partialorder %v2345_v24, 8.507059e+37  ;;  %v3322_v0 = vld [vmem:[%s4056_s5] ss:$0 sm:$0xff]  ;;  %s4059_s5 = sld [smem:[#allocation20_spill]] }
 0x6ca   : > { %v2354_v6 = vmul.f32 %v3362_v59, %v2353_v1 }
 0x6cb   : > { %v2370_v8 = vadd.f32 %v3360_v58, %v2369_v4 }
 0x6cc   : > { %v2355_v9 = vadd.f32 %v3362_v59, %v2354_v6 }
 0x6cd   : > { %v3364_v11 = vpop.eup %3363  ;;  %v2374_v14 = vsel %vm2373_vm8, %v3360_v58, %v2370_v8 }
 0x6ce   : > { %v2359_v33 = vsel %vm2358_vm9, %v3362_v59, %v2355_v9  ;;  %v2379_v15 = vsel %vm2376_vm10, %v2378_v12, %v2374_v14  ;;  %v2337_v16 = vmul.f32 %v3364_v11, %v2314_v63  ;;  %vm2342_vm12 = vweird.f32 %v3364_v11 }
 0x6cf   : > { %v2364_v17 = vsel %vm2361_vm11, %v2363_v13, %v2359_v33  ;;  %v2380_v18 = vmul.f32 %v3893_v36, %v2379_v15  ;;  %vm2343_vm14 = vmor %vm2341_vm13, %vm2342_vm12  ;;  %v1845_v36 = vld [vmem:[%s4055_s18 + $0xc] sm:$0xf]  ;;  %v3214_v15 = vld [vmem:[%s4057_s6] sm:$0xff]  ;;  %s3389_s18 = scalar_lea.hbm %s3631_s20, 64 }
 0x6d0   : > { %v2365_v19 = vmul.f32 %v3895_v38, %v2364_v17  ;;  %v2338_v20 = vsub.f32 1.0, %v2337_v16  ;;  %v2530_v38 = vsel %vm1579_vm2, %v1845_v36, 0  ;;  %v3215_v33 = vld [vmem:[%s4057_s6 + $0x8] sm:$0xff]  ;;  %v3219_v16 = vld [vmem:[%s4058_s7 + $0x18] sm:$0xff]  ;;  %s4061_s6 = sld [smem:[#allocation23_spill]] }
 0x6d1   : > { %2716 = vst.msk [vmem:[%s3908_s3 + $0x18] sm:$0xff] %vm1431_vm1, %v2380_v18  ;;  %v2384_v22 = vpack.c.bf16 %v2380_v18, %v2380_v18  ;;  %2539 = vmatpush.bf16.msrb.mxu3 %v2530_v38  ;;  %2628 = vmatpush.bf16.msra.mxu0 %v3215_v33  ;;  %v3218_v18 = vld [vmem:[%s4058_s7 + $0x10] sm:$0xff]  ;;  %s4063_s7 = sand.u32 1, %s3423_s23  }
 0x6d2   : > { %2715 = vst.msk [vmem:[%s3908_s3 + $0x10] sm:$0xff] %vm1431_vm1, %v2365_v19  ;;  %v2339_v23 = vmul.f32 %v3364_v11, %v2338_v20  ;;  %v2383_v25 = vpack.c.bf16 %v2365_v19, %v2365_v19  ;;  %s2722_s12 = scalar_lea.sflag [#allocation3], %s4063_s7 }
 0x6d3   : > { %3130 = vmatmul.msk.bf16.vlgmr.msra.gmra.mxu3 %vm1431_vm1, %v2384_v22 }
 0x6d4   : > { %v2340_v26 = vadd.f32 %v3364_v11, %v2339_v23  ;;  %3129 = vmatmul.msk.bf16.vlgmr.msra.gmra.mxu2 %vm1431_vm1, %v2383_v25 }
 0x6d5   : > { %2629 = vmatpush.bf16.msra.mxu0 %v3214_v15 }
 0x6d6   : > { %v2344_v28 = vsel %vm2343_vm14, %v3364_v11, %v2340_v26  ;;  %v3323_v26 = vld [vmem:[%s4059_s5] ss:$0 sm:$0xff] }
 0x6d7   : > { %v2349_v29 = vsel %vm2346_vm15, %v2348_v27, %v2344_v28  ;;  %v3324_v28 = vld [vmem:[%s4060_s8] ss:$0 sm:$0xff]  ;;  %s3220_s8 = sshll.u32 %s3654_s0, 5 }
 0x6d8   : > { %v2350_v30 = vmul.f32 %v3901_v41, %v2349_v29  ;;  %v3325_v36 = vld [vmem:[%s4061_s6] ss:$0 sm:$0xff]  ;;  %s2736_s6 = scalar_lea.hbm %s3631_s20, %s3220_s8 }
 0x6d9   : > { %s2739_s5 = sshll.u32 %s2736_s6, 4  ;;  %s2740_s5 = int_to_ptr.hbm [resolvable:$true] %s2739_s5 }
 0x6da   : > { %2714 = vst.msk [vmem:[%s3908_s3 + $0x8] sm:$0xff] %vm1431_vm1, %v2350_v30  ;;  %v2382_v31 = vpack.c.bf16 %v2350_v30, %v2350_v30  ;;  %s3383_s13 = sshra.s32 %s2740_s5, 4  ;;  %s3384_s13 = int_to_ptr.hbm [resolvable:$true] %s3383_s13 }
 0x6db   : > { %s3385_s14 = scalar_lea.hbm %s3384_s13, 32  ;;  %p3390_p0 = scmp.lt.s32.totalorder %s3384_s13, %s3631_s20 }
 0x6dc   : > { %3128 = vmatmul.msk.bf16.vlgmr.msra.gmra.mxu1 %vm1431_vm1, %v2382_v31  ;;  %p3386_p11 = scmp.ne.s32.totalorder %s3384_s13, %s3385_s14  ;;  %p3391_p1 = scmp.lt.s32.totalorder %s3389_s18, %s3385_s14 }
 0x6dd   : > { %2672 = vmatpush.bf16.msra.mxu1 %v3219_v16 }
 0x6de   : > { %p3387_p12 = pnand %p3386_p11, %p3671_p5  ;;  %p3392_p2 = por %p3391_p1, %p3390_p0 }
 0x6e0   : > { %p3388_p13 = pneg %p3387_p12 }
 0x6e1   : > { %2673 = vmatpush.bf16.msra.mxu1 %v3218_v18 }
 0x6e2   : > { %p3393_p3 = pnand %p3392_p2, %p3388_p13 }
 0x6e5   : > { %2674 = vmatpush.bf16.msra.mxu1 %v3217_v34 }
 0x6e9   : > { %2675 = vmatpush.bf16.msra.mxu1 %v3216_v35 }
 0x744   : > { %v2404_v41 = vpop.f32.mrf.mxu0 }
 0x745   : > { %v2465_v42 = vpack.c.bf16 %v2404_v41, %v2404_v41 }
 0x747   : > { %3131 = vmatmul.msk.bf16.vlgmr.msrb.gmra.mxu0 %vm1431_vm1, %v2465_v42  ;;  %v3326_v42 = vld [vmem:[%s4062_s10] ss:$0 sm:$0xff]  ;;  %s2737_s10 = sshll.u32 %s3908_s3, 4  ;;  %s2738_s10 = int_to_ptr.vmem [resolvable:$true] %s2737_s10 }
 0x74c   : > { %v2406_v43 = vpop.f32.mrf.mxu0 }
 0x756   : > { %v2461_v44 = vpop.f32.mrf.mxu3 }
 0x757   : > { %v2442_v45 = vpop.f32.mrf.mxu2  ;;  %v2468_v46 = vpack.c.bf16 %v2461_v44, %v2461_v44 }
 0x758   : > { %v2467_v48 = vpack.c.bf16 %v2442_v45, %v2442_v45 }
 0x759   : > { %v2423_v49 = vpop.f32.mrf.mxu1  ;;  %3134 = vmatmul.msk.bf16.vlgmr.msrb.gmra.mxu3 %vm1431_vm1, %v2468_v46 }
 0x75a   : > { %v2466_v50 = vpack.c.bf16 %v2423_v49, %v2423_v49  ;;  %3133 = vmatmul.msk.bf16.vlgmr.msrb.gmra.mxu2 %vm1431_vm1, %v2467_v48 }
 0x75c   : > { %3132 = vmatmul.msk.bf16.vlgmr.msrb.gmra.mxu1 %vm1431_vm1, %v2466_v50 }
 0x75e   : > { %v2463_v51 = vpop.f32.mrf.mxu3 }
 0x75f   : > { %v2444_v52 = vpop.f32.mrf.mxu2 }
 0x761   : > { %v2425_v53 = vpop.f32.mrf.mxu1 }
 0x7c4   : > { %v2484_v54 = vpop.f32.mrf.mxu0 }
 0x7c5   : > { %v2545_v58 = vsel %vm1107_vm0, %v2484_v54, 0.0 }
 0x7cc   : > { %v2486_v55 = vpop.f32.mrf.mxu0 }
 0x7d9   : > { %v2503_v56 = vpop.f32.mrf.mxu1 }
 0x7da   : > { %v2546_v57 = vsel %vm1107_vm0, %v2503_v56, 0.0 }
 0x7db   : > { %v2547_v60 = vadd.f32 %v2546_v57, %v2545_v58 }
 0x7dc   : > { %v2541_v59 = vpop.f32.mrf.mxu3 }
 0x7dd   : > { %v2522_v61 = vpop.f32.mrf.mxu2  ;;  %v2550_v1 = vsel %vm1107_vm0, %v2541_v59, 0.0 }
 0x7de   : > { %v2548_v62 = vsel %vm1107_vm0, %v2522_v61, 0.0 }
 0x7df   : > { %v2549_v63 = vadd.f32 %v2548_v62, %v2547_v60 }
 0x7e1   : > { %v2551_v2 = vadd.f32 %v2550_v1, %v2549_v63  ;;  %v2505_v3 = vpop.f32.mrf.mxu1 }
 0x7e3   : > { %v2555_v4 = vadd.f32 %v3322_v0, %v2551_v2 }
 0x7e4   : > { %v2543_v5 = vpop.f32.mrf.mxu3 }
 0x7e5   : > { %v2524_v6 = vpop.f32.mrf.mxu2  ;;  %v2556_v7 = vadd.f32 %v2555_v4, %v3823_v47 }
 0x7e7   : > { %v2557_v8 = vsel %vm1107_vm0, %v2556_v7, 0.0 }
 0x7e8   : > { %2558 = vadd.xlane.f32.xlu0 %v2557_v8 }
 0x85b   : > { %v2559_v9 = vpop.xlane.xlu0 %2558 }
 0x85c   : > { %v2560_v12 = vmul.f32 %v2559_v9, %v3800_v10 }
 0x85e   : > { %v2561_v11 = vsub.f32 %v2556_v7, %v2560_v12 }
 0x860   : > { %v2562_v13 = vmul.f32 %v2561_v11, %v2561_v11 }
 0x862   : > { %v2563_v14 = vsel %vm1107_vm0, %v2562_v13, 0.0 }
 0x863   : > { %2564 = vadd.xlane.f32.xlu1 %v2563_v14 }
 0x8d6   : > { %v2565_v17 = vpop.xlane.xlu1 %2564 }
 0x8d7   : > { %v2566_v47 = vmul.f32 %v2565_v17, %v3800_v10 }
 0x8d9   : > { %v2567_v19 = vadd.f32 1e-05, %v2566_v47 }
 0x8db   : > { %3365 = vrsqrt.f32 %v2567_v19  ;;  %vm2574_vm2 = vweird.f32 %v2567_v19 }
 0x8e1   : > { %v3366_v20 = vpop.eup %3365 }
 0x8e2   : > { %v2569_v21 = vmul.f32 %v3366_v20, %v2567_v19  ;;  %vm2575_vm1 = vweird.f32 %v3366_v20 }
 0x8e3   : > { %vm2576_vm3 = vmor %vm2574_vm2, %vm2575_vm1 }
 0x8e4   : > { %v2570_v22 = vmul.f32 %v3366_v20, %v2569_v21 }
 0x8e6   : > { %v2571_v23 = vmul.f32 0.5, %v2570_v22 }
 0x8e8   : > { %v2572_v24 = vsub.f32 1.5, %v2571_v23 }
 0x8ea   : > { %v2573_v25 = vmul.f32 %v3366_v20, %v2572_v24 }
 0x8ec   : > { %v2577_v27 = vsel %vm2576_vm3, %v3366_v20, %v2573_v25 }
 0x8ed   : > { %v2578_v29 = vmul.f32 %v2577_v27, %v2561_v11 }
 0x8ef   : > { %v2582_v30 = vmul.f32 %v3323_v26, %v2578_v29 }
 0x8f1   : > { %v2586_v31 = vadd.f32 %v3324_v28, %v2582_v30 }
 0x8f3   : > { %v2603_v32 = vpack.c.bf16 %v2586_v31, %v2586_v31 }
 0x8f5   : > { %3143 = vmatmul.msk.bf16.vlgmr.msra.gmra.mxu0 %vm1107_vm0, %v2603_v32 }
 0x972   : > { %v2631_v37 = vpop.f32.mrf.mxu0 }
 0x973   : > { %v2632_v38 = vadd.f32 %v3325_v36, %v2631_v37 }
 0x975   : > { %v2635_v39 = vmax.f32 %v2632_v38, 0.0 }
 0x977   : > { %v2636_v40 = vpack.c.bf16 %v2635_v39, %v2635_v39 }
 0x979   : > { %3160 = vmatmul.msk.bf16.vlgmr.msra.gmra.mxu1 %vm2664_vm4, %v2636_v40 }
 0x97a   : > { %v2633_v41 = vpop.f32.mrf.mxu0 }
 0x9f6   : > { %v2677_v43 = vpop.f32.mrf.mxu1 }
 0x9f7   : > { %v2678_v44 = vadd.f32 %v3326_v42, %v2677_v43 }
 0x9f9   : > { %v2681_v45 = vadd.f32 %v2678_v44, %v2586_v31 }
 0x9fb   : > { %v2682_v46 = vsel %vm1107_vm0, %v2681_v45, 0.0 }
 0x9fc   : > { %2683 = vadd.xlane.f32.xlu2 %v2682_v46 }
 0x9fe   : > { %v2679_v48 = vpop.f32.mrf.mxu1 }
 0xa6f   : > { %v2684_v49 = vpop.xlane.xlu2 %2683 }
 0xa70   : > { %v2685_v50 = vmul.f32 %v2684_v49, %v3800_v10 }
 0xa72   : > { %v2686_v51 = vsub.f32 %v2681_v45, %v2685_v50 }
 0xa74   : > { %v2687_v52 = vmul.f32 %v2686_v51, %v2686_v51 }
 0xa76   : > { %v2688_v53 = vsel %vm1107_vm0, %v2687_v52, 0.0 }
 0xa77   : > { %2689 = vadd.xlane.f32.xlu0 %v2688_v53 }
 0xa78   : > { %3396 = shalt.err (!%p3393_p3)
}
 0xa79   : > { %s3466_s0 = smov 128   ;;  %s3467_s3 = smov 8   ;;  %v3327_v63 = vld [vmem:[%s3616_s9] ss:$0 sm:$0xff] }
 0xa7a   : > { %3221 = dma.vmem_to_hbm [thread:$0]  (%p3671_p5), %s2738_s10, 512, %s2740_s5, %s2722_s12, %s3466_s0, %s3466_s0, %s3467_s3  }
 0xa7b   : > { %v3328_v1 = vld [vmem:[%s3621_s4] ss:$0 sm:$0xff]  ;;  %s1009_s13 = scalar_lea.vmem %s3626_s17, %s3694_s1 }
 0xaea   : > { %v2690_v54 = vpop.xlane.xlu0 %2689 }
 0xaeb   : > { %v2691_v55 = vmul.f32 %v2690_v54, %v3800_v10 }
 0xaed   : > { %v2692_v56 = vadd.f32 1e-05, %v2691_v55 }
 0xaef   : > { %3367 = vrsqrt.f32 %v2692_v56  ;;  %vm2699_vm6 = vweird.f32 %v2692_v56 }
 0xaf5   : > { %v3368_v57 = vpop.eup %3367 }
 0xaf6   : > { %v2694_v58 = vmul.f32 %v3368_v57, %v2692_v56  ;;  %vm2700_vm5 = vweird.f32 %v3368_v57 }
 0xaf7   : > { %vm2701_vm7 = vmor %vm2699_vm6, %vm2700_vm5 }
 0xaf8   : > { %v2695_v59 = vmul.f32 %v3368_v57, %v2694_v58 }
 0xafa   : > { %v2696_v60 = vmul.f32 0.5, %v2695_v59 }
 0xafc   : > { %v2697_v61 = vsub.f32 1.5, %v2696_v60 }
 0xafe   : > { %v2698_v62 = vmul.f32 %v3368_v57, %v2697_v61 }
 0xb00   : > { %v2702_v0 = vsel %vm2701_vm7, %v3368_v57, %v2698_v62 }
 0xb01   : > { %v2703_v2 = vmul.f32 %v2702_v0, %v2686_v51 }
 0xb03   : > { %v2707_v3 = vmul.f32 %v3327_v63, %v2703_v2 }
 0xb05   : > { %v2711_v10 = vadd.f32 %v3328_v1, %v2707_v3 }
 0xb07   : > { %2712 = vst.msk [vmem:[%s1009_s13] sm:$0xff] %vm1107_vm0, %v2711_v10 }
 0xb08 PF: > { %p3227_p4 = scmp.ge.s32.totalorder %s3431_s28, 2  ;;  %s2761_s14 = sand.u32 1, %s3419_s22  }
 0xb09   : > { %s2762_s12 = scalar_lea.sflag [#allocation3], %s2761_s14 }
 0xb0a   : > { %p3224_p5 = pnand %p3227_p4, %p3675_p6 }
 0xb0c   : > { %p3225_p7 = pneg %p3224_p5 }
 0xb0e   : > { %3414 = dma.done.wait (%p3225_p7), %s2762_s12, 512  }
 0xb0f   : > { %3416 = vsyncadd (%p3225_p7), %s2762_s12, 4294966784  ;;  %p74_p8 = scmp.ge.s32.totalorder %s3658_s2, 4   ;;  %s4064_s22 = smov %s3423_s23 }
 0xb10   : > { %s4065_s23 = smov %s3427_s26  ;;  %s4066_s26 = smov %s3669_s11 }
 0xb11   : > { %s4067_s28 = smov %s3658_s2  ;;  %76 = sbr.rel (!%p74_p8) target bundleno = 59 (0x3b), region = 227 }
 0xb16   :  { %2768 = vsyncpa [#allocation3], 1 }
 0xb17   :  { %2770 = vsyncpa [#allocation3 + $0x1], 1 }

</bundles_post_ra>
